<compile_context>
chip_gen: v6e
topology: v6e:2x2x1
jax: 0.10.0
libtpu: 0.0.40
codegen_flags: <defaults>
</compile_context>

<pallas_src>
import jax
import jax.numpy as jnp
from jax.experimental import pallas as pl
from jax.experimental.pallas import tpu as pltpu

N_FILTERS = 400                 # hardcoded by the module (ker.repeat(400,1,1,1), groups=400)
KERNEL_WIDTH = 200              # hardcoded 200-tap Gaussian
SIGMA = 10.0
GAUSS_CENTER = 99.5
PAD_LEFT = (KERNEL_WIDTH - 1) // 2            # 99
PAD_RIGHT = KERNEL_WIDTH - 1 - PAD_LEFT       # 100 (PyTorch puts the extra zero on the right)


def _gaussian_taps():
    # torch: x_values = linspace(0, 200, 200); exp(-(x_values - 99.5)^2 / (2 * 10^2))
    x_values = jnp.linspace(0.0, 200.0, KERNEL_WIDTH, dtype=jnp.float32)
    return jnp.exp(-jnp.square(x_values - GAUSS_CENTER) / (2.0 * SIGMA * SIGMA))


def _conv_band_matrix(width):
    """(width, width) matrix K with  (X @ K)[r, i] == depthwise 'same' conv(X, taps)[r, i].

    PyTorch cross-correlation with 'same' padding (99 left / 100 right for the even
    200-tap kernel) gives  out[i] = sum_k taps[k] * x[i + k - 99],  i.e.
    K[j, i] = taps[j - i + 99] wherever that tap index is in range, else 0.
    """
    taps = _gaussian_taps()
    j = jnp.arange(width, dtype=jnp.int32)[:, None]
    i = jnp.arange(width, dtype=jnp.int32)[None, :]
    k_idx = j - i + PAD_LEFT
    in_range = (k_idx >= 0) & (k_idx < KERNEL_WIDTH)
    return jnp.where(
        in_range, taps[jnp.clip(k_idx, 0, KERNEL_WIDTH - 1)], 0.0
    ).astype(jnp.float32)


def _plan_tiles(rows, width, *, vmem_budget_bytes=10 << 20, max_rows=2048):
    """Pick (row_tile, grid, padded_rows) for the flattened (rows, width) input.

    Row-tile cap comes from a per-row VMEM estimate: f32 X tile double-buffered (2*4*W),
    single-buffered f32 intermediates (conv, shifted x, exp) plus the bf16 matmul operand
    (~14*W), and the 128-lane-padded packed output, double-buffered (2*128*4).  ~10 MiB
    stays under every generation's scoped-VMEM default (16 MiB on v5e) with headroom.
    The grid is kept at >= 2 steps (rows >= 256) so "parallel" can shard across both v7x
    TensorCores; among feasible tiles we take the fewest grid steps, then least padding.
    """
    per_row_bytes = 2 * 4 * width + 14 * width + 2 * 128 * 4
    cap = max(8, min(max_rows, vmem_budget_bytes // per_row_bytes) // 8 * 8)
    min_grid = 2 if rows >= 256 else 1
    best_key, best = None, None
    tile = 8
    while tile <= cap:
        grid = max(min_grid, pl.cdiv(rows, tile))
        padded = grid * tile
        key = (grid, padded)          # fewest grid steps first, then least padded work
        if best_key is None or key < best_key:
            best_key, best = key, (tile, grid, padded)
        tile += 8
    return best


def _xent_kernel(x_ref, k_ref, out_ref):
    """One row-tile of flattened X: bf16 conv (MXU) -> argmax, NotToSkip mask, masked xent."""
    rows_t, width = x_ref.shape
    x = x_ref[...]                                              # (R, W) f32 rows of X

    # Depthwise 'same' Gaussian conv for all rows at once: ONE single-pass bf16 MXU matmul
    # (f32 accumulation).  Its result only feeds the argmax of a Gaussian-smoothed signal.
    conv = jnp.dot(x.astype(jnp.bfloat16), k_ref[...],
                   preferred_element_type=jnp.float32)          # (R, W) f32

    col = jax.lax.broadcasted_iota(jnp.int32, (rows_t, width), 1)   # built once, reused

    # centerOfMass = first-occurrence argmax; tie-break kept fully in int32 (no float casts).
    conv_max = jnp.max(conv, axis=-1, keepdims=True)            # (R, 1)
    com = jnp.min(jnp.where(conv == conv_max, col, width),
                  axis=-1, keepdims=True)                       # (R, 1) int32

    # NotToSkip mask and cross entropy, sharing one shifted traversal of x.
    row_max = jnp.max(x, axis=-1, keepdims=True)                # (R, 1)
    valid = row_max > 0.0                                       # rows whose max is > 0
    xs = x - row_max                                            # shared by lse and gather
    sum_exp = jnp.sum(jnp.exp(xs), axis=-1, keepdims=True)      # EUP
    tgt_s = jnp.sum(jnp.where(col == com, xs, 0.0), axis=-1, keepdims=True)  # x[com]-row_max
    # loss_row = logsumexp(x) - x[com] = log(sum_exp) - (x[com] - row_max); masked rows -> 0.
    loss = jnp.where(valid, jnp.log(sum_exp) - tgt_s, 0.0)      # (R, 1)

    # Pack the three per-row stats into one (R, 3) store: a single 128-lane-padded VMEM
    # output buffer, 3x fewer masked stores, one writeback DMA.  com <= 200 so f32 is exact.
    lane3 = jax.lax.broadcasted_iota(jnp.int32, (rows_t, 3), 1)
    out_ref[...] = jnp.where(
        lane3 == 0, com.astype(jnp.float32),
        jnp.where(lane3 == 1, valid.astype(jnp.float32), loss))


def xent_forward(prediction, X):
    """Pallas port of Xent.forward(prediction, X).

    X: (B, 400, W) float.  Returns (loss, centerOfMass, valid_mask); valid_mask is the
    boolean form of PyTorch's NotToSkip row selection (the dynamic-shaped torch.where
    index tuple has no jit/Pallas equivalent -- use jnp.nonzero(valid_mask) eagerly).
    Note: for B == 1 PyTorch's .squeeze() would also drop the batch dim; we keep (B, 400).
    """
    del prediction  # the original module never uses it in forward()
    batch, channels, width = X.shape
    if channels != N_FILTERS:
        raise ValueError(f"Xent expects {N_FILTERS} channels, got {channels}")

    rows = batch * channels
    x_flat = X.reshape(rows, width).astype(jnp.float32)
    k_mat = _conv_band_matrix(width).astype(jnp.bfloat16)       # bf16 MXU operand

    row_tile, grid, padded_rows = _plan_tiles(rows, width)
    if padded_rows != rows:
        # Zero-padded rows: row_max == 0 -> masked out of the loss; sliced off below.
        x_flat = jnp.pad(x_flat, ((0, padded_rows - rows), (0, 0)))

    packed = pl.pallas_call(
        _xent_kernel,
        out_shape=jax.ShapeDtypeStruct((padded_rows, 3), jnp.float32),
        grid=(grid,),
        in_specs=[
            pl.BlockSpec((row_tile, width), lambda g: (g, 0)),   # lane-dense row tile of X
            pl.BlockSpec((width, width), lambda g: (0, 0)),      # Gaussian band matrix: resident
        ],
        out_specs=pl.BlockSpec((row_tile, 3), lambda g: (g, 0)),
        compiler_params=pltpu.CompilerParams(
            dimension_semantics=("parallel",),                   # grid >= 2 -> both v7x cores
        ),
    )(x_flat, k_mat)

    packed = packed[:rows]
    center_of_mass = packed[:, 0].astype(jnp.int32).reshape(batch, channels)
    valid_mask = (packed[:, 1] > 0.5).reshape(batch, channels)
    # Tiny (B*400)-element reduction kept in XLA so the grid axis stays parallel.
    loss = jnp.sum(packed[:, 2])
    return loss, center_of_mass, valid_mask


def _reference_forward(X):
    """Pure-JAX/XLA f32 reference (no Pallas) mirroring the PyTorch forward."""
    batch, channels, width = X.shape
    taps = _gaussian_taps()
    conv = jax.lax.conv_general_dilated(
        X.reshape(batch * channels, 1, width).astype(jnp.float32),
        taps.reshape(1, 1, KERNEL_WIDTH),
        window_strides=(1,),
        padding=[(PAD_LEFT, PAD_RIGHT)],
        dimension_numbers=("NCH", "OIH", "NCH"),
        precision=jax.lax.Precision.HIGHEST,
    ).reshape(batch, channels, width)
    com = jnp.argmax(conv, axis=-1).astype(jnp.int32)
    row_max = jnp.max(X, axis=-1)
    mask = row_max > 0.0
    lse = row_max + jnp.log(jnp.sum(jnp.exp(X - row_max[..., None]), axis=-1))
    tgt = jnp.take_along_axis(X, com[..., None], axis=-1)[..., 0]
    loss = jnp.sum(jnp.where(mask, lse - tgt, 0.0))
    return loss, com, mask


if __name__ == "__main__":
    batch = 2
    width = KERNEL_WIDTH  # 200-bin windows, matching the module's 200-tap Gaussian

    key = jax.random.PRNGKey(0)
    k_pos, k_amp, k_noise, k_drop, k_pred = jax.random.split(key, 5)

    # Spike-train-like activations: one dominant spike per (batch, filter) row plus a
    # little noise -- the kind of input this center-of-mass module is built for.
    pos = jax.random.randint(k_pos, (batch, N_FILTERS), 0, width)
    amp = jax.random.uniform(k_amp, (batch, N_FILTERS), minval=4.0, maxval=8.0)
    onehot = (jnp.arange(width)[None, None, :] == pos[..., None]).astype(jnp.float32)
    noise = 0.005 * jax.random.normal(k_noise, (batch, N_FILTERS, width), dtype=jnp.float32)
    X = amp[..., None] * onehot + noise
    # Push ~30% of the rows entirely below zero so the NotToSkip masking path is exercised.
    drop = jax.random.bernoulli(k_drop, 0.3, (batch, N_FILTERS))
    X = jnp.where(drop[..., None], X - 20.0, X).astype(jnp.float32)

    prediction = jax.random.normal(
        k_pred, (batch, N_FILTERS, width), dtype=jnp.float32
    )  # unused by the module's forward; kept to mirror the signature

    loss, center_of_mass, valid_mask = xent_forward(prediction, X)
    loss = jax.block_until_ready(loss)

    ref_loss, ref_com, ref_mask = _reference_forward(X)

    assert center_of_mass.shape == (batch, N_FILTERS)
    assert valid_mask.shape == (batch, N_FILTERS)
    # NotToSkip mask does not depend on the conv and must match exactly.
    assert bool(jnp.all(valid_mask == ref_mask))
    # centerOfMass must match the f32 reference on every row that feeds the loss
    # (valid rows).  All-negative masked rows have a numerically flat smoothed signal
    # (tie between the two edge bins) where the bf16 matmul may break the tie differently;
    # those entries never reach CrossEntropyLoss.
    assert bool(jnp.all(jnp.where(ref_mask, center_of_mass == ref_com, True)))
    assert jnp.allclose(loss, ref_loss, rtol=1e-4, atol=5e-2)

    # TODO(synk): PyTorch returns NotToSkip as a torch.where index tuple; its shape is
    # data-dependent, so recover it eagerly (outside jit) from the boolean mask instead.
    not_to_skip = jnp.nonzero(valid_mask)
    assert not_to_skip[0].shape[0] == int(valid_mask.sum())

    print("KERNEL_OK")
</pallas_src>

<mosaic_0001>
module attributes {stable_mosaic.version = 11 : i64} {
  func.func @_xent_kernel(%arg0: i32, %arg1: memref<400x200xf32, #tpu.memory_space<vmem>>, %arg2: memref<200x200xbf16, #tpu.memory_space<vmem>>, %arg3: memref<400x3xf32, #tpu.memory_space<vmem>>) attributes {dimension_semantics = [#tpu.dimension_semantics<parallel>], iteration_bounds = array<i64: 2>, scalar_prefetch = 0 : i64, scratch_operands = 0 : i64, tpu.core_type = #tpu.core_type<tc>, window_params = [{transform_indices = @transform_0, window_bounds = array<i64: 400, 200>}, {pipeline_mode = #tpu.pipeline_mode<synchronous>, transform_indices = @transform_1, window_bounds = array<i64: 200, 200>}, {transform_indices = @transform_2, window_bounds = array<i64: 400, 3>}]} {
    %c0 = arith.constant 0 : index
    %c0_0 = arith.constant 0 : index
    %0 = vector.load %arg1[%c0, %c0_0] : memref<400x200xf32, #tpu.memory_space<vmem>>, vector<400x200xf32>
    %1 = arith.truncf %0 : vector<400x200xf32> to vector<400x200xbf16>
    %c0_1 = arith.constant 0 : index
    %c0_2 = arith.constant 0 : index
    %2 = vector.load %arg2[%c0_1, %c0_2] : memref<200x200xbf16, #tpu.memory_space<vmem>>, vector<200x200xbf16>
    %cst = arith.constant dense<0.000000e+00> : vector<400x200xf32>
    %3 = tpu.matmul %1, %2, %cst {dimension_numbers = #tpu.dot_dimension_numbers<[1], [0], [0], [1], [0, 0, 1, 1], [], []>} : vector<400x200xbf16>, vector<200x200xbf16>, vector<400x200xf32> -> vector<400x200xf32>
    %4 = tpu.iota {dimensions = array<i32: 1>} : vector<400x200xi32>
    %cst_3 = arith.constant dense<0xFF800000> : vector<400xf32>
    %5 = vector.multi_reduction <maximumf>, %3, %cst_3 [1] : vector<400x200xf32> to vector<400xf32>
    %6 = vector.shape_cast %5 : vector<400xf32> to vector<400x1xf32>
    %7 = vector.broadcast %6 : vector<400x1xf32> to vector<400x200xf32>
    %8 = arith.cmpf oeq, %3, %7 : vector<400x200xf32>
    %c200_i32 = arith.constant 200 : i32
    %9 = vector.broadcast %c200_i32 : i32 to vector<400x200xi32>
    %10 = arith.select %8, %4, %9 : vector<400x200xi1>, vector<400x200xi32>
    %cst_4 = arith.constant dense<2147483647> : vector<400xi32>
    %11 = vector.multi_reduction <minsi>, %10, %cst_4 [1] : vector<400x200xi32> to vector<400xi32>
    %12 = vector.shape_cast %11 : vector<400xi32> to vector<400x1xi32>
    %cst_5 = arith.constant dense<0xFF800000> : vector<400xf32>
    %13 = vector.multi_reduction <maximumf>, %0, %cst_5 [1] : vector<400x200xf32> to vector<400xf32>
    %14 = vector.shape_cast %13 : vector<400xf32> to vector<400x1xf32>
    %cst_6 = arith.constant 0.000000e+00 : f32
    %15 = vector.broadcast %cst_6 : f32 to vector<400x1xf32>
    %16 = arith.cmpf ogt, %14, %15 : vector<400x1xf32>
    %17 = vector.broadcast %14 : vector<400x1xf32> to vector<400x200xf32>
    %18 = arith.subf %0, %17 : vector<400x200xf32>
    %19 = math.exp %18 : vector<400x200xf32>
    %cst_7 = arith.constant dense<0.000000e+00> : vector<400xf32>
    %20 = vector.multi_reduction <add>, %19, %cst_7 [1] : vector<400x200xf32> to vector<400xf32>
    %21 = vector.shape_cast %20 : vector<400xf32> to vector<400x1xf32>
    %22 = vector.broadcast %12 : vector<400x1xi32> to vector<400x200xi32>
    %23 = arith.cmpi eq, %4, %22 : vector<400x200xi32>
    %cst_8 = arith.constant 0.000000e+00 : f32
    %24 = vector.broadcast %cst_8 : f32 to vector<400x200xf32>
    %25 = arith.select %23, %18, %24 : vector<400x200xi1>, vector<400x200xf32>
    %cst_9 = arith.constant dense<0.000000e+00> : vector<400xf32>
    %26 = vector.multi_reduction <add>, %25, %cst_9 [1] : vector<400x200xf32> to vector<400xf32>
    %27 = vector.shape_cast %26 : vector<400xf32> to vector<400x1xf32>
    %28 = math.log %21 : vector<400x1xf32>
    %29 = arith.subf %28, %27 : vector<400x1xf32>
    %cst_10 = arith.constant 0.000000e+00 : f32
    %30 = vector.broadcast %cst_10 : f32 to vector<400x1xf32>
    %31 = arith.select %16, %29, %30 : vector<400x1xi1>, vector<400x1xf32>
    %32 = tpu.iota {dimensions = array<i32: 1>} : vector<400x3xi32>
    %c0_i32 = arith.constant 0 : i32
    %33 = vector.broadcast %c0_i32 : i32 to vector<400x3xi32>
    %34 = arith.cmpi eq, %32, %33 : vector<400x3xi32>
    %35 = arith.sitofp %12 : vector<400x1xi32> to vector<400x1xf32>
    %c1_i32 = arith.constant 1 : i32
    %36 = vector.broadcast %c1_i32 : i32 to vector<400x3xi32>
    %37 = arith.cmpi eq, %32, %36 : vector<400x3xi32>
    %38 = arith.extui %16 : vector<400x1xi1> to vector<400x1xi32>
    %39 = arith.sitofp %38 : vector<400x1xi32> to vector<400x1xf32>
    %40 = vector.shape_cast %39 : vector<400x1xf32> to vector<400x1xf32>
    %41 = vector.broadcast %40 : vector<400x1xf32> to vector<400x3xf32>
    %42 = vector.shape_cast %31 : vector<400x1xf32> to vector<400x1xf32>
    %43 = vector.broadcast %42 : vector<400x1xf32> to vector<400x3xf32>
    %44 = arith.select %37, %41, %43 : vector<400x3xi1>, vector<400x3xf32>
    %45 = vector.shape_cast %35 : vector<400x1xf32> to vector<400x1xf32>
    %46 = vector.broadcast %45 : vector<400x1xf32> to vector<400x3xf32>
    %47 = arith.select %34, %46, %44 : vector<400x3xi1>, vector<400x3xf32>
    %c0_11 = arith.constant 0 : index
    %c0_12 = arith.constant 0 : index
    %48 = vector.load %arg3[%c0_11, %c0_12] : memref<400x3xf32, #tpu.memory_space<vmem>>, vector<400x3xf32>
    tpu.vector_store %arg3[%c0_11, %c0_12], %47 {strides = array<i32>} : memref<400x3xf32, #tpu.memory_space<vmem>>, vector<400x3xf32>,
    return
  }
  func.func @transform_0(%arg0: i32) -> (i32, i32) {
    %c0_i32 = arith.constant 0 : i32
    %c0_i32_0 = arith.constant 0 : i32
    return %arg0, %c0_i32 : i32, i32
  }
  func.func @transform_1(%arg0: i32) -> (i32, i32) {
    %c0_i32 = arith.constant 0 : i32
    %c0_i32_0 = arith.constant 0 : i32
    %c0_i32_1 = arith.constant 0 : i32
    return %c0_i32, %c0_i32_0 : i32, i32
  }
  func.func @transform_2(%arg0: i32) -> (i32, i32) {
    %c0_i32 = arith.constant 0 : i32
    %c0_i32_0 = arith.constant 0 : i32
    return %arg0, %c0_i32 : i32, i32
  }
}

</mosaic_0001>

<bundles_post_ra>
// kernel: tpu_custom_call.1
= control target key start
LH: loop header
LB: loop body
LE: loop exit
PB: predicated region body
PF: predicated region fallthrough
CT: control target
= control target key end

     0   :  { %s4341_s9 = smov 0   ;;  %s7983_s0 = inlined_call_operand.vmem [shape: f32[800,200], index: 0, kind: input, shape index: {}]   ;;  %s7984_s1 = inlined_call_operand.vmem [shape: bf16[200,200], index: 1, kind: input, shape index: {}]   ;;  %s7985_s2 = inlined_call_operand.vmem [shape: f32[800,3], index: 2, kind: output, shape index: {}]  }
   0x1 LB: > { %s3779_s10 = sadd.s32 4294967295, %s4323_s9   ;;  %p3783_p0 = scmp.ge.s32.totalorder %s4323_s9, 1  ;;  %s4323_s9 = sphi %s4341_s9, %s12_s9  }
   0x2   : > { %p114_p1 = scmp.lt.s32.totalorder %s4323_s9, 3 }
   0x4   : > { %p115_p2 = pnand %p3783_p0, %p114_p1 }
   0x6   : > { %118 = sbr.rel (%p115_p2) target bundleno = 1042 (0x412), region = 28 }
   0xb   : > { %v3927_v0 = vld [vmem:[%s7984_s1 + $0x74] ss:$8 sps:$4 sm:$0xff]   ;;  %s137_s13 = smul.u32 50, %s3779_s10  ;;  %v3929_v1 = vld [vmem:[%s7984_s1 + $0x70] ss:$8 sps:$4 sm:$0xff]   ;;  %vm451_vm0 = vcmask 588800  }
   0xc   : > { %534 = vmatprep.subr.bf16.mxu0 %v3927_v0  ;;  %3892 = vmatprep.subr.bf16.mxu1 %v3927_v0  ;;  %v3930_v2 = vld [vmem:[%s7984_s1 + $0x64] ss:$8 sps:$4 sm:$0xff]   ;;  %v3932_v3 = vld [vmem:[%s7984_s1 + $0x60] ss:$8 sps:$4 sm:$0xff]   ;;  %v3933_v4 = vld [vmem:[%s7984_s1 + $0x54] ss:$8 sps:$4 sm:$0xff]  }
   0xd   : > { %p138_p3 = scmp.lt.s32.totalorder %s137_s13, 99  ;;  %535 = vmatpush1.bf16.msra.mxu0 %v3929_v1  ;;  %3905 = vmatpush1.bf16.msra.mxu1 %v3929_v1  ;;  %v3935_v5 = vld [vmem:[%s7984_s1 + $0x50] ss:$8 sps:$4 sm:$0xff]   ;;  %v3936_v6 = vld [vmem:[%s7984_s1 + $0x44] ss:$8 sps:$4 sm:$0xff]   ;;  %vm527_vm1 = vcmask 1043456  }
   0xe   : > { %536 = vmatprep.subr.bf16.mxu0 %v3930_v2  ;;  %3893 = vmatprep.subr.bf16.mxu1 %v3930_v2  ;;  %v3938_v7 = vld [vmem:[%s7984_s1 + $0x40] ss:$8 sps:$4 sm:$0xff]   ;;  %v3939_v8 = vld [vmem:[%s7984_s1 + $0x34] ss:$8 sps:$4 sm:$0xff]   ;;  %v3941_v11 = vld [vmem:[%s7984_s1 + $0x30] ss:$8 sps:$4 sm:$0xff]  }
   0xf   : > { %s9005_s13 = smov (!%p138_p3, %s137_s13), 99  ;;  %v3942_v12 = vld [vmem:[%s7984_s1 + $0x24] ss:$8 sps:$4 sm:$0xff]   ;;  %v3944_v22 = vld [vmem:[%s7984_s1 + $0x20] ss:$8 sps:$4 sm:$0xff]  }
  0x10   : > { %s3891_s24 = sshll.u32 %s9005_s13, 4  ;;  %v3945_v31 = vld [vmem:[%s7984_s1 + $0x14] ss:$8 sps:$4 sm:$0xff]   ;;  %v3947_v40 = vld [vmem:[%s7984_s1 + $0x10] ss:$8 sps:$4 sm:$0xff]   ;;  %v325_v47 = vld [vmem:[%s7984_s1 + $0xc0] sm:$0xff] }
  0x11   : > { %537 = vmatpush1.bf16.msra.mxu0 %v3932_v3  ;;  %3906 = vmatpush1.bf16.msra.mxu1 %v3932_v3  ;;  %s4376_s29 = scalar_lea.vmem %s7983_s0, %s3891_s24  ;;  %v3948_v45 = vld [vmem:[%s7984_s1 + $0x4] ss:$8 sps:$4 sm:$0xff]   ;;  %v3950_v52 = vld [vmem:[%s7984_s1] ss:$8 sps:$4 sm:$0xff]   ;;  %v3812_v56 = vcombine.high %v325_v47, %v325_v47  ;;  %v3811_v57 = vcombine.low %v325_v47, %v325_v47  ;;  %v3953_v3 = vld [vmem:[%s7984_s1 + $0xb4] ss:$8 sps:$4 sm:$0xff]  }
  0x12   : > { %538 = vmatprep.subr.bf16.mxu0 %v3933_v4  ;;  %3894 = vmatprep.subr.bf16.mxu1 %v3933_v4  ;;  %v4385_v9 = vld [vmem:[%s4376_s29] sm:$0xff]  ;;  %v4388_v10 = vld [vmem:[%s4376_s29 + $0x8] sm:$0xff]  ;;  %v4406_v17 = vld [vmem:[%s4376_s29 + $0x10] sm:$0xff] }
  0x13   : > { %8318 = vst [vmem:[#allocation2_spill] sm:$0xff] %v4385_v9  ;;  %8319 = vst [vmem:[#allocation3_spill] sm:$0xff] %v4388_v10  ;;  %v2070_v13 = vsel %vm451_vm0, %v4388_v10, -inf  ;;  %v4399_v14 = vld [vmem:[%s4376_s29 + $0x20] sm:$0xff]  ;;  %v4403_v16 = vld [vmem:[%s4376_s29 + $0x28] sm:$0xff]  ;;  %v529_v2 = vsel %vm527_vm1, %v3811_v57, 0 }
  0x14   : > { %8320 = vst [vmem:[#allocation4_spill] sm:$0xff] %v4399_v14  ;;  %v2071_v15 = vmax.f32 %v4385_v9, %v2070_v13  ;;  %8321 = vst [vmem:[#allocation5_spill] sm:$0xff] %v4403_v16  ;;  %v4409_v18 = vld [vmem:[%s4376_s29 + $0x18] sm:$0xff]  ;;  %v2078_v19 = vsel %vm451_vm0, %v4403_v16, -inf  ;;  %v4423_v25 = vld [vmem:[%s4376_s29 + $0x40] sm:$0xff] }
  0x15   : > { %539 = vmatpush1.bf16.msra.mxu0 %v3935_v5  ;;  %3907 = vmatpush1.bf16.msra.mxu1 %v3935_v5  ;;  %8322 = vst [vmem:[#allocation6_spill] sm:$0xff] %v4406_v17  ;;  %8323 = vst [vmem:[#allocation7_spill] sm:$0xff] %v4409_v18  ;;  %v2074_v20 = vsel %vm451_vm0, %v4409_v18, -inf  ;;  %v252_v21 = vpack.c.bf16 %v4409_v18, %v4388_v10  ;;  %v2079_v23 = vmax.f32 %v4399_v14, %v2078_v19  ;;  %v4426_v26 = vld [vmem:[%s4376_s29 + $0x48] sm:$0xff]  ;;  %v4434_v29 = vld [vmem:[%s4376_s29 + $0x1b8] sm:$0xff] }
  0x16   : > { %540 = vmatprep.subr.bf16.mxu0 %v3936_v6  ;;  %3895 = vmatprep.subr.bf16.mxu1 %v3936_v6  ;;  %v2075_v24 = vmax.f32 %v4406_v17, %v2074_v20  ;;  %8324 = vst [vmem:[#allocation8_spill] sm:$0xff] %v4423_v25  ;;  %8325 = vst [vmem:[#allocation9_spill] sm:$0xff] %v4426_v26  ;;  %v2086_v27 = vsel %vm451_vm0, %v4426_v26, -inf  ;;  %v4431_v28 = vld [vmem:[%s4376_s29 + $0x1a8] sm:$0xff]  ;;  %v4437_v30 = vld [vmem:[%s4376_s29 + $0x30] sm:$0xff] }
  0x17   : > { %2072 = vmax.xlane.f32.xlu0 %v2071_v15  ;;  %8326 = vst [vmem:[#allocation10_spill] sm:$0xff] %v4437_v30  ;;  %v278_v32 = vpack.c.bf16 %v4434_v29, %v4431_v28  ;;  %v4445_v33 = vld [vmem:[%s4376_s29 + $0x38] sm:$0xff]  ;;  %3814 = vmatprep.mubr.msk.bf16.mxu0 %vm451_vm0, %v252_v21  ;;  %v4451_v35 = vld [vmem:[%s4376_s29 + $0x68] sm:$0xff]  ;;  %v2087_v36 = vmax.f32 %v4423_v25, %v2086_v27  ;;  %v4457_v38 = vld [vmem:[%s4376_s29 + $0x50] sm:$0xff] }
  0x18   : > { %8327 = vst [vmem:[#allocation11_spill] sm:$0xff] %v4445_v33  ;;  %2076 = vmax.xlane.f32.xlu1 %v2075_v24  ;;  %v2082_v34 = vsel %vm451_vm0, %v4445_v33, -inf  ;;  %8328 = vst [vmem:[#allocation12_spill] sm:$0xff] %v4451_v35  ;;  %v4460_v39 = vld [vmem:[%s4376_s29 + $0x58] sm:$0xff]  ;;  %v4466_v41 = vld [vmem:[%s4376_s29 + $0x60] sm:$0xff]  ;;  %v2094_v42 = vsel %vm451_vm0, %v4451_v35, -inf }
  0x19   : > { %541 = vmatpush1.bf16.msra.mxu0 %v3938_v7  ;;  %3908 = vmatpush1.bf16.msra.mxu1 %v3938_v7  ;;  %v2083_v37 = vmax.f32 %v4437_v30, %v2082_v34  ;;  %8329 = vst [vmem:[#allocation13_spill] sm:$0xff] %v4457_v38  ;;  %8330 = vst [vmem:[#allocation14_spill] sm:$0xff] %v4460_v39  ;;  %v2090_v43 = vsel %vm451_vm0, %v4460_v39, -inf  ;;  %v4473_v44 = vld [vmem:[%s4376_s29 + $0x78] sm:$0xff]  ;;  %v4479_v46 = vld [vmem:[%s4376_s29 + $0x88] sm:$0xff]  ;;  %v2095_v49 = vmax.f32 %v4466_v41, %v2094_v42 }
  0x1a   : > { %542 = vmatprep.subr.bf16.mxu0 %v3939_v8  ;;  %3896 = vmatprep.subr.bf16.mxu1 %v3939_v8  ;;  %8331 = vst [vmem:[#allocation15_spill] sm:$0xff] %v4473_v44  ;;  %v2091_v48 = vmax.f32 %v4457_v38, %v2090_v43  ;;  %v4487_v50 = vld [vmem:[%s4376_s29 + $0x70] sm:$0xff]  ;;  %v2098_v51 = vsel %vm451_vm0, %v4473_v44, -inf  ;;  %v4495_v53 = vld [vmem:[%s4376_s29 + $0x80] sm:$0xff]  ;;  %v2102_v54 = vsel %vm451_vm0, %v4479_v46, -inf  ;;  %v4500_v55 = vld [vmem:[%s4376_s29 + $0x98] sm:$0xff] }
  0x1b   : > { %2080 = vmax.xlane.f32.xlu0 %v2079_v23  ;;  %3827 = vmatprep.mubr.msk.bf16.mxu1 %vm451_vm0, %v278_v32  ;;  %v4503_v58 = vld [vmem:[%s4376_s29 + $0xa8] sm:$0xff]  ;;  %v2099_v59 = vmax.f32 %v4487_v50, %v2098_v51  ;;  %v2103_v60 = vmax.f32 %v4495_v53, %v2102_v54  ;;  %v4508_v61 = vld [vmem:[%s4376_s29 + $0x90] sm:$0xff]  ;;  %v2106_v62 = vsel %vm451_vm0, %v4500_v55, -inf  ;;  %v4513_v63 = vld [vmem:[%s4376_s29 + $0xa0] sm:$0xff] }
  0x1c   : > { %2084 = vmax.xlane.f32.xlu1 %v2083_v37  ;;  %v2110_v0 = vsel %vm451_vm0, %v4503_v58, -inf  ;;  %v4518_v1 = vld [vmem:[%s4376_s29 + $0xb8] sm:$0xff]  ;;  %v4524_v4 = vld [vmem:[%s4376_s29 + $0xc8] sm:$0xff]  ;;  %v2107_v5 = vmax.f32 %v4508_v61, %v2106_v62  ;;  %v4529_v7 = vld [vmem:[%s4376_s29 + $0xb0] sm:$0xff] }
  0x1d   : > { %543 = vmatpush1.bf16.msra.mxu0 %v3941_v11  ;;  %3909 = vmatpush1.bf16.msra.mxu1 %v3941_v11  ;;  %v2111_v6 = vmax.f32 %v4513_v63, %v2110_v0  ;;  %v2114_v8 = vsel %vm451_vm0, %v4518_v1, -inf  ;;  %v3955_v11 = vld [vmem:[%s7984_s1 + $0xb0] ss:$8 sps:$4 sm:$0xff]   ;;  %v2118_v13 = vsel %vm451_vm0, %v4524_v4, -inf  ;;  %v3956_v19 = vld [vmem:[%s7984_s1 + $0xa4] ss:$8 sps:$4 sm:$0xff]  }
  0x1e   : > { %544 = vmatprep.subr.bf16.mxu0 %v3942_v12  ;;  %3897 = vmatprep.subr.bf16.mxu1 %v3942_v12  ;;  %v4537_v12 = vld [vmem:[%s4376_s29 + $0xc0] sm:$0xff]  ;;  %v4542_v15 = vld [vmem:[%s4376_s29 + $0xd8] sm:$0xff]  ;;  %v4548_v20 = vld [vmem:[%s4376_s29 + $0xe8] sm:$0xff]  ;;  %v2115_v21 = vmax.f32 %v4529_v7, %v2114_v8 }
  0x1f   : > { %2088 = vmax.xlane.f32.xlu0 %v2087_v36  ;;  %v4553_v23 = vld [vmem:[%s4376_s29 + $0xd0] sm:$0xff]  ;;  %v2122_v24 = vsel %vm451_vm0, %v4542_v15, -inf  ;;  %v3958_v27 = vld [vmem:[%s7984_s1 + $0xa0] ss:$8 sps:$4 sm:$0xff]   ;;  %v2126_v32 = vsel %vm451_vm0, %v4548_v20, -inf  ;;  %v4566_v34 = vld [vmem:[%s4376_s29 + $0xf8] sm:$0xff] }
  0x20   : > { %2092 = vmax.xlane.f32.xlu1 %v2091_v48  ;;  %v3959_v36 = vld [vmem:[%s7984_s1 + $0x94] ss:$8 sps:$4 sm:$0xff]   ;;  %v4572_v37 = vld [vmem:[%s4376_s29 + $0x108] sm:$0xff]  ;;  %v3961_v47 = vld [vmem:[%s7984_s1 + $0x90] ss:$8 sps:$4 sm:$0xff]  }
  0x21   : > { %545 = vmatpush1.bf16.msra.mxu0 %v3944_v22  ;;  %3910 = vmatpush1.bf16.msra.mxu1 %v3944_v22  ;;  %v2119_v22 = vmax.f32 %v4537_v12, %v2118_v13  ;;  %v4577_v43 = vld [vmem:[%s4376_s29 + $0xf0] sm:$0xff]  ;;  %v4585_v48 = vld [vmem:[%s4376_s29 + $0x100] sm:$0xff]  ;;  %v4590_v51 = vld [vmem:[%s4376_s29 + $0x118] sm:$0xff] }
  0x22   : > { %546 = vmatprep.subr.bf16.mxu0 %v3945_v31  ;;  %3898 = vmatprep.subr.bf16.mxu1 %v3945_v31  ;;  %v4561_v31 = vld [vmem:[%s4376_s29 + $0xe0] sm:$0xff]  ;;  %v2138_v62 = vsel %vm451_vm0, %v4590_v51, -inf  ;;  %v4688_v18 = vld [vmem:[%s4376_s29 + $0x170] sm:$0xff] }
  0x23   : > { %2096 = vmax.xlane.f32.xlu0 %v2095_v49  ;;  %v2127_v42 = vmax.f32 %v4561_v31, %v2126_v32  ;;  %v2134_v49 = vsel %vm451_vm0, %v4572_v37, -inf  ;;  %v4609_v0 = vld [vmem:[%s4376_s29 + $0x1a0] sm:$0xff]  ;;  %v254_v32 = vpack.c.bf16 %v4445_v33, %v4403_v16  ;;  %v253_v33 = vpack.c.bf16 %v4437_v30, %v4399_v14  ;;  %8332 = vst [vmem:[#allocation16_spill] sm:$0xff] %v4688_v18 }
  0x24   : > { %2100 = vmax.xlane.f32.xlu1 %v2099_v59  ;;  %v2135_v57 = vmax.f32 %v4585_v48, %v2134_v49  ;;  %v4601_v59 = vld [vmem:[%s4376_s29 + $0x128] sm:$0xff]  ;;  %v4624_v8 = vld [vmem:[%s4376_s29 + $0x120] sm:$0xff] }
  0x25   : > { %547 = vmatpush1.bf16.msra.mxu0 %v3947_v40  ;;  %3911 = vmatpush1.bf16.msra.mxu1 %v3947_v40  ;;  %v2123_v40 = vmax.f32 %v4553_v23, %v2122_v24  ;;  %v4637_v24 = vld [vmem:[%s4376_s29 + $0x130] sm:$0xff]  ;;  %v4703_v10 = vld [vmem:[%s4376_s29 + $0x180] sm:$0xff] }
  0x26   : > { %548 = vmatprep.subr.bf16.mxu0 %v3948_v45  ;;  %3899 = vmatprep.subr.bf16.mxu1 %v3948_v45  ;;  %v2130_v45 = vsel %vm451_vm0, %v4566_v34, -inf }
  0x27   : > { %2104 = vmax.xlane.f32.xlu0 %v2103_v60  ;;  %v2131_v54 = vmax.f32 %v4577_v43, %v2130_v45  ;;  %v4604_v60 = vld [vmem:[%s4376_s29 + $0x110] sm:$0xff]  ;;  %v4650_v45 = vld [vmem:[%s4376_s29 + $0x140] sm:$0xff] }
  0x28   : > { %2108 = vmax.xlane.f32.xlu1 %v2107_v5  ;;  %v4618_v5 = vld [vmem:[%s4376_s29 + $0x1c8] sm:$0xff]  ;;  %v2139_v13 = vmax.f32 %v4604_v60, %v2138_v62  ;;  %v4669_v62 = vld [vmem:[%s4376_s29 + $0x1d0] sm:$0xff] }
  0x29   : > { %549 = vmatpush1.bf16.msra.mxu0 %v3950_v52  ;;  %3912 = vmatpush1.bf16.msra.mxu1 %v3950_v52  ;;  %v3962_v52 = vld [vmem:[%s7984_s1 + $0x84] ss:$8 sps:$4 sm:$0xff]  }
  0x2a   : > { %3813 = vmatprep.subr.msk.bf16.mxu0 %vm527_vm1, %v3812_v56  ;;  %3900 = vmatprep.subr.msk.bf16.mxu1 %vm527_vm1, %v3812_v56  ;;  %v3964_v56 = vld [vmem:[%s7984_s1 + $0x80] ss:$8 sps:$4 sm:$0xff]  }
  0x2b   : > { %2112 = vmax.xlane.f32.xlu0 %v2111_v6  ;;  %v4621_v6 = vld [vmem:[%s4376_s29 + $0x1d8] sm:$0xff] }
  0x2c   : > { %2116 = vmax.xlane.f32.xlu1 %v2115_v21 }
  0x2d   : > { %557 = vmatpush2.bf16.msra.mxu0 %v529_v2  ;;  %3913 = vmatpush2.bf16.msra.mxu1 %v529_v2  ;;  %v4612_v2 = vld [vmem:[%s4376_s29 + $0x1b0] sm:$0xff] }
  0x2e   : > { %558 = vmatprep.subr.bf16.mxu0 %v3953_v3  ;;  %3901 = vmatprep.subr.bf16.mxu1 %v3953_v3  ;;  %v4615_v3 = vld [vmem:[%s4376_s29 + $0x138] sm:$0xff]  ;;  %v277_v21 = vpack.c.bf16 %v4612_v2, %v4609_v0 }
  0x2f   : > { %2120 = vmax.xlane.f32.xlu0 %v2119_v22  ;;  %v4634_v22 = vld [vmem:[%s4376_s29 + $0x148] sm:$0xff] }
  0x30   : > { %2124 = vmax.xlane.f32.xlu1 %v2123_v40  ;;  %v4646_v40 = vld [vmem:[%s4376_s29 + $0x158] sm:$0xff] }
  0x31   : > { %559 = vmatpush2.bf16.msra.mxu0 %v3955_v11  ;;  %3914 = vmatpush2.bf16.msra.mxu1 %v3955_v11  ;;  %v2142_v11 = vsel %vm451_vm0, %v4601_v59, -inf }
  0x32   : > { %560 = vmatprep.subr.bf16.mxu0 %v3956_v19  ;;  %3902 = vmatprep.subr.bf16.mxu1 %v3956_v19  ;;  %v251_v19 = vpack.c.bf16 %v4406_v17, %v4385_v9  ;;  %v4700_v17 = vld [vmem:[%s4376_s29 + $0x198] sm:$0xff] }
  0x33   : > { %2128 = vmax.xlane.f32.xlu0 %v2127_v42  ;;  %v2143_v42 = vmax.f32 %v4624_v8, %v2142_v11  ;;  %v4672_v11 = vld [vmem:[%s4376_s29 + $0x178] sm:$0xff] }
  0x34   : > { %2132 = vmax.xlane.f32.xlu1 %v2131_v54  ;;  %v4659_v54 = vld [vmem:[%s4376_s29 + $0x150] sm:$0xff] }
  0x35   : > { %561 = vmatpush2.bf16.msra.mxu0 %v3958_v27  ;;  %3915 = vmatpush2.bf16.msra.mxu1 %v3958_v27  ;;  %v2146_v27 = vsel %vm451_vm0, %v4615_v3, -inf }
  0x36   : > { %562 = vmatprep.subr.bf16.mxu0 %v3959_v36  ;;  %3903 = vmatprep.subr.bf16.mxu1 %v3959_v36  ;;  %v280_v36 = vpack.c.bf16 %v4621_v6, %v4618_v5  ;;  %v2147_v49 = vmax.f32 %v4637_v24, %v2146_v27  ;;  %v4678_v27 = vld [vmem:[%s4376_s29 + $0x160] sm:$0xff] }
  0x37   : > { %2136 = vmax.xlane.f32.xlu0 %v2135_v57  ;;  %v4666_v57 = vld [vmem:[%s4376_s29 + $0x1c0] sm:$0xff] }
  0x38   : > { %2140 = vmax.xlane.f32.xlu1 %v2139_v13  ;;  %v212_v13 = vld [vmem:[%s4376_s29 + $0x1e8] sm:$0xff]  ;;  %v279_v16 = vpack.c.bf16 %v4669_v62, %v4666_v57 }
  0x39   : > { %563 = vmatpush2.bf16.msra.mxu0 %v3961_v47  ;;  %3916 = vmatpush2.bf16.msra.mxu1 %v3961_v47  ;;  %v2150_v47 = vsel %vm451_vm0, %v4634_v22, -inf }
  0x3a   : > { %564 = vmatprep.subr.bf16.mxu0 %v3962_v52  ;;  %3904 = vmatprep.subr.bf16.mxu1 %v3962_v52  ;;  %v4656_v52 = vld [vmem:[%s4376_s29 + $0x168] sm:$0xff] }
  0x3b   : > { %2144 = vmax.xlane.f32.xlu0 %v2143_v42  ;;  %v2162_v42 = vsel %vm451_vm0, %v4672_v11, -inf }
  0x3c   : > { %2148 = vmax.xlane.f32.xlu1 %v2147_v49  ;;  %v256_v49 = vpack.c.bf16 %v4460_v39, %v4426_v26  ;;  %v2163_v14 = vmax.f32 %v4688_v18, %v2162_v42  ;;  %v2170_v39 = vsel %vm451_vm0, %v4700_v17, -inf  ;;  %v218_v42 = vld [vmem:[%s4376_s29 + $0x218] sm:$0xff]  ;;  %v4716_v26 = vld [vmem:[%s4376_s29 + $0x190] sm:$0xff] }
  0x3d   : > { %565 = vmatpush2.bf16.msra.mxu0 %v3964_v56  ;;  %3917 = vmatpush2.bf16.msra.mxu1 %v3964_v56  ;;  %v2154_v56 = vsel %vm451_vm0, %v4646_v40, -inf }
  0x40   : > { %567 = vmatmul.mubr.bf16.vlgmr.msra.gmra.mxu0 %v251_v19  ;;  %697 = vmatmul.mubr.bf16.vlgmr.msra.gmra.mxu1 %v277_v21  ;;  %v214_v19 = vld [vmem:[%s4376_s29 + $0x1f8] sm:$0xff]  ;;  %v2151_v21 = vmax.f32 %v4650_v45, %v2150_v47  ;;  %v4693_v47 = vld [vmem:[%s4376_s29 + $0x188] sm:$0xff] }
  0x41   : > { %3815 = vmatprep.mubr.msk.bf16.mxu0 %vm451_vm0, %v254_v32  ;;  %3828 = vmatprep.mubr.msk.bf16.mxu1 %vm451_vm0, %v280_v36  ;;  %v2158_v32 = vsel %vm451_vm0, %v4656_v52, -inf  ;;  %v2155_v36 = vmax.f32 %v4659_v54, %v2154_v56  ;;  %v282_v56 = vpack.c.bf16 %v214_v19, %v212_v13  ;;  %v2166_v9 = vsel %vm451_vm0, %v4693_v47, -inf }
  0x42   : > { %2152 = vmax.xlane.f32.xlu0 %v2151_v21  ;;  %v2159_v30 = vmax.f32 %v4678_v27, %v2158_v32  ;;  %v211_v21 = vld [vmem:[%s4376_s29 + $0x1e0] sm:$0xff]  ;;  %v213_v32 = vld [vmem:[%s4376_s29 + $0x1f0] sm:$0xff]  ;;  %v2167_v18 = vmax.f32 %v4703_v10, %v2166_v9  ;;  %v258_v9 = vpack.c.bf16 %v4473_v44, %v4451_v35  ;;  %v222_v35 = vld [vmem:[%s4376_s29 + $0x238] sm:$0xff] }
  0x43   : > { %2156 = vmax.xlane.f32.xlu1 %v2155_v36  ;;  %v216_v36 = vld [vmem:[%s4376_s29 + $0x208] sm:$0xff]  ;;  %v217_v44 = vld [vmem:[%s4376_s29 + $0x210] sm:$0xff] }
  0x46   : > { %2160 = vmax.xlane.f32.xlu0 %v2159_v30  ;;  %v2178_v30 = vsel %vm451_vm0, %v4434_v29, -inf  ;;  %v215_v29 = vld [vmem:[%s4376_s29 + $0x200] sm:$0xff] }
  0x47   : > { %2164 = vmax.xlane.f32.xlu1 %v2163_v14  ;;  %v284_v14 = vpack.c.bf16 %v218_v42, %v216_v36 }
  0x48   : > { %577 = vmatmul.mubr.bf16.gmra.mxu0 %v253_v33  ;;  %707 = vmatmul.mubr.bf16.gmra.mxu1 %v279_v16  ;;  %v2174_v16 = vsel %vm451_vm0, %v4431_v28, -inf  ;;  %v2171_v33 = vmax.f32 %v4716_v26, %v2170_v39  ;;  %v2182_v39 = vsel %vm451_vm0, %v4618_v5, -inf  ;;  %v2190_v5 = vsel %vm451_vm0, %v212_v13, -inf  ;;  %v219_v13 = vld [vmem:[%s4376_s29 + $0x220] sm:$0xff] }
  0x49   : > { %3816 = vmatprep.mubr.msk.bf16.mxu0 %vm451_vm0, %v256_v49  ;;  %3829 = vmatprep.mubr.msk.bf16.mxu1 %vm451_vm0, %v282_v56  ;;  %v255_v49 = vpack.c.bf16 %v4457_v38, %v4423_v25  ;;  %v281_v56 = vpack.c.bf16 %v213_v32, %v211_v21  ;;  %v2175_v28 = vmax.f32 %v4609_v0, %v2174_v16  ;;  %v2186_v25 = vsel %vm451_vm0, %v4621_v6, -inf }
  0x4a   : > { %2168 = vmax.xlane.f32.xlu0 %v2167_v18  ;;  %v2179_v38 = vmax.f32 %v4612_v2, %v2178_v30  ;;  %v220_v18 = vld [vmem:[%s4376_s29 + $0x228] sm:$0xff]  ;;  %v2183_v0 = vmax.f32 %v4666_v57, %v2182_v39  ;;  %v2187_v2 = vmax.f32 %v4669_v62, %v2186_v25  ;;  %v257_v6 = vpack.c.bf16 %v4487_v50, %v4466_v41 }
  0x4b   : > { %2172 = vmax.xlane.f32.xlu1 %v2171_v33  ;;  %v283_v16 = vpack.c.bf16 %v217_v44, %v215_v29  ;;  %v2194_v33 = vsel %vm451_vm0, %v214_v19, -inf  ;;  %v2198_v57 = vsel %vm451_vm0, %v216_v36, -inf  ;;  %v2202_v62 = vsel %vm451_vm0, %v218_v42, -inf  ;;  %v221_v19 = vld [vmem:[%s4376_s29 + $0x230] sm:$0xff]  ;;  %v224_v30 = vld [vmem:[%s4376_s29 + $0x248] sm:$0xff] }
  0x4c   : > { %v2195_v25 = vmax.f32 %v213_v32, %v2194_v33  ;;  %v259_v32 = vpack.c.bf16 %v4508_v61, %v4495_v53  ;;  %v285_v36 = vpack.c.bf16 %v221_v19, %v219_v13  ;;  %v2210_v42 = vsel %vm451_vm0, %v222_v35, -inf }
  0x4d   : > { %v262_v39 = vpack.c.bf16 %v4518_v1, %v4503_v58 }
  0x4e   : > { %2176 = vmax.xlane.f32.xlu0 %v2175_v28  ;;  %v2203_v28 = vmax.f32 %v217_v44, %v2202_v62  ;;  %v2211_v44 = vmax.f32 %v221_v19, %v2210_v42  ;;  %v264_v62 = vpack.c.bf16 %v4542_v15, %v4524_v4  ;;  %v227_v19 = vld [vmem:[%s4376_s29 + $0x260] sm:$0xff] }
  0x4f   : > { %2180 = vmax.xlane.f32.xlu1 %v2179_v38  ;;  %v2191_v38 = vmax.f32 %v211_v21, %v2190_v5  ;;  %v2206_v21 = vsel %vm451_vm0, %v220_v18, -inf  ;;  %v231_v42 = vld [vmem:[%s4376_s29 + $0x280] sm:$0xff] }
  0x50   : > { %587 = vmatmul.mubr.bf16.gmra.mxu0 %v255_v49  ;;  %717 = vmatmul.mubr.bf16.gmra.mxu1 %v281_v56  ;;  %v260_v49 = vpack.c.bf16 %v4500_v55, %v4479_v46  ;;  %v286_v56 = vpack.c.bf16 %v222_v35, %v220_v18  ;;  %v2214_v18 = vsel %vm451_vm0, %v224_v30, -inf  ;;  %v223_v35 = vld [vmem:[%s4376_s29 + $0x240] sm:$0xff] }
  0x51   : > { %3817 = vmatprep.mubr.msk.bf16.mxu0 %vm451_vm0, %v258_v9  ;;  %3830 = vmatprep.mubr.msk.bf16.mxu1 %vm451_vm0, %v284_v14  ;;  %v226_v9 = vld [vmem:[%s4376_s29 + $0x258] sm:$0xff]  ;;  %v2199_v14 = vmax.f32 %v215_v29, %v2198_v57  ;;  %v2207_v29 = vmax.f32 %v219_v13, %v2206_v21  ;;  %v2215_v33 = vmax.f32 %v223_v35, %v2214_v18 }
  0x52   : > { %2184 = vmax.xlane.f32.xlu0 %v2183_v0  ;;  %v288_v0 = vpack.c.bf16 %v226_v9, %v224_v30  ;;  %v2218_v5 = vsel %vm451_vm0, %v226_v9, -inf  ;;  %v229_v30 = vld [vmem:[%s4376_s29 + $0x270] sm:$0xff]  ;;  %v232_v9 = vld [vmem:[%s4376_s29 + $0x288] sm:$0xff]  ;;  %v234_v21 = vld [vmem:[%s4376_s29 + $0x298] sm:$0xff] }
  0x53   : > { %2188 = vmax.xlane.f32.xlu1 %v2187_v2  ;;  %v225_v2 = vld [vmem:[%s4376_s29 + $0x250] sm:$0xff]  ;;  %v238_v18 = vld [vmem:[%s4376_s29 + $0x2b8] sm:$0xff] }
  0x54   : > { %v287_v57 = vpack.c.bf16 %v225_v2, %v223_v35  ;;  %v263_v35 = vpack.c.bf16 %v4553_v23, %v4537_v12 }
  0x56   : > { %2192 = vmax.xlane.f32.xlu0 %v2191_v38  ;;  %v261_v38 = vpack.c.bf16 %v4529_v7, %v4513_v63 }
  0x57   : > { %2196 = vmax.xlane.f32.xlu1 %v2195_v25 }
  0x58   : > { %597 = vmatmul.mubr.bf16.gmra.mxu0 %v257_v6  ;;  %727 = vmatmul.mubr.bf16.gmra.mxu1 %v283_v16  ;;  %v228_v6 = vld [vmem:[%s4376_s29 + $0x268] sm:$0xff]  ;;  %v230_v16 = vld [vmem:[%s4376_s29 + $0x278] sm:$0xff] }
  0x59   : > { %3818 = vmatprep.mubr.msk.bf16.mxu0 %vm451_vm0, %v260_v49  ;;  %3831 = vmatprep.mubr.msk.bf16.mxu1 %vm451_vm0, %v286_v56  ;;  %v2222_v49 = vsel %vm451_vm0, %v228_v6, -inf  ;;  %v2219_v56 = vmax.f32 %v225_v2, %v2218_v5  ;;  %v2226_v25 = vsel %vm451_vm0, %v230_v16, -inf  ;;  %v290_v13 = vpack.c.bf16 %v230_v16, %v228_v6 }
  0x5a   : > { %2200 = vmax.xlane.f32.xlu0 %v2199_v14  ;;  %v2223_v14 = vmax.f32 %v227_v19, %v2222_v49  ;;  %v289_v2 = vpack.c.bf16 %v229_v30, %v227_v19  ;;  %v2242_v6 = vsel %vm451_vm0, %v238_v18, -inf  ;;  %v266_v16 = vpack.c.bf16 %v4566_v34, %v4548_v20  ;;  %v235_v49 = vld [vmem:[%s4376_s29 + $0x2a0] sm:$0xff] }
  0x5b   : > { %2204 = vmax.xlane.f32.xlu1 %v2203_v28  ;;  %v2230_v28 = vsel %vm451_vm0, %v232_v9, -inf }
  0x5e   : > { %2208 = vmax.xlane.f32.xlu0 %v2207_v29  ;;  %v2231_v29 = vmax.f32 %v231_v42, %v2230_v28  ;;  %v246_v28 = vld [vmem:[%s4376_s29 + $0x2f8] sm:$0xff] }
  0x5f   : > { %2212 = vmax.xlane.f32.xlu1 %v2211_v44 }
  0x60   : > { %607 = vmatmul.mubr.bf16.gmra.mxu0 %v259_v32  ;;  %737 = vmatmul.mubr.bf16.gmra.mxu1 %v285_v36  ;;  %v2227_v32 = vmax.f32 %v229_v30, %v2226_v25  ;;  %v2234_v36 = vsel %vm451_vm0, %v234_v21, -inf  ;;  %v242_v25 = vld [vmem:[%s4376_s29 + $0x2d8] sm:$0xff]  ;;  %v239_v30 = vld [vmem:[%s4376_s29 + $0x2c0] sm:$0xff] }
  0x61   : > { %3819 = vmatprep.mubr.msk.bf16.mxu0 %vm451_vm0, %v262_v39  ;;  %3832 = vmatprep.mubr.msk.bf16.mxu1 %vm451_vm0, %v288_v0  ;;  %v233_v39 = vld [vmem:[%s4376_s29 + $0x290] sm:$0xff]  ;;  %v236_v0 = vld [vmem:[%s4376_s29 + $0x2a8] sm:$0xff]  ;;  %v2250_v19 = vsel %vm451_vm0, %v242_v25, -inf }
  0x62   : > { %2216 = vmax.xlane.f32.xlu0 %v2215_v33  ;;  %v2238_v44 = vsel %vm451_vm0, %v236_v0, -inf  ;;  %v2235_v5 = vmax.f32 %v233_v39, %v2234_v36  ;;  %v292_v33 = vpack.c.bf16 %v234_v21, %v232_v9  ;;  %v241_v9 = vld [vmem:[%s4376_s29 + $0x2d0] sm:$0xff] }
  0x63   : > { %2220 = vmax.xlane.f32.xlu1 %v2219_v56  ;;  %v237_v56 = vld [vmem:[%s4376_s29 + $0x2b0] sm:$0xff]  ;;  %v2251_v36 = vmax.f32 %v241_v9, %v2250_v19 }
  0x66   : > { %2224 = vmax.xlane.f32.xlu0 %v2223_v14  ;;  %v244_v14 = vld [vmem:[%s4376_s29 + $0x2e8] sm:$0xff] }
  0x67   : > { %2228 = vmax.xlane.f32.xlu1 %v2227_v32  ;;  %v2254_v32 = vsel %vm451_vm0, %v244_v14, -inf }
  0x68   : > { %617 = vmatmul.mubr.bf16.gmra.mxu0 %v261_v38  ;;  %747 = vmatmul.mubr.bf16.gmra.mxu1 %v287_v57  ;;  %v240_v38 = vld [vmem:[%s4376_s29 + $0x2c8] sm:$0xff]  ;;  %v2239_v57 = vmax.f32 %v235_v49, %v2238_v44  ;;  %v291_v44 = vpack.c.bf16 %v233_v39, %v231_v42  ;;  %v247_v39 = vld [vmem:[%s4376_s29 + $0x300] sm:$0xff] }
  0x69   : > { %3820 = vmatprep.mubr.msk.bf16.mxu0 %vm451_vm0, %v264_v62  ;;  %3833 = vmatprep.mubr.msk.bf16.mxu1 %vm451_vm0, %v290_v13  ;;  %v2246_v62 = vsel %vm451_vm0, %v240_v38, -inf  ;;  %v2243_v13 = vmax.f32 %v237_v56, %v2242_v6  ;;  %v243_v6 = vld [vmem:[%s4376_s29 + $0x2e0] sm:$0xff] }
  0x6a   : > { %2232 = vmax.xlane.f32.xlu0 %v2231_v29  ;;  %v2247_v21 = vmax.f32 %v239_v30, %v2246_v62  ;;  %v265_v29 = vpack.c.bf16 %v4577_v43, %v4561_v31  ;;  %v250_v62 = vld [vmem:[%s4376_s29 + $0x318] sm:$0xff] }
  0x6b   : > { %2236 = vmax.xlane.f32.xlu1 %v2235_v5  ;;  %v2258_v5 = vsel %vm451_vm0, %v246_v28, -inf  ;;  %v2266_v42 = vsel %vm451_vm0, %v250_v62, -inf }
  0x6e   : > { %2240 = vmax.xlane.f32.xlu0 %v2239_v57  ;;  %v2255_v57 = vmax.f32 %v243_v6, %v2254_v32  ;;  %v267_v32 = vpack.c.bf16 %v4604_v60, %v4585_v48 }
  0x6f   : > { %2244 = vmax.xlane.f32.xlu1 %v2243_v13 }
  0x70   : > { %627 = vmatmul.mubr.bf16.gmra.mxu0 %v263_v35  ;;  %757 = vmatmul.mubr.bf16.gmra.mxu1 %v289_v2  ;;  %v268_v35 = vpack.c.bf16 %v4590_v51, %v4572_v37  ;;  %v294_v2 = vpack.c.bf16 %v238_v18, %v236_v0  ;;  %v249_v0 = vld [vmem:[%s4376_s29 + $0x310] sm:$0xff] }
  0x71   : > { %3821 = vmatprep.mubr.msk.bf16.mxu0 %vm451_vm0, %v266_v16  ;;  %3834 = vmatprep.mubr.msk.bf16.mxu1 %vm451_vm0, %v292_v33  ;;  %v245_v16 = vld [vmem:[%s4376_s29 + $0x2f0] sm:$0xff]  ;;  %v248_v33 = vld [vmem:[%s4376_s29 + $0x308] sm:$0xff] }
  0x72   : > { %2248 = vmax.xlane.f32.xlu0 %v2247_v21  ;;  %v2262_v13 = vsel %vm451_vm0, %v248_v33, -inf  ;;  %v2259_v19 = vmax.f32 %v245_v16, %v2258_v5  ;;  %v2267_v21 = vmax.f32 %v249_v0, %v2266_v42  ;;  %v269_v5 = vpack.c.bf16 %v4637_v24, %v4624_v8 }
  0x73   : > { %2252 = vmax.xlane.f32.xlu1 %v2251_v36  ;;  %v2263_v18 = vmax.f32 %v247_v39, %v2262_v13  ;;  %v293_v36 = vpack.c.bf16 %v237_v56, %v235_v49  ;;  %v298_v49 = vpack.c.bf16 %v246_v28, %v244_v14  ;;  %v271_v56 = vpack.c.bf16 %v4659_v54, %v4650_v45  ;;  %v8337_v13 = vld [vmem:[#allocation3_spill] sm:$0xff] }
  0x74   : > { %v299_v14 = vpack.c.bf16 %v249_v0, %v247_v39  ;;  %v276_v28 = vpack.c.bf16 %v4700_v17, %v4693_v47  ;;  %v8343_v0 = vld [vmem:[#allocation7_spill] sm:$0xff] }
  0x76   : > { %2256 = vmax.xlane.f32.xlu0 %v2255_v57  ;;  %v300_v57 = vpack.c.bf16 %v250_v62, %v248_v33  ;;  %v8335_v33 = vld [vmem:[#allocation2_spill] sm:$0xff] }
  0x77   : > { %2260 = vmax.xlane.f32.xlu1 %v2259_v19 }
  0x78   : > { %637 = vmatmul.mubr.bf16.gmra.mxu0 %v265_v29  ;;  %767 = vmatmul.mubr.bf16.gmra.mxu1 %v291_v44  ;;  %v270_v29 = vpack.c.bf16 %v4615_v3, %v4601_v59  ;;  %v296_v44 = vpack.c.bf16 %v242_v25, %v240_v38  ;;  %v297_v38 = vpack.c.bf16 %v245_v16, %v243_v6 }
  0x79   : > { %3822 = vmatprep.mubr.msk.bf16.mxu0 %vm451_vm0, %v268_v35  ;;  %3835 = vmatprep.mubr.msk.bf16.mxu1 %vm451_vm0, %v294_v2  ;;  %v295_v35 = vpack.c.bf16 %v241_v9, %v239_v30  ;;  %v272_v2 = vpack.c.bf16 %v4646_v40, %v4634_v22  ;;  %v274_v25 = vpack.c.bf16 %v4672_v11, %v4656_v52  ;;  %v8333_v30 = vld [vmem:[#allocation16_spill] sm:$0xff] }
  0x7a   : > { %2264 = vmax.xlane.f32.xlu0 %v2263_v18  ;;  %v273_v9 = vpack.c.bf16 %v8333_v30, %v4678_v27  ;;  %v275_v6 = vpack.c.bf16 %v4716_v26, %v4703_v10  ;;  %v8341_v10 = vld [vmem:[#allocation6_spill] sm:$0xff] }
  0x7b   : > { %2268 = vmax.xlane.f32.xlu1 %v2267_v21  ;;  %v8345_v21 = vld [vmem:[#allocation4_spill] sm:$0xff] }
  0x80   : > { %647 = vmatmul.mubr.bf16.gmra.mxu0 %v267_v32  ;;  %777 = vmatmul.mubr.bf16.gmra.mxu1 %v293_v36  ;;  %v8347_v36 = vld [vmem:[#allocation5_spill] sm:$0xff] }
  0x81   : > { %3823 = vmatprep.mubr.msk.bf16.mxu0 %vm451_vm0, %v270_v29  ;;  %3836 = vmatprep.mubr.msk.bf16.mxu1 %vm451_vm0, %v296_v44 }
  0x88   : > { %657 = vmatmul.mubr.bf16.gmra.mxu0 %v269_v5  ;;  %787 = vmatmul.mubr.bf16.gmra.mxu1 %v295_v35 }
  0x89   : > { %3824 = vmatprep.mubr.msk.bf16.mxu0 %vm451_vm0, %v272_v2  ;;  %3837 = vmatprep.mubr.msk.bf16.mxu1 %vm451_vm0, %v298_v49 }
  0x90   : > { %667 = vmatmul.mubr.bf16.gmra.mxu0 %v271_v56  ;;  %797 = vmatmul.mubr.bf16.gmra.mxu1 %v297_v38  ;;  %v8351_v38 = vld [vmem:[#allocation10_spill] sm:$0xff] }
  0x91   : > { %3825 = vmatprep.mubr.msk.bf16.mxu0 %vm451_vm0, %v274_v25  ;;  %3838 = vmatprep.mubr.msk.bf16.mxu1 %vm451_vm0, %v300_v57  ;;  %v8353_v57 = vld [vmem:[#allocation11_spill] sm:$0xff] }
  0x98   : > { %677 = vmatmul.mubr.bf16.gmra.mxu0 %v273_v9  ;;  %807 = vmatmul.mubr.bf16.gmra.mxu1 %v299_v14  ;;  %v8355_v14 = vld [vmem:[#allocation8_spill] sm:$0xff] }
  0x99   : > { %3826 = vmatprep.mubr.msk.bf16.mxu0 %vm451_vm0, %v276_v28 }
  0xa0   : > { %687 = vmatmul.mubr.bf16.gmra.mxu0 %v275_v6  ;;  %v4847_v16 = vpop.xlane.xlu0 %2072  ;;  %v8357_v6 = vld [vmem:[#allocation9_spill] sm:$0xff] }
  0xa1   : > { %8334 = vst [vmem:[#allocation16_spill] sm:$0xff] %v4847_v16  ;;  %v4851_v62 = vsub.f32 %v8335_v33, %v4847_v16  ;;  %v4855_v19 = vsub.f32 %v8337_v13, %v4847_v16  ;;  %v4859_v42 = vpop.xlane.xlu1 %2076 }
  0xa2   : > { %8339 = vst [vmem:[#allocation17_spill] sm:$0xff] %v4859_v42  ;;  %v4865_v26 = vsub.f32 %v8341_v10, %v4859_v42  ;;  %v4869_v18 = vsub.f32 %v8343_v0, %v4859_v42 }
  0xa3   : > { %8336 = vst [vmem:[#allocation2_spill] sm:$0xff] %v4851_v62  ;;  %8338 = vst [vmem:[#allocation3_spill] sm:$0xff] %v4855_v19  ;;  %v2420_v17 = vmul.f32 1.442695, %v4851_v62  ;;  %v2422_v47 = vmul.f32 1.442695, %v4855_v19 }
  0xa4   : > { %v4861_v39 = vpop.xlane.xlu0 %2080  ;;  %8342 = vst [vmem:[#allocation6_spill] sm:$0xff] %v4865_v26  ;;  %8344 = vst [vmem:[#allocation7_spill] sm:$0xff] %v4869_v18  ;;  %v2424_v44 = vmul.f32 1.442695, %v4865_v26  ;;  %v2426_v2 = vmul.f32 1.442695, %v4869_v18 }
  0xa5   : > { %8340 = vst [vmem:[#allocation18_spill] sm:$0xff] %v4861_v39  ;;  %3965 = vpow2.f32 %v2420_v17  ;;  %v4873_v32 = vsub.f32 %v8345_v21, %v4861_v39  ;;  %v4877_v29 = vsub.f32 %v8347_v36, %v4861_v39  ;;  %v4883_v49 = vpop.xlane.xlu1 %2084  ;;  %v8361_v36 = vld [vmem:[#allocation13_spill] sm:$0xff] }
  0xa6   : > { %3967 = vpow2.f32 %v2422_v47  ;;  %8349 = vst [vmem:[#allocation19_spill] sm:$0xff] %v4883_v49  ;;  %v4889_v25 = vsub.f32 %v8351_v38, %v4883_v49  ;;  %v4893_v9 = vsub.f32 %v8353_v57, %v4883_v49  ;;  %v8366_v38 = vld [vmem:[#allocation12_spill] sm:$0xff] }
  0xa7   : > { %8346 = vst [vmem:[#allocation4_spill] sm:$0xff] %v4873_v32  ;;  %8348 = vst [vmem:[#allocation5_spill] sm:$0xff] %v4877_v29  ;;  %v2428_v5 = vmul.f32 1.442695, %v4873_v32  ;;  %v2430_v35 = vmul.f32 1.442695, %v4877_v29  ;;  %3969 = vpow2.f32 %v2424_v44 }
  0xa8   : > { %v4885_v56 = vpop.xlane.xlu0 %2088  ;;  %8352 = vst [vmem:[#allocation10_spill] sm:$0xff] %v4889_v25  ;;  %8354 = vst [vmem:[#allocation11_spill] sm:$0xff] %v4893_v9  ;;  %v2432_v13 = vmul.f32 1.442695, %v4889_v25  ;;  %v2434_v10 = vmul.f32 1.442695, %v4893_v9 }
  0xa9   : > { %8350 = vst [vmem:[#allocation20_spill] sm:$0xff] %v4885_v56  ;;  %3971 = vpow2.f32 %v2428_v5  ;;  %v4897_v28 = vsub.f32 %v8355_v14, %v4885_v56  ;;  %v4901_v33 = vsub.f32 %v8357_v6, %v4885_v56  ;;  %v4907_v0 = vpop.xlane.xlu1 %2092  ;;  %v8363_v5 = vld [vmem:[#allocation14_spill] sm:$0xff] }
  0xaa   : > { %3973 = vpow2.f32 %v2430_v35  ;;  %8359 = vst [vmem:[#allocation21_spill] sm:$0xff] %v4907_v0  ;;  %v4913_v44 = vsub.f32 %v8361_v36, %v4907_v0  ;;  %v4917_v35 = vsub.f32 %v8363_v5, %v4907_v0 }
  0xab   : > { %8356 = vst [vmem:[#allocation8_spill] sm:$0xff] %v4897_v28  ;;  %8358 = vst [vmem:[#allocation9_spill] sm:$0xff] %v4901_v33  ;;  %3975 = vpow2.f32 %v2426_v2  ;;  %v2436_v17 = vmul.f32 1.442695, %v4897_v28  ;;  %v2438_v47 = vmul.f32 1.442695, %v4901_v33 }
  0xac   : > { %3977 = vpow2.f32 %v2432_v13  ;;  %v4909_v21 = vpop.xlane.xlu0 %2096  ;;  %8362 = vst [vmem:[#allocation13_spill] sm:$0xff] %v4913_v44  ;;  %8364 = vst [vmem:[#allocation14_spill] sm:$0xff] %v4917_v35  ;;  %v2440_v14 = vmul.f32 1.442695, %v4913_v44  ;;  %v2442_v36 = vmul.f32 1.442695, %v4917_v35 }
  0xad   : > { %8360 = vst [vmem:[#allocation22_spill] sm:$0xff] %v4909_v21  ;;  %3979 = vpow2.f32 %v2436_v17  ;;  %v4921_v2 = vsub.f32 %v4466_v41, %v4909_v21  ;;  %v4925_v57 = vsub.f32 %v8366_v38, %v4909_v21  ;;  %v4931_v5 = vpop.xlane.xlu1 %2100 }
  0xae   : > { %3981 = vpow2.f32 %v2438_v47  ;;  %8368 = vst [vmem:[#allocation24_spill] sm:$0xff] %v4931_v5  ;;  %v4937_v41 = vsub.f32 %v4487_v50, %v4931_v5  ;;  %v8371_v47 = vld [vmem:[#allocation15_spill] sm:$0xff] }
  0xaf   : > { %8365 = vst [vmem:[#allocation23_spill] sm:$0xff] %v4921_v2  ;;  %8367 = vst [vmem:[#allocation12_spill] sm:$0xff] %v4925_v57  ;;  %3983 = vpow2.f32 %v2434_v10  ;;  %v2444_v6 = vmul.f32 1.442695, %v4921_v2  ;;  %v2446_v13 = vmul.f32 1.442695, %v4925_v57  ;;  %v4941_v38 = vsub.f32 %v8371_v47, %v4931_v5 }
  0xb0   : > { %3985 = vpow2.f32 %v2440_v14  ;;  %v4933_v17 = vpop.xlane.xlu0 %2104  ;;  %8370 = vst [vmem:[#allocation26_spill] sm:$0xff] %v4937_v41  ;;  %v2448_v49 = vmul.f32 1.442695, %v4937_v41 }
  0xb1   : > { %8369 = vst [vmem:[#allocation25_spill] sm:$0xff] %v4933_v17  ;;  %8372 = vst [vmem:[#allocation15_spill] sm:$0xff] %v4941_v38  ;;  %3987 = vpow2.f32 %v2444_v6  ;;  %v4945_v10 = vsub.f32 %v4495_v53, %v4933_v17  ;;  %v4949_v0 = vsub.f32 %v4479_v46, %v4933_v17  ;;  %v2450_v6 = vmul.f32 1.442695, %v4941_v38  ;;  %v4955_v5 = vpop.xlane.xlu1 %2108 }
  0xb2   : > { %v3966_v14 = vpop.eup %3965  ;;  %3989 = vpow2.f32 %v2446_v13  ;;  %8375 = vst [vmem:[#allocation29_spill] sm:$0xff] %v4955_v5  ;;  %v4961_v46 = vsub.f32 %v4508_v61, %v4955_v5  ;;  %v4965_v13 = vsub.f32 %v4500_v55, %v4955_v5 }
  0xb3   : > { %8373 = vst [vmem:[#allocation27_spill] sm:$0xff] %v4945_v10  ;;  %8374 = vst [vmem:[#allocation28_spill] sm:$0xff] %v4949_v0  ;;  %v3968_v21 = vpop.eup %3967  ;;  %3991 = vpow2.f32 %v2442_v36  ;;  %v2452_v50 = vmul.f32 1.442695, %v4945_v10  ;;  %v2454_v47 = vmul.f32 1.442695, %v4949_v0 }
  0xb4   : > { %3993 = vpow2.f32 %v2448_v49  ;;  %v4957_v53 = vpop.xlane.xlu0 %2112  ;;  %8377 = vst [vmem:[#allocation31_spill] sm:$0xff] %v4961_v46  ;;  %8378 = vst [vmem:[#allocation32_spill] sm:$0xff] %v4965_v13  ;;  %v2620_v36 = vsel %vm451_vm0, %v3968_v21, 0.0  ;;  %v3970_v17 = vpop.eup %3969  ;;  %v2456_v61 = vmul.f32 1.442695, %v4961_v46 }
  0xb5   : > { %8376 = vst [vmem:[#allocation30_spill] sm:$0xff] %v4957_v53  ;;  %3995 = vpow2.f32 %v2452_v50  ;;  %v4970_v42 = vsub.f32 %v4513_v63, %v4957_v53  ;;  %v4974_v49 = vsub.f32 %v4503_v58, %v4957_v53  ;;  %v2621_v56 = vadd.f32 %v3966_v14, %v2620_v36  ;;  %v4980_v63 = vpop.xlane.xlu1 %2116 }
  0xb6   : > { %v3972_v39 = vpop.eup %3971  ;;  %3997 = vpow2.f32 %v2454_v47  ;;  %v2458_v50 = vmul.f32 1.442695, %v4965_v13  ;;  %8381 = vst [vmem:[#allocation35_spill] sm:$0xff] %v4980_v63  ;;  %v4986_v14 = vsub.f32 %v4529_v7, %v4980_v63  ;;  %v4990_v47 = vsub.f32 %v4518_v1, %v4980_v63 }
  0xb7   : > { %8379 = vst [vmem:[#allocation33_spill] sm:$0xff] %v4970_v42  ;;  %8380 = vst [vmem:[#allocation34_spill] sm:$0xff] %v4974_v49  ;;  %v3974_v16 = vpop.eup %3973  ;;  %3999 = vpow2.f32 %v2450_v6  ;;  %v2460_v55 = vmul.f32 1.442695, %v4970_v42  ;;  %v2462_v21 = vmul.f32 1.442695, %v4974_v49  ;;  %2622 = vadd.xlane.f32.xlu0 %v2621_v56 }
  0xb8   : > { %v3976_v5 = vpop.eup %3975  ;;  %4001 = vpow2.f32 %v2456_v61  ;;  %v4982_v58 = vpop.xlane.xlu0 %2120  ;;  %8383 = vst [vmem:[#allocation37_spill] sm:$0xff] %v4986_v14  ;;  %8384 = vst [vmem:[#allocation38_spill] sm:$0xff] %v4990_v47  ;;  %v2628_v6 = vsel %vm451_vm0, %v3974_v16, 0.0  ;;  %v2464_v7 = vmul.f32 1.442695, %v4986_v14 }
  0xb9   : > { %8382 = vst [vmem:[#allocation36_spill] sm:$0xff] %v4982_v58  ;;  %v3978_v36 = vpop.eup %3977  ;;  %4003 = vpow2.f32 %v2460_v55  ;;  %v4995_v56 = vsub.f32 %v4537_v12, %v4982_v58  ;;  %v4999_v61 = vsub.f32 %v4524_v4, %v4982_v58  ;;  %v2629_v53 = vadd.f32 %v3972_v39, %v2628_v6  ;;  %v5006_v49 = vpop.xlane.xlu1 %2124 }
  0xba   : > { %v3980_v46 = vpop.eup %3979  ;;  %4005 = vpow2.f32 %v2462_v21  ;;  %v2466_v1 = vmul.f32 1.442695, %v4990_v47  ;;  %v2624_v63 = vsel %vm451_vm0, %v3976_v5, 0.0  ;;  %8387 = vst [vmem:[#allocation41_spill] sm:$0xff] %v5006_v49  ;;  %v5012_v21 = vsub.f32 %v4553_v23, %v5006_v49 }
  0xbb   : > { %8385 = vst [vmem:[#allocation39_spill] sm:$0xff] %v4995_v56  ;;  %8386 = vst [vmem:[#allocation40_spill] sm:$0xff] %v4999_v61  ;;  %v3982_v16 = vpop.eup %3981  ;;  %4007 = vpow2.f32 %v2458_v50  ;;  %v2468_v55 = vmul.f32 1.442695, %v4995_v56  ;;  %v2470_v12 = vmul.f32 1.442695, %v4999_v61  ;;  %2630 = vadd.xlane.f32.xlu0 %v2629_v53  ;;  %v2625_v13 = vadd.f32 %v3970_v17, %v2624_v63 }
  0xbc   : > { %v3984_v4 = vpop.eup %3983  ;;  %4009 = vpow2.f32 %v2464_v7  ;;  %v5008_v39 = vpop.xlane.xlu0 %2128  ;;  %8389 = vst [vmem:[#allocation43_spill] sm:$0xff] %v5012_v21  ;;  %v5016_v5 = vsub.f32 %v4542_v15, %v5006_v49  ;;  %v2636_v50 = vsel %vm451_vm0, %v3982_v16, 0.0  ;;  %v2472_v7 = vmul.f32 1.442695, %v5012_v21 }
  0xbd   : > { %8388 = vst [vmem:[#allocation42_spill] sm:$0xff] %v5008_v39  ;;  %v3986_v6 = vpop.eup %3985  ;;  %4011 = vpow2.f32 %v2468_v55  ;;  %2626 = vadd.xlane.f32.xlu1 %v2625_v13  ;;  %v5021_v17 = vsub.f32 %v4561_v31, %v5008_v39  ;;  %v5025_v53 = vsub.f32 %v4548_v20, %v5008_v39  ;;  %v2637_v63 = vadd.f32 %v3980_v46, %v2636_v50  ;;  %v5032_v58 = vpop.xlane.xlu1 %2132 }
  0xbe   : > { %8390 = vst [vmem:[#allocation44_spill] sm:$0xff] %v5016_v5  ;;  %v3988_v23 = vpop.eup %3987  ;;  %4013 = vpow2.f32 %v2470_v12  ;;  %v2474_v15 = vmul.f32 1.442695, %v5016_v5  ;;  %v2632_v16 = vsel %vm451_vm0, %v3984_v4, 0.0  ;;  %8393 = vst [vmem:[#allocation47_spill] sm:$0xff] %v5032_v58  ;;  %v5038_v12 = vsub.f32 %v4577_v43, %v5032_v58 }
  0xbf   : > { %8391 = vst [vmem:[#allocation45_spill] sm:$0xff] %v5021_v17  ;;  %8392 = vst [vmem:[#allocation46_spill] sm:$0xff] %v5025_v53  ;;  %v3990_v49 = vpop.eup %3989  ;;  %4015 = vpow2.f32 %v2466_v1  ;;  %v2476_v13 = vmul.f32 1.442695, %v5021_v17  ;;  %v2478_v31 = vmul.f32 1.442695, %v5025_v53  ;;  %2638 = vadd.xlane.f32.xlu0 %v2637_v63  ;;  %v2633_v55 = vadd.f32 %v3978_v36, %v2632_v16 }
  0xc0   : > { %v3992_v20 = vpop.eup %3991  ;;  %4017 = vpow2.f32 %v2472_v7  ;;  %v5034_v46 = vpop.xlane.xlu0 %2136  ;;  %8395 = vst [vmem:[#allocation49_spill] sm:$0xff] %v5038_v12  ;;  %v5042_v4 = vsub.f32 %v4566_v34, %v5032_v58  ;;  %v2644_v1 = vsel %vm451_vm0, %v3990_v49, 0.0  ;;  %v2480_v16 = vmul.f32 1.442695, %v5038_v12 }
  0xc1   : > { %8394 = vst [vmem:[#allocation48_spill] sm:$0xff] %v5034_v46  ;;  %v3994_v50 = vpop.eup %3993  ;;  %4019 = vpow2.f32 %v2476_v13  ;;  %2634 = vadd.xlane.f32.xlu1 %v2633_v55  ;;  %v5047_v36 = vsub.f32 %v4585_v48, %v5034_v46  ;;  %v5051_v63 = vsub.f32 %v4572_v37, %v5034_v46  ;;  %v2645_v7 = vadd.f32 %v3988_v23, %v2644_v1  ;;  %v5058_v39 = vpop.xlane.xlu1 %2140 }
  0xc2   : > { %8396 = vst [vmem:[#allocation50_spill] sm:$0xff] %v5042_v4  ;;  %v3996_v43 = vpop.eup %3995  ;;  %4021 = vpow2.f32 %v2478_v31  ;;  %v2482_v34 = vmul.f32 1.442695, %v5042_v4  ;;  %v2640_v49 = vsel %vm451_vm0, %v3992_v20, 0.0  ;;  %8399 = vst [vmem:[#allocation53_spill] sm:$0xff] %v5058_v39  ;;  %v5062_v23 = vsub.f32 %v4604_v60, %v5058_v39 }
  0xc3   : > { %8397 = vst [vmem:[#allocation51_spill] sm:$0xff] %v5047_v36  ;;  %8398 = vst [vmem:[#allocation52_spill] sm:$0xff] %v5051_v63  ;;  %v3998_v58 = vpop.eup %3997  ;;  %4023 = vpow2.f32 %v2474_v15  ;;  %v2484_v13 = vmul.f32 1.442695, %v5047_v36  ;;  %v2486_v48 = vmul.f32 1.442695, %v5051_v63  ;;  %2646 = vadd.xlane.f32.xlu0 %v2645_v7  ;;  %v2641_v55 = vadd.f32 %v3986_v6, %v2640_v49 }
  0xc4   : > { %v4000_v37 = vpop.eup %3999  ;;  %4025 = vpow2.f32 %v2480_v16  ;;  %8400 = vst [vmem:[#allocation54_spill] sm:$0xff] %v5062_v23  ;;  %v5066_v31 = vsub.f32 %v4590_v51, %v5058_v39  ;;  %v2652_v15 = vsel %vm451_vm0, %v3998_v58, 0.0  ;;  %v5070_v49 = vpop.xlane.xlu0 %2144  ;;  %v2488_v16 = vmul.f32 1.442695, %v5062_v23 }
  0xc5   : > { %v4002_v20 = vpop.eup %4001  ;;  %4027 = vpow2.f32 %v2484_v13  ;;  %2642 = vadd.xlane.f32.xlu1 %v2641_v55  ;;  %v2653_v1 = vadd.f32 %v3996_v43, %v2652_v15  ;;  %v2648_v6 = vsel %vm451_vm0, %v4000_v37, 0.0  ;;  %8402 = vst [vmem:[#allocation56_spill] sm:$0xff] %v5070_v49  ;;  %v5076_v51 = vsub.f32 %v4624_v8, %v5070_v49  ;;  %v5082_v43 = vpop.xlane.xlu1 %2148 }
  0xc6   : > { %8401 = vst [vmem:[#allocation55_spill] sm:$0xff] %v5066_v31  ;;  %v4004_v7 = vpop.eup %4003  ;;  %4029 = vpow2.f32 %v2486_v48  ;;  %v2490_v60 = vmul.f32 1.442695, %v5066_v31  ;;  %v2649_v46 = vadd.f32 %v3994_v50, %v2648_v6  ;;  %v5080_v58 = vsub.f32 %v4601_v59, %v5070_v49  ;;  %8405 = vst [vmem:[#allocation59_spill] sm:$0xff] %v5082_v43 }
  0xc7   : > { %v4006_v63 = vpop.eup %4005  ;;  %4031 = vpow2.f32 %v2482_v34  ;;  %8403 = vst [vmem:[#allocation57_spill] sm:$0xff] %v5076_v51  ;;  %2654 = vadd.xlane.f32.xlu0 %v2653_v1  ;;  %v5086_v48 = vsub.f32 %v4637_v24, %v5082_v43  ;;  %v5090_v50 = vsub.f32 %v4615_v3, %v5082_v43  ;;  %v2492_v55 = vmul.f32 1.442695, %v5076_v51 }
  0xc8   : > { %8404 = vst [vmem:[#allocation58_spill] sm:$0xff] %v5080_v58  ;;  %v4008_v13 = vpop.eup %4007  ;;  %4033 = vpow2.f32 %v2488_v16  ;;  %v2660_v8 = vsel %vm451_vm0, %v4006_v63, 0.0  ;;  %v2494_v59 = vmul.f32 1.442695, %v5080_v58 }
  0xc9   : > { %8406 = vst [vmem:[#allocation60_spill] sm:$0xff] %v5086_v48  ;;  %8407 = vst [vmem:[#allocation61_spill] sm:$0xff] %v5090_v50  ;;  %v4010_v34 = vpop.eup %4009  ;;  %4035 = vpow2.f32 %v2490_v60  ;;  %2650 = vadd.xlane.f32.xlu1 %v2649_v46  ;;  %v2661_v37 = vadd.f32 %v4004_v7, %v2660_v8  ;;  %v2496_v24 = vmul.f32 1.442695, %v5086_v48  ;;  %v2498_v6 = vmul.f32 1.442695, %v5090_v50 }
  0xca   : > { %v4012_v15 = vpop.eup %4011  ;;  %v2656_v3 = vsel %vm451_vm0, %v4008_v13, 0.0  ;;  %4037 = vpow2.f32 %v2492_v55 }
  0xcb   : > { %v5095_v1 = vpop.xlane.xlu0 %2152  ;;  %v4014_v16 = vpop.eup %4013  ;;  %2662 = vadd.xlane.f32.xlu0 %v2661_v37  ;;  %v2657_v46 = vadd.f32 %v4002_v20, %v2656_v3  ;;  %4039 = vpow2.f32 %v2494_v59 }
  0xcc   : > { %8408 = vst [vmem:[#allocation62_spill] sm:$0xff] %v5095_v1  ;;  %v5102_v63 = vsub.f32 %v4650_v45, %v5095_v1  ;;  %v5106_v60 = vsub.f32 %v4634_v22, %v5095_v1  ;;  %v5108_v7 = vpop.xlane.xlu1 %2156  ;;  %v4016_v8 = vpop.eup %4015  ;;  %v2668_v45 = vsel %vm451_vm0, %v4014_v16, 0.0  ;;  %4041 = vpow2.f32 %v2496_v24 }
  0xcd   : > { %8411 = vst [vmem:[#allocation65_spill] sm:$0xff] %v5108_v7  ;;  %v5112_v43 = vsub.f32 %v4659_v54, %v5108_v7  ;;  %v5116_v13 = vsub.f32 %v4646_v40, %v5108_v7  ;;  %v4018_v55 = vpop.eup %4017  ;;  %2658 = vadd.xlane.f32.xlu1 %v2657_v46  ;;  %v2669_v20 = vadd.f32 %v4012_v15, %v2668_v45  ;;  %4043 = vpow2.f32 %v2498_v6 }
  0xce   : > { %8409 = vst [vmem:[#allocation63_spill] sm:$0xff] %v5102_v63  ;;  %8410 = vst [vmem:[#allocation64_spill] sm:$0xff] %v5106_v60  ;;  %v2500_v22 = vmul.f32 1.442695, %v5102_v63  ;;  %v2502_v37 = vmul.f32 1.442695, %v5106_v60  ;;  %v4020_v3 = vpop.eup %4019 }
  0xcf   : > { %8412 = vst [vmem:[#allocation66_spill] sm:$0xff] %v5112_v43  ;;  %8413 = vst [vmem:[#allocation67_spill] sm:$0xff] %v5116_v13  ;;  %v5121_v59 = vpop.xlane.xlu0 %2160  ;;  %v2504_v54 = vmul.f32 1.442695, %v5112_v43  ;;  %v2506_v1 = vmul.f32 1.442695, %v5116_v13  ;;  %v4022_v7 = vpop.eup %4021  ;;  %2670 = vadd.xlane.f32.xlu0 %v2669_v20 }
  0xd0   : > { %8414 = vst [vmem:[#allocation68_spill] sm:$0xff] %v5121_v59  ;;  %v2664_v40 = vsel %vm451_vm0, %v4016_v8, 0.0  ;;  %4045 = vpow2.f32 %v2500_v22  ;;  %v5128_v16 = vsub.f32 %v4678_v27, %v5121_v59  ;;  %v5132_v24 = vsub.f32 %v4656_v52, %v5121_v59  ;;  %v5134_v6 = vpop.xlane.xlu1 %2164  ;;  %v4024_v46 = vpop.eup %4023 }
  0xd1   : > { %v2665_v15 = vadd.f32 %v4010_v34, %v2664_v40  ;;  %8417 = vst [vmem:[#allocation71_spill] sm:$0xff] %v5134_v6  ;;  %4047 = vpow2.f32 %v2502_v37  ;;  %v5138_v45 = vsub.f32 %v8333_v30, %v5134_v6  ;;  %v5142_v8 = vsub.f32 %v4672_v11, %v5134_v6  ;;  %v4026_v22 = vpop.eup %4025 }
  0xd2   : > { %8415 = vst [vmem:[#allocation69_spill] sm:$0xff] %v5128_v16  ;;  %8416 = vst [vmem:[#allocation70_spill] sm:$0xff] %v5132_v24  ;;  %v2676_v27 = vsel %vm451_vm0, %v4022_v7, 0.0  ;;  %v2508_v52 = vmul.f32 1.442695, %v5128_v16  ;;  %4049 = vpow2.f32 %v2504_v54  ;;  %v4028_v40 = vpop.eup %4027  ;;  %v2672_v59 = vsel %vm451_vm0, %v4024_v46, 0.0 }
  0xd3   : > { %8418 = vst [vmem:[#allocation72_spill] sm:$0xff] %v5138_v45  ;;  %8419 = vst [vmem:[#allocation73_spill] sm:$0xff] %v5142_v8  ;;  %v2510_v20 = vmul.f32 1.442695, %v5132_v24  ;;  %2666 = vadd.xlane.f32.xlu1 %v2665_v15  ;;  %v2677_v34 = vadd.f32 %v4020_v3, %v2676_v27  ;;  %4051 = vpow2.f32 %v2506_v1  ;;  %v2512_v37 = vmul.f32 1.442695, %v5138_v45  ;;  %v4030_v11 = vpop.eup %4029 }
  0xd4   : > { %v2514_v30 = vmul.f32 1.442695, %v5142_v8  ;;  %4053 = vpow2.f32 %v2508_v52  ;;  %v2673_v7 = vadd.f32 %v4018_v55, %v2672_v59  ;;  %v4032_v6 = vpop.eup %4031  ;;  %v2684_v49 = vsel %vm451_vm0, %v4030_v11, 0.0 }
  0xd5   : > { %2678 = vadd.xlane.f32.xlu0 %v2677_v34  ;;  %4055 = vpow2.f32 %v2510_v20  ;;  %v4034_v39 = vpop.eup %4033  ;;  %v2685_v3 = vadd.f32 %v4028_v40, %v2684_v49  ;;  %v2680_v1 = vsel %vm451_vm0, %v4032_v6, 0.0 }
  0xd6   : > { %4057 = vpow2.f32 %v2512_v37  ;;  %v4036_v54 = vpop.eup %4035  ;;  %v2681_v15 = vadd.f32 %v4026_v22, %v2680_v1 }
  0xd7   : > { %2674 = vadd.xlane.f32.xlu1 %v2673_v7  ;;  %4059 = vpow2.f32 %v2514_v30  ;;  %v2688_v46 = vsel %vm451_vm0, %v4036_v54, 0.0  ;;  %v4038_v27 = vpop.eup %4037 }
  0xd8   : > { %v4040_v52 = vpop.eup %4039  ;;  %v2689_v55 = vadd.f32 %v4034_v39, %v2688_v46 }
  0xd9   : > { %2686 = vadd.xlane.f32.xlu0 %v2685_v3  ;;  %v4042_v59 = vpop.eup %4041  ;;  %v2692_v20 = vsel %vm451_vm0, %v4040_v52, 0.0 }
  0xda   : > { %v4044_v34 = vpop.eup %4043  ;;  %v2693_v11 = vadd.f32 %v4038_v27, %v2692_v20 }
  0xdb   : > { %2682 = vadd.xlane.f32.xlu1 %v2681_v15  ;;  %v2696_v49 = vsel %vm451_vm0, %v4044_v34, 0.0  ;;  %v5159_v34 = vpop.xlane.xlu0 %2168 }
  0xdc   : > { %v2697_v6 = vadd.f32 %v4042_v59, %v2696_v49  ;;  %8420 = vst [vmem:[#allocation74_spill] sm:$0xff] %v5159_v34 }
  0xdd   : > { %v4046_v37 = vpop.eup %4045  ;;  %2694 = vadd.xlane.f32.xlu0 %v2693_v11  ;;  %v5161_v11 = vpop.xlane.xlu1 %2172 }
  0xde   : > { %v4048_v40 = vpop.eup %4047  ;;  %8421 = vst [vmem:[#allocation75_spill] sm:$0xff] %v5161_v11 }
  0xdf   : > { %2690 = vadd.xlane.f32.xlu1 %v2689_v55  ;;  %v4050_v22 = vpop.eup %4049  ;;  %v2700_v30 = vsel %vm451_vm0, %v4048_v40, 0.0 }
  0xe0   : > { %v4052_v7 = vpop.eup %4051  ;;  %v2701_v3 = vadd.f32 %v4046_v37, %v2700_v30  ;;  %v5163_v37 = vpop.xlane.xlu0 %2176 }
  0xe1   : > { %v4054_v1 = vpop.eup %4053  ;;  %v2704_v39 = vsel %vm451_vm0, %v4052_v7, 0.0  ;;  %8422 = vst [vmem:[#allocation76_spill] sm:$0xff] %v5163_v37  ;;  %v5175_v7 = vpop.xlane.xlu1 %2180 }
  0xe2   : > { %v4056_v54 = vpop.eup %4055  ;;  %2702 = vadd.xlane.f32.xlu0 %v2701_v3  ;;  %v2705_v15 = vadd.f32 %v4050_v22, %v2704_v39  ;;  %8423 = vst [vmem:[#allocation77_spill] sm:$0xff] %v5175_v7 }
  0xe3   : > { %2698 = vadd.xlane.f32.xlu1 %v2697_v6  ;;  %v4058_v46 = vpop.eup %4057  ;;  %v2708_v27 = vsel %vm451_vm0, %v4056_v54, 0.0 }
  0xe4   : > { %v4060_v52 = vpop.eup %4059  ;;  %v2709_v20 = vadd.f32 %v4054_v1, %v2708_v27 }
  0xe5   : > { %v2712_v55 = vsel %vm451_vm0, %v4060_v52, 0.0  ;;  %v5200_v45 = vpop.xlane.xlu1 %2188 }
  0xe6   : > { %2710 = vadd.xlane.f32.xlu0 %v2709_v20  ;;  %v2713_v59 = vadd.f32 %v4058_v46, %v2712_v55  ;;  %8425 = vst [vmem:[#allocation79_spill] sm:$0xff] %v5200_v45 }
  0xe7   : > { %2706 = vadd.xlane.f32.xlu1 %v2705_v15  ;;  %v5184_v15 = vpop.xlane.xlu0 %2184 }
  0xe8   : > { %8424 = vst [vmem:[#allocation78_spill] sm:$0xff] %v5184_v15 }
  0xe9   : > { %v5227_v51 = vpop.xlane.xlu1 %2196 }
  0xea   : > { %8427 = vst [vmem:[#allocation81_spill] sm:$0xff] %v5227_v51 }
  0xeb   : > { %2714 = vadd.xlane.f32.xlu1 %v2713_v59 }
 0x100   : > { %v5165_v49 = vpop.f32.mrf.mxu0  ;;  %v5167_v40 = vpop.f32.mrf.mxu1 }
 0x102   : > { %v5169_v6 = vpop.f32.mrf.mxu1  ;;  %v5171_v22 = vpop.f32.mrf.mxu0 }
 0x103   : > { %v820_v30 = vsel %vm451_vm0, %v5171_v22, -inf  ;;  %v924_v54 = vsel %vm451_vm0, %v5169_v6, -inf }
 0x104   : > { %v5177_v3 = vpop.f32.mrf.mxu0  ;;  %v5179_v1 = vpop.f32.mrf.mxu1  ;;  %v821_v39 = vmax.f32 %v5165_v49, %v820_v30  ;;  %v925_v59 = vmax.f32 %v5167_v40, %v924_v54 }
 0x105   : > { %v5210_v54 = vpop.xlane.xlu0 %2192 }
 0x106   : > { %v5186_v46 = vpop.f32.mrf.mxu1  ;;  %822 = vmax.xlane.f32.xlu0 %v821_v39  ;;  %v5188_v27 = vpop.f32.mrf.mxu0  ;;  %8426 = vst [vmem:[#allocation80_spill] sm:$0xff] %v5210_v54 }
 0x107   : > { %v928_v52 = vsel %vm451_vm0, %v5186_v46, -inf  ;;  %v824_v8 = vsel %vm451_vm0, %v5188_v27, -inf }
 0x108   : > { %v5192_v20 = vpop.f32.mrf.mxu0  ;;  %v929_v55 = vmax.f32 %v5179_v1, %v928_v52  ;;  %v5196_v30 = vpop.f32.mrf.mxu1  ;;  %v825_v43 = vmax.f32 %v5177_v3, %v824_v8 }
 0x10a   : > { %930 = vmax.xlane.f32.xlu1 %v929_v55  ;;  %926 = vmax.xlane.f32.xlu0 %v925_v59  ;;  %v5202_v39 = vpop.f32.mrf.mxu0  ;;  %v5204_v24 = vpop.f32.mrf.mxu1 }
 0x10b   : > { %v828_v16 = vsel %vm451_vm0, %v5202_v39, -inf  ;;  %v932_v52 = vsel %vm451_vm0, %v5204_v24, -inf }
 0x10c   : > { %v5212_v13 = vpop.f32.mrf.mxu0  ;;  %v829_v60 = vmax.f32 %v5192_v20, %v828_v16  ;;  %v5216_v55 = vpop.f32.mrf.mxu1  ;;  %v933_v50 = vmax.f32 %v5196_v30, %v932_v52 }
 0x10e   : > { %826 = vmax.xlane.f32.xlu0 %v825_v43  ;;  %830 = vmax.xlane.f32.xlu1 %v829_v60  ;;  %v5218_v59 = vpop.f32.mrf.mxu0  ;;  %v5220_v63 = vpop.f32.mrf.mxu1 }
 0x10f   : > { %v832_v48 = vsel %vm451_vm0, %v5218_v59, -inf  ;;  %v936_v58 = vsel %vm451_vm0, %v5220_v63, -inf  ;;  %v5234_v60 = vpop.xlane.xlu0 %2200 }
 0x110   : > { %v5229_v8 = vpop.f32.mrf.mxu0  ;;  %v833_v16 = vmax.f32 %v5212_v13, %v832_v48  ;;  %v5232_v43 = vpop.f32.mrf.mxu1  ;;  %8428 = vst [vmem:[#allocation82_spill] sm:$0xff] %v5234_v60  ;;  %v937_v23 = vmax.f32 %v5216_v55, %v936_v58 }
 0x112   : > { %934 = vmax.xlane.f32.xlu0 %v933_v50  ;;  %834 = vmax.xlane.f32.xlu1 %v833_v16  ;;  %v5236_v31 = vpop.f32.mrf.mxu0  ;;  %v5238_v52 = vpop.f32.mrf.mxu1 }
 0x113   : > { %v836_v36 = vsel %vm451_vm0, %v5236_v31, -inf  ;;  %v940_v4 = vsel %vm451_vm0, %v5238_v52, -inf  ;;  %v5250_v50 = vpop.xlane.xlu1 %2204  ;;  %v5261_v61 = vpop.xlane.xlu0 %2208 }
 0x114   : > { %v5245_v12 = vpop.f32.mrf.mxu0  ;;  %v837_v48 = vmax.f32 %v5229_v8, %v836_v36  ;;  %v5248_v53 = vpop.f32.mrf.mxu1  ;;  %8429 = vst [vmem:[#allocation83_spill] sm:$0xff] %v5250_v50  ;;  %v941_v58 = vmax.f32 %v5232_v43, %v940_v4  ;;  %8430 = vst [vmem:[#allocation84_spill] sm:$0xff] %v5261_v61 }
 0x116   : > { %938 = vmax.xlane.f32.xlu1 %v937_v23  ;;  %838 = vmax.xlane.f32.xlu0 %v837_v48  ;;  %v5252_v16 = vpop.f32.mrf.mxu0  ;;  %v5254_v17 = vpop.f32.mrf.mxu1 }
 0x117   : > { %v840_v5 = vsel %vm451_vm0, %v5252_v16, -inf  ;;  %v944_v21 = vsel %vm451_vm0, %v5254_v17, -inf  ;;  %v5277_v41 = vpop.xlane.xlu1 %2212 }
 0x118   : > { %v5263_v36 = vpop.f32.mrf.mxu0  ;;  %v841_v56 = vmax.f32 %v5245_v12, %v840_v5  ;;  %v5266_v23 = vpop.f32.mrf.mxu1  ;;  %v945_v4 = vmax.f32 %v5248_v53, %v944_v21  ;;  %8431 = vst [vmem:[#allocation85_spill] sm:$0xff] %v5277_v41 }
 0x11a   : > { %942 = vmax.xlane.f32.xlu0 %v941_v58  ;;  %842 = vmax.xlane.f32.xlu1 %v841_v56  ;;  %v5268_v48 = vpop.f32.mrf.mxu0  ;;  %v5270_v14 = vpop.f32.mrf.mxu1 }
 0x11b   : > { %v844_v47 = vsel %vm451_vm0, %v5268_v48, -inf  ;;  %v948_v42 = vsel %vm451_vm0, %v5270_v14, -inf  ;;  %v5284_v56 = vpop.xlane.xlu0 %2216 }
 0x11c   : > { %v5279_v38 = vpop.f32.mrf.mxu0  ;;  %v845_v5 = vmax.f32 %v5263_v36, %v844_v47  ;;  %v5282_v58 = vpop.f32.mrf.mxu1  ;;  %8432 = vst [vmem:[#allocation86_spill] sm:$0xff] %v5284_v56  ;;  %v949_v35 = vmax.f32 %v5266_v23, %v948_v42 }
 0x11e   : > { %946 = vmax.xlane.f32.xlu1 %v945_v4  ;;  %846 = vmax.xlane.f32.xlu0 %v845_v5  ;;  %v5286_v44 = vpop.f32.mrf.mxu0  ;;  %v5288_v21 = vpop.f32.mrf.mxu1 }
 0x11f   : > { %v848_v0 = vsel %vm451_vm0, %v5286_v44, -inf  ;;  %v952_v10 = vsel %vm451_vm0, %v5288_v21, -inf  ;;  %v5300_v4 = vpop.xlane.xlu1 %2220  ;;  %v5311_v2 = vpop.xlane.xlu0 %2224 }
 0x120   : > { %v5295_v25 = vpop.f32.mrf.mxu0  ;;  %v849_v47 = vmax.f32 %v5279_v38, %v848_v0  ;;  %v5298_v9 = vpop.f32.mrf.mxu1  ;;  %8434 = vst [vmem:[#allocation88_spill] sm:$0xff] %v5300_v4  ;;  %v953_v42 = vmax.f32 %v5282_v58, %v952_v10  ;;  %8436 = vst [vmem:[#allocation90_spill] sm:$0xff] %v5311_v2 }
 0x121   : > { %8433 = vst [vmem:[#allocation87_spill] sm:$0xff] %v5298_v9 }
 0x122   : > { %950 = vmax.xlane.f32.xlu0 %v949_v35  ;;  %850 = vmax.xlane.f32.xlu1 %v849_v47  ;;  %v5302_v5 = vpop.f32.mrf.mxu0  ;;  %v5304_v26 = vpop.f32.mrf.mxu1 }
 0x123   : > { %8435 = vst [vmem:[#allocation89_spill] sm:$0xff] %v5304_v26  ;;  %v852_v18 = vsel %vm451_vm0, %v5302_v5, -inf  ;;  %v956_v57 = vsel %vm451_vm0, %v5304_v26, -inf  ;;  %v5327_v19 = vpop.xlane.xlu1 %2228  ;;  %v4269_v26 = vld [vmem:[%s4376_s29 + $0x1d8] sm:$0xff] }
 0x124   : > { %v5313_v0 = vpop.f32.mrf.mxu0  ;;  %v853_v33 = vmax.f32 %v5295_v25, %v852_v18  ;;  %v5316_v35 = vpop.f32.mrf.mxu1  ;;  %v957_v10 = vmax.f32 %v5298_v9, %v956_v57  ;;  %8441 = vst [vmem:[#allocation95_spill] sm:$0xff] %v5327_v19 }
 0x125   : > { %8437 = vst [vmem:[#allocation91_spill] sm:$0xff] %v5313_v0  ;;  %8438 = vst [vmem:[#allocation92_spill] sm:$0xff] %v5316_v35 }
 0x126   : > { %954 = vmax.xlane.f32.xlu1 %v953_v42  ;;  %854 = vmax.xlane.f32.xlu0 %v853_v33  ;;  %v5318_v47 = vpop.f32.mrf.mxu0  ;;  %v5320_v28 = vpop.f32.mrf.mxu1 }
 0x127   : > { %8439 = vst [vmem:[#allocation93_spill] sm:$0xff] %v5318_v47  ;;  %8440 = vst [vmem:[#allocation94_spill] sm:$0xff] %v5320_v28  ;;  %v856_v29 = vsel %vm451_vm0, %v5318_v47, -inf  ;;  %v960_v32 = vsel %vm451_vm0, %v5320_v28, -inf  ;;  %v5334_v33 = vpop.xlane.xlu0 %2232 }
 0x128   : > { %v5329_v62 = vpop.f32.mrf.mxu0  ;;  %v857_v18 = vmax.f32 %v5313_v0, %v856_v29  ;;  %v5332_v42 = vpop.f32.mrf.mxu1  ;;  %8444 = vst [vmem:[#allocation98_spill] sm:$0xff] %v5334_v33  ;;  %v961_v56 = vmax.f32 %v5316_v35, %v960_v32 }
 0x129   : > { %8442 = vst [vmem:[#allocation96_spill] sm:$0xff] %v5329_v62  ;;  %8443 = vst [vmem:[#allocation97_spill] sm:$0xff] %v5332_v42 }
 0x12a   : > { %958 = vmax.xlane.f32.xlu0 %v957_v10  ;;  %858 = vmax.xlane.f32.xlu1 %v857_v18  ;;  %v5336_v2 = vpop.f32.mrf.mxu0  ;;  %v5338_v57 = vpop.f32.mrf.mxu1 }
 0x12b   : > { %8445 = vst [vmem:[#allocation99_spill] sm:$0xff] %v5336_v2  ;;  %8446 = vst [vmem:[#allocation100_spill] sm:$0xff] %v5338_v57  ;;  %v860_v61 = vsel %vm451_vm0, %v5336_v2, -inf  ;;  %v964_v60 = vsel %vm451_vm0, %v5338_v57, -inf  ;;  %v5350_v10 = vpop.xlane.xlu1 %2236  ;;  %v5361_v57 = vpop.xlane.xlu0 %2240 }
 0x12c   : > { %v5345_v54 = vpop.f32.mrf.mxu0  ;;  %v861_v29 = vmax.f32 %v5329_v62, %v860_v61  ;;  %v5348_v15 = vpop.f32.mrf.mxu1  ;;  %8449 = vst [vmem:[#allocation103_spill] sm:$0xff] %v5350_v10  ;;  %v965_v32 = vmax.f32 %v5332_v42, %v964_v60  ;;  %8452 = vst [vmem:[#allocation106_spill] sm:$0xff] %v5361_v57 }
 0x12d   : > { %8447 = vst [vmem:[#allocation101_spill] sm:$0xff] %v5345_v54  ;;  %8448 = vst [vmem:[#allocation102_spill] sm:$0xff] %v5348_v15 }
 0x12e   : > { %962 = vmax.xlane.f32.xlu1 %v961_v56  ;;  %862 = vmax.xlane.f32.xlu0 %v861_v29  ;;  %v5352_v18 = vpop.f32.mrf.mxu0  ;;  %v5354_v33 = vpop.f32.mrf.mxu1 }
 0x12f   : > { %8450 = vst [vmem:[#allocation104_spill] sm:$0xff] %v5352_v18  ;;  %8451 = vst [vmem:[#allocation105_spill] sm:$0xff] %v5354_v33  ;;  %v864_v37 = vsel %vm451_vm0, %v5352_v18, -inf  ;;  %v968_v34 = vsel %vm451_vm0, %v5354_v33, -inf  ;;  %v5377_v33 = vpop.xlane.xlu1 %2244 }
 0x130   : > { %v5363_v61 = vpop.f32.mrf.mxu0  ;;  %v865_v62 = vmax.f32 %v5345_v54, %v864_v37  ;;  %v5366_v56 = vpop.f32.mrf.mxu1  ;;  %v969_v60 = vmax.f32 %v5348_v15, %v968_v34  ;;  %8457 = vst [vmem:[#allocation111_spill] sm:$0xff] %v5377_v33 }
 0x131   : > { %8453 = vst [vmem:[#allocation107_spill] sm:$0xff] %v5363_v61  ;;  %8454 = vst [vmem:[#allocation108_spill] sm:$0xff] %v5366_v56 }
 0x132   : > { %966 = vmax.xlane.f32.xlu0 %v965_v32  ;;  %866 = vmax.xlane.f32.xlu1 %v865_v62  ;;  %v5368_v29 = vpop.f32.mrf.mxu0  ;;  %v5370_v2 = vpop.f32.mrf.mxu1 }
 0x133   : > { %8455 = vst [vmem:[#allocation109_spill] sm:$0xff] %v5368_v29  ;;  %8456 = vst [vmem:[#allocation110_spill] sm:$0xff] %v5370_v2  ;;  %v868_v18 = vsel %vm451_vm0, %v5368_v29, -inf  ;;  %v972_v57 = vsel %vm451_vm0, %v5370_v2, -inf  ;;  %v5384_v62 = vpop.xlane.xlu0 %2248 }
 0x134   : > { %v869_v37 = vmax.f32 %v5363_v61, %v868_v18  ;;  %v5380_v54 = vpop.f32.mrf.mxu0  ;;  %v5382_v32 = vpop.f32.mrf.mxu1  ;;  %8460 = vst [vmem:[#allocation114_spill] sm:$0xff] %v5384_v62  ;;  %v973_v42 = vmax.f32 %v5366_v56, %v972_v57 }
 0x135   : > { %8458 = vst [vmem:[#allocation112_spill] sm:$0xff] %v5380_v54  ;;  %8459 = vst [vmem:[#allocation113_spill] sm:$0xff] %v5382_v32  ;;  %v5400_v62 = vpop.xlane.xlu1 %2252 }
 0x136   : > { %970 = vmax.xlane.f32.xlu1 %v969_v60  ;;  %870 = vmax.xlane.f32.xlu0 %v869_v37  ;;  %v5387_v34 = vpop.f32.mrf.mxu0  ;;  %v5389_v29 = vpop.f32.mrf.mxu1  ;;  %8465 = vst [vmem:[#allocation119_spill] sm:$0xff] %v5400_v62 }
 0x137   : > { %8461 = vst [vmem:[#allocation115_spill] sm:$0xff] %v5387_v34  ;;  %8462 = vst [vmem:[#allocation116_spill] sm:$0xff] %v5389_v29  ;;  %v872_v2 = vsel %vm451_vm0, %v5387_v34, -inf  ;;  %v976_v18 = vsel %vm451_vm0, %v5389_v29, -inf  ;;  %v5411_v29 = vpop.xlane.xlu0 %2256 }
 0x138   : > { %v873_v61 = vmax.f32 %v5380_v54, %v872_v2  ;;  %v5396_v15 = vpop.f32.mrf.mxu0  ;;  %v5398_v35 = vpop.f32.mrf.mxu1  ;;  %v977_v57 = vmax.f32 %v5382_v32, %v976_v18  ;;  %8468 = vst [vmem:[#allocation122_spill] sm:$0xff] %v5411_v29 }
 0x139   : > { %8463 = vst [vmem:[#allocation117_spill] sm:$0xff] %v5396_v15  ;;  %8464 = vst [vmem:[#allocation118_spill] sm:$0xff] %v5398_v35 }
 0x13a   : > { %974 = vmax.xlane.f32.xlu0 %v973_v42  ;;  %874 = vmax.xlane.f32.xlu1 %v873_v61  ;;  %v5403_v60 = vpop.f32.mrf.mxu0  ;;  %v5405_v37 = vpop.f32.mrf.mxu1 }
 0x13b   : > { %8466 = vst [vmem:[#allocation120_spill] sm:$0xff] %v5403_v60  ;;  %8467 = vst [vmem:[#allocation121_spill] sm:$0xff] %v5405_v37  ;;  %v876_v34 = vsel %vm451_vm0, %v5403_v60, -inf  ;;  %v980_v2 = vsel %vm451_vm0, %v5405_v37, -inf  ;;  %v5427_v37 = vpop.xlane.xlu1 %2260 }
 0x13c   : > { %v877_v54 = vmax.f32 %v5396_v15, %v876_v34  ;;  %v5414_v56 = vpop.f32.mrf.mxu0  ;;  %v5416_v28 = vpop.f32.mrf.mxu1  ;;  %v981_v42 = vmax.f32 %v5398_v35, %v980_v2  ;;  %8473 = vst [vmem:[#allocation127_spill] sm:$0xff] %v5427_v37 }
 0x13d   : > { %8469 = vst [vmem:[#allocation123_spill] sm:$0xff] %v5414_v56  ;;  %8470 = vst [vmem:[#allocation124_spill] sm:$0xff] %v5416_v28 }
 0x13e   : > { %978 = vmax.xlane.f32.xlu1 %v977_v57  ;;  %878 = vmax.xlane.f32.xlu0 %v877_v54  ;;  %v5419_v61 = vpop.f32.mrf.mxu0  ;;  %v5421_v18 = vpop.f32.mrf.mxu1 }
 0x13f   : > { %8471 = vst [vmem:[#allocation125_spill] sm:$0xff] %v5419_v61  ;;  %8472 = vst [vmem:[#allocation126_spill] sm:$0xff] %v5421_v18  ;;  %v880_v60 = vsel %vm451_vm0, %v5419_v61, -inf  ;;  %v984_v29 = vsel %vm451_vm0, %v5421_v18, -inf  ;;  %v5434_v57 = vpop.xlane.xlu0 %2264 }
 0x140   : > { %v881_v34 = vmax.f32 %v5414_v56, %v880_v60  ;;  %v5430_v15 = vpop.f32.mrf.mxu0  ;;  %v5432_v32 = vpop.f32.mrf.mxu1  ;;  %8476 = vst [vmem:[#allocation130_spill] sm:$0xff] %v5434_v57  ;;  %v985_v54 = vmax.f32 %v5416_v28, %v984_v29 }
 0x141   : > { %8474 = vst [vmem:[#allocation128_spill] sm:$0xff] %v5430_v15  ;;  %8475 = vst [vmem:[#allocation129_spill] sm:$0xff] %v5432_v32  ;;  %v5450_v57 = vpop.xlane.xlu1 %2268 }
 0x142   : > { %982 = vmax.xlane.f32.xlu0 %v981_v42  ;;  %882 = vmax.xlane.f32.xlu1 %v881_v34  ;;  %v5437_v2 = vpop.f32.mrf.mxu0  ;;  %v5439_v61 = vpop.f32.mrf.mxu1  ;;  %8481 = vst [vmem:[#allocation135_spill] sm:$0xff] %v5450_v57 }
 0x143   : > { %8477 = vst [vmem:[#allocation131_spill] sm:$0xff] %v5437_v2  ;;  %8478 = vst [vmem:[#allocation132_spill] sm:$0xff] %v5439_v61  ;;  %v884_v18 = vsel %vm451_vm0, %v5437_v2, -inf  ;;  %v988_v60 = vsel %vm451_vm0, %v5439_v61, -inf  ;;  %v5461_v61 = vpop.xlane.xlu0 %2622 }
 0x144   : > { %v885_v56 = vmax.f32 %v5430_v15, %v884_v18  ;;  %v5446_v35 = vpop.f32.mrf.mxu0  ;;  %v5448_v0 = vpop.f32.mrf.mxu1  ;;  %v989_v29 = vmax.f32 %v5432_v32, %v988_v60  ;;  %8484 = vst [vmem:[#allocation138_spill] sm:$0xff] %v5461_v61 }
 0x145   : > { %8479 = vst [vmem:[#allocation133_spill] sm:$0xff] %v5446_v35  ;;  %8480 = vst [vmem:[#allocation134_spill] sm:$0xff] %v5448_v0 }
 0x146   : > { %986 = vmax.xlane.f32.xlu1 %v985_v54  ;;  %886 = vmax.xlane.f32.xlu0 %v885_v56  ;;  %v5453_v42 = vpop.f32.mrf.mxu0  ;;  %v5455_v34 = vpop.f32.mrf.mxu1 }
 0x147   : > { %8482 = vst [vmem:[#allocation136_spill] sm:$0xff] %v5453_v42  ;;  %8483 = vst [vmem:[#allocation137_spill] sm:$0xff] %v5455_v34  ;;  %v888_v2 = vsel %vm451_vm0, %v5453_v42, -inf  ;;  %v992_v18 = vsel %vm451_vm0, %v5455_v34, -inf }
 0x148   : > { %v889_v15 = vmax.f32 %v5446_v35, %v888_v2  ;;  %v5464_v28 = vpop.f32.mrf.mxu0  ;;  %v5466_v47 = vpop.f32.mrf.mxu1  ;;  %v993_v56 = vmax.f32 %v5448_v0, %v992_v18 }
 0x149   : > { %8485 = vst [vmem:[#allocation139_spill] sm:$0xff] %v5464_v28  ;;  %8486 = vst [vmem:[#allocation140_spill] sm:$0xff] %v5466_v47  ;;  %v5477_v2 = vpop.xlane.xlu1 %2626 }
 0x14a   : > { %990 = vmax.xlane.f32.xlu0 %v989_v29  ;;  %890 = vmax.xlane.f32.xlu1 %v889_v15  ;;  %v5469_v54 = vpop.f32.mrf.mxu0  ;;  %v5471_v60 = vpop.f32.mrf.mxu1  ;;  %8489 = vst [vmem:[#allocation143_spill] sm:$0xff] %v5477_v2 }
 0x14b   : > { %8487 = vst [vmem:[#allocation141_spill] sm:$0xff] %v5469_v54  ;;  %8488 = vst [vmem:[#allocation142_spill] sm:$0xff] %v5471_v60  ;;  %v892_v42 = vsel %vm451_vm0, %v5469_v54, -inf  ;;  %v996_v61 = vsel %vm451_vm0, %v5471_v60, -inf  ;;  %v5484_v15 = vpop.xlane.xlu0 %2630 }
 0x14c   : > { %v893_v34 = vmax.f32 %v5464_v28, %v892_v42  ;;  %v5480_v35 = vpop.f32.mrf.mxu0  ;;  %v5482_v18 = vpop.f32.mrf.mxu1  ;;  %8492 = vst [vmem:[#allocation146_spill] sm:$0xff] %v5484_v15  ;;  %v997_v29 = vmax.f32 %v5466_v47, %v996_v61  ;;  %v4265_v61 = vld [vmem:[%s4376_s29 + $0x198] sm:$0xff] }
 0x14d   : > { %8490 = vst [vmem:[#allocation144_spill] sm:$0xff] %v5480_v35  ;;  %8491 = vst [vmem:[#allocation145_spill] sm:$0xff] %v5482_v18 }
 0x14e   : > { %994 = vmax.xlane.f32.xlu1 %v993_v56  ;;  %894 = vmax.xlane.f32.xlu0 %v893_v34  ;;  %v5487_v0 = vpop.f32.mrf.mxu0  ;;  %v5489_v54 = vpop.f32.mrf.mxu1  ;;  %v5502_v34 = vsub.f32 %v4265_v61, %v5161_v11  ;;  %v4266_v61 = vld [vmem:[%s4376_s29 + $0x190] sm:$0xff] }
 0x14f   : > { %8493 = vst [vmem:[#allocation147_spill] sm:$0xff] %v5487_v0  ;;  %8494 = vst [vmem:[#allocation148_spill] sm:$0xff] %v5489_v54  ;;  %v896_v60 = vsel %vm451_vm0, %v5487_v0, -inf  ;;  %v1000_v42 = vsel %vm451_vm0, %v5489_v54, -inf  ;;  %v5504_v56 = vpop.xlane.xlu1 %2634  ;;  %v5515_v32 = vpop.xlane.xlu0 %2638  ;;  %v5519_v9 = vsub.f32 %v4266_v61, %v5161_v11 }
 0x150   : > { %v897_v2 = vmax.f32 %v5480_v35, %v896_v60  ;;  %v5496_v28 = vpop.f32.mrf.mxu0  ;;  %v5498_v15 = vpop.f32.mrf.mxu1  ;;  %8497 = vst [vmem:[#allocation151_spill] sm:$0xff] %v5502_v34  ;;  %8498 = vst [vmem:[#allocation152_spill] sm:$0xff] %v5504_v56  ;;  %v1001_v47 = vmax.f32 %v5482_v18, %v1000_v42  ;;  %v2522_v56 = vmul.f32 1.442695, %v5502_v34  ;;  %v4267_v18 = vld [vmem:[%s4376_s29 + $0x1b8] sm:$0xff] }
 0x151   : > { %8495 = vst [vmem:[#allocation149_spill] sm:$0xff] %v5496_v28  ;;  %8496 = vst [vmem:[#allocation150_spill] sm:$0xff] %v5498_v15 }
 0x152   : > { %998 = vmax.xlane.f32.xlu0 %v997_v29  ;;  %898 = vmax.xlane.f32.xlu1 %v897_v2  ;;  %v5507_v0 = vpop.f32.mrf.mxu0  ;;  %v5509_v54 = vpop.f32.mrf.mxu1  ;;  %8501 = vst [vmem:[#allocation155_spill] sm:$0xff] %v5515_v32  ;;  %8502 = vst [vmem:[#allocation156_spill] sm:$0xff] %v5519_v9  ;;  %4061 = vpow2.f32 %v2522_v56 }
 0x153   : > { %8499 = vst [vmem:[#allocation153_spill] sm:$0xff] %v5507_v0  ;;  %8500 = vst [vmem:[#allocation154_spill] sm:$0xff] %v5509_v54  ;;  %v900_v60 = vsel %vm451_vm0, %v5507_v0, -inf  ;;  %v1004_v35 = vsel %vm451_vm0, %v5509_v54, -inf  ;;  %v5529_v0 = vsub.f32 %v4267_v18, %v5175_v7  ;;  %v5540_v34 = vpop.xlane.xlu1 %2642  ;;  %v2520_v18 = vmul.f32 1.442695, %v5519_v9 }
 0x154   : > { %v901_v29 = vmax.f32 %v5496_v28, %v900_v60  ;;  %v5522_v2 = vpop.f32.mrf.mxu0  ;;  %v5524_v42 = vpop.f32.mrf.mxu1  ;;  %v1005_v54 = vmax.f32 %v5498_v15, %v1004_v35  ;;  %8507 = vst [vmem:[#allocation161_spill] sm:$0xff] %v5540_v34  ;;  %v4268_v28 = vld [vmem:[%s4376_s29 + $0x1b0] sm:$0xff] }
 0x155   : > { %8503 = vst [vmem:[#allocation157_spill] sm:$0xff] %v5524_v42  ;;  %8504 = vst [vmem:[#allocation158_spill] sm:$0xff] %v5529_v0  ;;  %v5545_v35 = vsub.f32 %v4268_v28, %v5175_v7  ;;  %v5557_v34 = vpop.xlane.xlu0 %2646  ;;  %4063 = vpow2.f32 %v2520_v18 }
 0x156   : > { %1002 = vmax.xlane.f32.xlu1 %v1001_v47  ;;  %902 = vmax.xlane.f32.xlu0 %v901_v29  ;;  %v5532_v61 = vpop.f32.mrf.mxu0  ;;  %v5534_v11 = vpop.f32.mrf.mxu1  ;;  %8511 = vst [vmem:[#allocation165_spill] sm:$0xff] %v5557_v34 }
 0x157   : > { %8505 = vst [vmem:[#allocation159_spill] sm:$0xff] %v5532_v61  ;;  %8506 = vst [vmem:[#allocation160_spill] sm:$0xff] %v5534_v11  ;;  %v904_v60 = vsel %vm451_vm0, %v5532_v61, -inf  ;;  %v1008_v32 = vsel %vm451_vm0, %v5534_v11, -inf  ;;  %v2530_v61 = vmul.f32 1.442695, %v5529_v0  ;;  %v5555_v11 = vsub.f32 %v4269_v26, %v5200_v45  ;;  %v5583_v18 = vpop.xlane.xlu1 %2650 }
 0x158   : > { %8508 = vst [vmem:[#allocation162_spill] sm:$0xff] %v5545_v35  ;;  %v905_v47 = vmax.f32 %v5522_v2, %v904_v60  ;;  %v5548_v29 = vpop.f32.mrf.mxu0  ;;  %v5550_v15 = vpop.f32.mrf.mxu1  ;;  %v1009_v9 = vmax.f32 %v5524_v42, %v1008_v32  ;;  %v2528_v26 = vmul.f32 1.442695, %v5545_v35  ;;  %v4270_v0 = vld [vmem:[%s4376_s29 + $0x1d0] sm:$0xff]  ;;  %v4271_v42 = vld [vmem:[%s4376_s29 + $0x1f8] sm:$0xff]  ;;  %8516 = vst [vmem:[#allocation170_spill] sm:$0xff] %v5583_v18 }
 0x159   : > { %8509 = vst [vmem:[#allocation163_spill] sm:$0xff] %v5550_v15  ;;  %8510 = vst [vmem:[#allocation164_spill] sm:$0xff] %v5555_v11  ;;  %v5571_v34 = vsub.f32 %v4270_v0, %v5200_v45  ;;  %4065 = vpow2.f32 %v2530_v61  ;;  %v4272_v18 = vld [vmem:[%s4376_s29 + $0x1f0] sm:$0xff] }
 0x15a   : > { %1006 = vmax.xlane.f32.xlu0 %v1005_v54  ;;  %906 = vmax.xlane.f32.xlu1 %v905_v47  ;;  %v5560_v28 = vpop.f32.mrf.mxu0  ;;  %v5562_v60 = vpop.f32.mrf.mxu1  ;;  %4067 = vpow2.f32 %v2528_v26 }
 0x15b   : > { %8512 = vst [vmem:[#allocation166_spill] sm:$0xff] %v5560_v28  ;;  %8513 = vst [vmem:[#allocation167_spill] sm:$0xff] %v5562_v60  ;;  %v908_v56 = vsel %vm451_vm0, %v5560_v28, -inf  ;;  %v1012_v7 = vsel %vm451_vm0, %v5562_v60, -inf  ;;  %v2538_v28 = vmul.f32 1.442695, %v5555_v11  ;;  %v5581_v60 = vsub.f32 %v4271_v42, %v5227_v51  ;;  %v5594_v11 = vpop.xlane.xlu0 %2654 }
 0x15c   : > { %8514 = vst [vmem:[#allocation168_spill] sm:$0xff] %v5571_v34  ;;  %v909_v32 = vmax.f32 %v5548_v29, %v908_v56  ;;  %v5574_v54 = vpop.f32.mrf.mxu0  ;;  %v5576_v47 = vpop.f32.mrf.mxu1  ;;  %v1013_v35 = vmax.f32 %v5550_v15, %v1012_v7  ;;  %8519 = vst [vmem:[#allocation173_spill] sm:$0xff] %v5594_v11  ;;  %v2536_v42 = vmul.f32 1.442695, %v5571_v34  ;;  %v4273_v15 = vld [vmem:[%s4376_s29 + $0x218] sm:$0xff] }
 0x15d   : > { %8515 = vst [vmem:[#allocation169_spill] sm:$0xff] %v5581_v60  ;;  %4069 = vpow2.f32 %v2538_v28 }
 0x15e   : > { %1010 = vmax.xlane.f32.xlu1 %v1009_v9  ;;  %910 = vmax.xlane.f32.xlu0 %v909_v32  ;;  %v5586_v0 = vpop.f32.mrf.mxu0  ;;  %v5588_v56 = vpop.f32.mrf.mxu1  ;;  %v5599_v9 = vsub.f32 %v4272_v18, %v5227_v51  ;;  %4071 = vpow2.f32 %v2536_v42  ;;  %v4274_v51 = vld [vmem:[%s4376_s29 + $0x210] sm:$0xff] }
 0x15f   : > { %8517 = vst [vmem:[#allocation171_spill] sm:$0xff] %v5586_v0  ;;  %8518 = vst [vmem:[#allocation172_spill] sm:$0xff] %v5588_v56  ;;  %v912_v61 = vsel %vm451_vm0, %v5586_v0, -inf  ;;  %v1016_v45 = vsel %vm451_vm0, %v5588_v56, -inf  ;;  %v2546_v0 = vmul.f32 1.442695, %v5581_v60  ;;  %v5607_v56 = vsub.f32 %v4273_v15, %v5250_v50  ;;  %v5629_v42 = vpop.xlane.xlu0 %2662 }
 0x160   : > { %8520 = vst [vmem:[#allocation174_spill] sm:$0xff] %v5599_v9  ;;  %v913_v7 = vmax.f32 %v5574_v54, %v912_v61  ;;  %v5602_v32 = vpop.f32.mrf.mxu0  ;;  %v1017_v26 = vmax.f32 %v5576_v47, %v1016_v45  ;;  %v5614_v61 = vpop.xlane.xlu1 %2658  ;;  %v2544_v28 = vmul.f32 1.442695, %v5599_v9  ;;  %v5619_v60 = vsub.f32 %v4274_v51, %v5250_v50  ;;  %8526 = vst [vmem:[#allocation180_spill] sm:$0xff] %v5629_v42 }
 0x161   : > { %8521 = vst [vmem:[#allocation175_spill] sm:$0xff] %v5602_v32  ;;  %8522 = vst [vmem:[#allocation176_spill] sm:$0xff] %v5607_v56  ;;  %4073 = vpow2.f32 %v2546_v0 }
 0x162   : > { %1014 = vmax.xlane.f32.xlu0 %v1013_v35  ;;  %914 = vmax.xlane.f32.xlu1 %v913_v7  ;;  %v5610_v11 = vpop.f32.mrf.mxu0  ;;  %8523 = vst [vmem:[#allocation177_spill] sm:$0xff] %v5614_v61  ;;  %8524 = vst [vmem:[#allocation178_spill] sm:$0xff] %v5619_v60  ;;  %v2554_v35 = vmul.f32 1.442695, %v5607_v56  ;;  %v4275_v7 = vld [vmem:[%s4376_s29 + $0x238] sm:$0xff]  ;;  %v4062_v61 = vpop.eup %4061  ;;  %4075 = vpow2.f32 %v2544_v28 }
 0x163   : > { %v916_v18 = vsel %vm451_vm0, %v5610_v11, -inf  ;;  %v5627_v34 = vsub.f32 %v4275_v7, %v5277_v41  ;;  %v2552_v0 = vmul.f32 1.442695, %v5619_v60  ;;  %v4064_v56 = vpop.eup %4063  ;;  %v2720_v28 = vsel %vm451_vm0, %v4062_v61, 0.0 }
 0x164   : > { %v917_v15 = vmax.f32 %v5602_v32, %v916_v18  ;;  %v5622_v45 = vpop.f32.mrf.mxu0  ;;  %v4276_v18 = vld [vmem:[%s4376_s29 + $0x230] sm:$0xff]  ;;  %4077 = vpow2.f32 %v2554_v35  ;;  %v5649_v32 = vpop.xlane.xlu0 %2670 }
 0x165   : > { %8525 = vst [vmem:[#allocation179_spill] sm:$0xff] %v5627_v34  ;;  %v5638_v50 = vsub.f32 %v4276_v18, %v5277_v41  ;;  %8531 = vst [vmem:[#allocation185_spill] sm:$0xff] %v5649_v32  ;;  %4079 = vpow2.f32 %v2552_v0  ;;  %v4278_v35 = vld [vmem:[%s4376_s29 + $0x250] sm:$0xff]  ;;  %v2721_v41 = vadd.f32 %v4064_v56, %v2720_v28 }
 0x166   : > { %1018 = vmax.xlane.f32.xlu1 %v1017_v26  ;;  %918 = vmax.xlane.f32.xlu0 %v917_v15  ;;  %v5631_v9 = vpop.f32.mrf.mxu0  ;;  %v2562_v26 = vmul.f32 1.442695, %v5627_v34  ;;  %v4277_v15 = vld [vmem:[%s4376_s29 + $0x258] sm:$0xff]  ;;  %v4066_v60 = vpop.eup %4065  ;;  %v5654_v18 = vsub.f32 %v4278_v35, %v5300_v4  ;;  %v4280_v56 = vld [vmem:[%s4376_s29 + $0x270] sm:$0xff] }
 0x167   : > { %8527 = vst [vmem:[#allocation181_spill] sm:$0xff] %v5631_v9  ;;  %v920_v51 = vsel %vm451_vm0, %v5631_v9, -inf  ;;  %8528 = vst [vmem:[#allocation182_spill] sm:$0xff] %v5638_v50  ;;  %v5644_v42 = vsub.f32 %v4277_v15, %v5300_v4  ;;  %v5647_v9 = vpop.xlane.xlu1 %2666  ;;  %v4068_v34 = vpop.eup %4067  ;;  %v4279_v15 = vld [vmem:[%s4376_s29 + $0x278] sm:$0xff] }
 0x168   : > { %v921_v7 = vmax.f32 %v5622_v45, %v920_v51  ;;  %8530 = vst [vmem:[#allocation184_spill] sm:$0xff] %v5647_v9  ;;  %v2560_v51 = vmul.f32 1.442695, %v5638_v50  ;;  %8532 = vst [vmem:[#allocation186_spill] sm:$0xff] %v5654_v18  ;;  %4081 = vpow2.f32 %v2562_v26  ;;  %v5659_v9 = vsub.f32 %v4279_v15, %v5327_v19 }
 0x169   : > { %8529 = vst [vmem:[#allocation183_spill] sm:$0xff] %v5644_v42  ;;  %v2570_v61 = vmul.f32 1.442695, %v5644_v42  ;;  %v2568_v35 = vmul.f32 1.442695, %v5654_v18  ;;  %v5667_v26 = vsub.f32 %v4280_v56, %v5327_v19  ;;  %v4281_v42 = vld [vmem:[%s4376_s29 + $0x298] sm:$0xff] }
 0x16a   : > { %922 = vmax.xlane.f32.xlu1 %v921_v7  ;;  %8533 = vst [vmem:[#allocation187_spill] sm:$0xff] %v5659_v9  ;;  %v2728_v7 = vsel %vm451_vm0, %v4066_v60, 0.0  ;;  %v4070_v0 = vpop.eup %4069  ;;  %4083 = vpow2.f32 %v2560_v51  ;;  %v2578_v15 = vmul.f32 1.442695, %v5659_v9  ;;  %v5672_v60 = vsub.f32 %v4281_v42, %v5350_v10  ;;  %v5675_v51 = vpop.xlane.xlu0 %2678  ;;  %v4283_v9 = vld [vmem:[%s4376_s29 + $0x2b8] sm:$0xff] }
 0x16b   : > { %v5662_v32 = vpop.xlane.xlu1 %2674  ;;  %8535 = vst [vmem:[#allocation189_spill] sm:$0xff] %v5667_v26  ;;  %v2729_v28 = vadd.f32 %v4068_v34, %v2728_v7  ;;  %v4072_v4 = vpop.eup %4071  ;;  %4085 = vpow2.f32 %v2570_v61  ;;  %8537 = vst [vmem:[#allocation191_spill] sm:$0xff] %v5675_v51  ;;  %v2576_v56 = vmul.f32 1.442695, %v5667_v26  ;;  %v4282_v34 = vld [vmem:[%s4376_s29 + $0x290] sm:$0xff] }
 0x16c   : > { %8534 = vst [vmem:[#allocation188_spill] sm:$0xff] %v5662_v32  ;;  %8536 = vst [vmem:[#allocation190_spill] sm:$0xff] %v5672_v60  ;;  %4087 = vpow2.f32 %v2568_v35  ;;  %v5680_v61 = vsub.f32 %v4282_v34, %v5350_v10  ;;  %v2586_v42 = vmul.f32 1.442695, %v5672_v60  ;;  %v4284_v26 = vld [vmem:[%s4376_s29 + $0x2b0] sm:$0xff] }
 0x16d   : > { %4089 = vpow2.f32 %v2578_v15  ;;  %v5692_v34 = vsub.f32 %v4284_v26, %v5377_v33 }
 0x16e   : > { %2722 = vadd.xlane.f32.xlu1 %v2721_v41  ;;  %v2736_v41 = vsel %vm451_vm0, %v4070_v0, 0.0  ;;  %v4074_v32 = vpop.eup %4073  ;;  %8538 = vst [vmem:[#allocation192_spill] sm:$0xff] %v5680_v61  ;;  %v5685_v0 = vsub.f32 %v4283_v9, %v5377_v33  ;;  %4091 = vpow2.f32 %v2576_v56  ;;  %v2584_v15 = vmul.f32 1.442695, %v5680_v61  ;;  %v4286_v56 = vld [vmem:[%s4376_s29 + $0x2d0] sm:$0xff] }
 0x16f   : > { %v2737_v7 = vadd.f32 %v4072_v4, %v2736_v41  ;;  %v4076_v19 = vpop.eup %4075  ;;  %v2744_v51 = vsel %vm451_vm0, %v4074_v32, 0.0  ;;  %8541 = vst [vmem:[#allocation195_spill] sm:$0xff] %v5692_v34  ;;  %v5694_v4 = vpop.xlane.xlu0 %2686  ;;  %v4285_v41 = vld [vmem:[%s4376_s29 + $0x2d8] sm:$0xff]  ;;  %4093 = vpow2.f32 %v2586_v42  ;;  %v2592_v26 = vmul.f32 1.442695, %v5692_v34 }
 0x170   : > { %8539 = vst [vmem:[#allocation193_spill] sm:$0xff] %v5685_v0  ;;  %8542 = vst [vmem:[#allocation196_spill] sm:$0xff] %v5694_v4  ;;  %v5699_v9 = vsub.f32 %v4285_v41, %v5400_v62  ;;  %v2745_v32 = vadd.f32 %v4076_v19, %v2744_v51  ;;  %v5706_v33 = vsub.f32 %v4286_v56, %v5400_v62  ;;  %4095 = vpow2.f32 %v2584_v15  ;;  %v4287_v51 = vld [vmem:[%s4376_s29 + $0x2f8] sm:$0xff]  ;;  %v4288_v56 = vld [vmem:[%s4376_s29 + $0x2f0] sm:$0xff] }
 0x171   : > { %v4078_v35 = vpop.eup %4077  ;;  %v5713_v42 = vsub.f32 %v4287_v51, %v5427_v37  ;;  %v5720_v62 = vsub.f32 %v4288_v56, %v5427_v37 }
 0x172   : > { %2730 = vadd.xlane.f32.xlu1 %v2729_v28  ;;  %v5688_v28 = vpop.xlane.xlu1 %2682  ;;  %8543 = vst [vmem:[#allocation197_spill] sm:$0xff] %v5699_v9  ;;  %v4080_v10 = vpop.eup %4079  ;;  %8544 = vst [vmem:[#allocation198_spill] sm:$0xff] %v5706_v33  ;;  %v2602_v19 = vmul.f32 1.442695, %v5699_v9  ;;  %v2600_v15 = vmul.f32 1.442695, %v5706_v33 }
 0x173   : > { %8540 = vst [vmem:[#allocation194_spill] sm:$0xff] %v5688_v28  ;;  %v2752_v28 = vsel %vm451_vm0, %v4078_v35, 0.0  ;;  %8546 = vst [vmem:[#allocation200_spill] sm:$0xff] %v5713_v42  ;;  %v8568_v9 = vld [vmem:[#allocation97_spill] sm:$0xff]  ;;  %v8570_v33 = vld [vmem:[#allocation104_spill] sm:$0xff] }
 0x174   : > { %v2753_v35 = vadd.f32 %v4080_v10, %v2752_v28  ;;  %8548 = vst [vmem:[#allocation202_spill] sm:$0xff] %v5720_v62  ;;  %v2610_v10 = vmul.f32 1.442695, %v5713_v42  ;;  %v817_v42 = vlaneseq }
 0x175   : > { %v4082_v60 = vpop.eup %4081 }
 0x176   : > { %2738 = vadd.xlane.f32.xlu1 %v2737_v7  ;;  %v2594_v7 = vmul.f32 1.442695, %v5685_v0  ;;  %v5708_v4 = vpop.xlane.xlu1 %2690  ;;  %v2760_v0 = vsel %vm451_vm0, %v4082_v60, 0.0 }
 0x177   : > { %8545 = vst [vmem:[#allocation199_spill] sm:$0xff] %v5708_v4  ;;  %v4084_v41 = vpop.eup %4083  ;;  %v4289_v4 = vld [vmem:[%s4376_s29 + $0x318] sm:$0xff] }
 0x178   : > { %4097 = vpow2.f32 %v2594_v7  ;;  %v4086_v34 = vpop.eup %4085  ;;  %v5725_v51 = vsub.f32 %v4289_v4, %v5450_v57  ;;  %v2761_v28 = vadd.f32 %v4084_v41, %v2760_v0  ;;  %v4290_v4 = vld [vmem:[%s4376_s29 + $0x310] sm:$0xff] }
 0x179   : > { %4099 = vpow2.f32 %v2592_v26  ;;  %v4088_v7 = vpop.eup %4087  ;;  %v2768_v60 = vsel %vm451_vm0, %v4086_v34, 0.0 }
 0x17a   : > { %2746 = vadd.xlane.f32.xlu1 %v2745_v32  ;;  %v5715_v32 = vpop.xlane.xlu0 %2694  ;;  %8549 = vst [vmem:[#allocation203_spill] sm:$0xff] %v5725_v51  ;;  %4101 = vpow2.f32 %v2602_v19  ;;  %v4090_v56 = vpop.eup %4089  ;;  %v2618_v26 = vmul.f32 1.442695, %v5725_v51  ;;  %v5737_v19 = vsub.f32 %v4290_v4, %v5450_v57  ;;  %v2769_v0 = vadd.f32 %v4088_v7, %v2768_v60 }
 0x17b   : > { %8547 = vst [vmem:[#allocation201_spill] sm:$0xff] %v5715_v32  ;;  %v5729_v32 = vpop.xlane.xlu1 %2698  ;;  %4103 = vpow2.f32 %v2600_v15  ;;  %v4092_v41 = vpop.eup %4091  ;;  %v2776_v34 = vsel %vm451_vm0, %v4090_v56, 0.0  ;;  %v5746_v57 = vand.u32 127, %v817_v42 }
 0x17c   : > { %8550 = vst [vmem:[#allocation204_spill] sm:$0xff] %v5729_v32  ;;  %4105 = vpow2.f32 %v2610_v10  ;;  %8552 = vst [vmem:[#allocation206_spill] sm:$0xff] %v5737_v19  ;;  %v4094_v32 = vpop.eup %4093  ;;  %v2616_v15 = vmul.f32 1.442695, %v5737_v19  ;;  %v2777_v51 = vadd.f32 %v4092_v41, %v2776_v34 }
 0x17d   : > { %v2784_v4 = vsel %vm451_vm0, %v4094_v32, 0.0 }
 0x17e   : > { %2754 = vadd.xlane.f32.xlu1 %v2753_v35  ;;  %v2608_v35 = vmul.f32 1.442695, %v5720_v62  ;;  %v5733_v37 = vpop.xlane.xlu0 %2702 }
 0x17f   : > { %8551 = vst [vmem:[#allocation205_spill] sm:$0xff] %v5733_v37  ;;  %v4096_v37 = vpop.eup %4095 }
 0x180   : > { %4107 = vpow2.f32 %v2608_v35  ;;  %v2785_v56 = vadd.f32 %v4096_v37, %v2784_v4 }
 0x181   : > { %4109 = vpow2.f32 %v2618_v26  ;;  %v5751_v26 = vadd.s32 128, %v5746_v57 }
 0x182   : > { %2762 = vadd.xlane.f32.xlu1 %v2761_v28  ;;  %v5740_v28 = vpop.xlane.xlu1 %2706  ;;  %v5743_v10 = vpop.xlane.xlu0 %2710  ;;  %4111 = vpow2.f32 %v2616_v15 }
 0x183   : > { %8553 = vst [vmem:[#allocation207_spill] sm:$0xff] %v5740_v28  ;;  %8554 = vst [vmem:[#allocation208_spill] sm:$0xff] %v5743_v10 }
 0x185   : > { %v4098_v7 = vpop.eup %4097 }
 0x186   : > { %2770 = vadd.xlane.f32.xlu1 %v2769_v0  ;;  %v4100_v60 = vpop.eup %4099  ;;  %v5748_v0 = vpop.xlane.xlu1 %2714  ;;  %v2792_v41 = vsel %vm451_vm0, %v4098_v7, 0.0 }
 0x187   : > { %v4102_v35 = vpop.eup %4101  ;;  %8555 = vst [vmem:[#allocation209_spill] sm:$0xff] %v5748_v0  ;;  %v2793_v42 = vadd.f32 %v4100_v60, %v2792_v41 }
 0x188   : > { %v4104_v10 = vpop.eup %4103  ;;  %v2800_v32 = vsel %vm451_vm0, %v4102_v35, 0.0 }
 0x189   : > { %v2801_v28 = vadd.f32 %v4104_v10, %v2800_v32 }
 0x18a   : > { %2778 = vadd.xlane.f32.xlu1 %v2777_v51  ;;  %v4106_v51 = vpop.eup %4105 }
 0x18d   : > { %v4108_v0 = vpop.eup %4107 }
 0x18e   : > { %2786 = vadd.xlane.f32.xlu1 %v2785_v56  ;;  %v4110_v19 = vpop.eup %4109 }
 0x18f   : > { %v823_v34 = vpop.xlane.xlu0 %822  ;;  %v4112_v32 = vpop.eup %4111 }
 0x190   : > { %vm1020_vm2 = vcmp.eq.f32.partialorder %v5165_v49, %v823_v34  ;;  %vm1021_vm3 = vcmp.eq.f32.partialorder %v5171_v22, %v823_v34  ;;  %v2808_v49 = vsel %vm451_vm0, %v4106_v51, 0.0 }
 0x191   : > { %v1120_v37 = vsel %vm1020_vm2, %v5746_v57, 200  ;;  %v1121_v15 = vsel %vm1021_vm3, %v5751_v26, 200  ;;  %v2809_v34 = vadd.f32 %v4108_v0, %v2808_v49 }
 0x192   : > { %v1220_v4 = vsel %vm451_vm0, %v1121_v15, 2147483647  ;;  %2794 = vadd.xlane.f32.xlu1 %v2793_v42  ;;  %v2816_v42 = vsel %vm451_vm0, %v4110_v19, 0.0 }
 0x193   : > { %vm1221_vm4 = vcmp.lt.s32.totalorder %v1120_v37, %v1220_v4  ;;  %v931_v7 = vpop.xlane.xlu1 %930  ;;  %v927_v56 = vpop.xlane.xlu0 %926 }
 0x194   : > { %vm1075_vm5 = vcmp.eq.f32.partialorder %v5186_v46, %v931_v7  ;;  %vm1072_vm6 = vcmp.eq.f32.partialorder %v5167_v40, %v927_v56  ;;  %vm1073_vm7 = vcmp.eq.f32.partialorder %v5169_v6, %v927_v56  ;;  %vm1074_vm8 = vcmp.eq.f32.partialorder %v5179_v1, %v931_v7 }
 0x195   : > { %v1172_v22 = vsel %vm1072_vm6, %v5746_v57, 200  ;;  %v1173_v60 = vsel %vm1073_vm7, %v5751_v26, 200  ;;  %v1175_v35 = vsel %vm1075_vm5, %v5751_v26, 200  ;;  %v5769_v10 = vsel %vm1221_vm4, %v1120_v37, %v1220_v4 }
 0x196   : > { %v1662_v41 = vsel %vm451_vm0, %v1173_v60, 2147483647  ;;  %2802 = vadd.xlane.f32.xlu1 %v2801_v28  ;;  %v1224_v6 = vshra.s32 %v5769_v10, 16  ;;  %v1174_v1 = vsel %vm1074_vm8, %v5746_v57, 200  ;;  %v1679_v28 = vsel %vm451_vm0, %v1175_v35, 2147483647 }
 0x197   : > { %vm1663_vm9 = vcmp.lt.s32.totalorder %v1172_v22, %v1662_v41  ;;  %v827_v46 = vpop.xlane.xlu0 %826  ;;  %v831_v40 = vpop.xlane.xlu1 %830  ;;  %vm1680_vm15 = vcmp.lt.s32.totalorder %v1174_v1, %v1679_v28 }
 0x198   : > { %vm1022_vm10 = vcmp.eq.f32.partialorder %v5177_v3, %v827_v46  ;;  %vm1023_vm11 = vcmp.eq.f32.partialorder %v5188_v27, %v827_v46  ;;  %vm1025_vm12 = vcmp.eq.f32.partialorder %v5202_v39, %v831_v40  ;;  %vm1024_vm13 = vcmp.eq.f32.partialorder %v5192_v20, %v831_v40 }
 0x199   : > { %v1122_v51 = vsel %vm1022_vm10, %v5746_v57, 200  ;;  %v1123_v37 = vsel %vm1023_vm11, %v5751_v26, 200  ;;  %v1125_v19 = vsel %vm1025_vm12, %v5751_v26, 200  ;;  %v5783_v15 = vcvt.s32.f32 %v1224_v6 }
 0x19a   : > { %v1237_v0 = vsel %vm451_vm0, %v1123_v37, 2147483647  ;;  %2810 = vadd.xlane.f32.xlu1 %v2809_v34  ;;  %v5786_v3 = vsel %vm1663_vm9, %v1172_v22, %v1662_v41  ;;  %v2817_v20 = vadd.f32 %v4112_v32, %v2816_v42  ;;  %v1124_v7 = vsel %vm1024_vm13, %v5746_v57, 200 }
 0x19b   : > { %vm1238_vm14 = vcmp.lt.s32.totalorder %v1122_v51, %v1237_v0  ;;  %v935_v27 = vpop.xlane.xlu0 %934  ;;  %v835_v39 = vpop.xlane.xlu1 %834  ;;  %v1666_v4 = vshra.s32 %v5786_v3, 16  ;;  %1227 = vmin.xlane.f32.xlu0 %v5783_v15  ;;  %v1254_v56 = vsel %vm451_vm0, %v1125_v19, 2147483647  ;;  %v5801_v41 = vsel %vm1680_vm15, %v1174_v1, %v1679_v28 }
 0x19c   : > { %vm1077_vm1 = vcmp.eq.f32.partialorder %v5204_v24, %v935_v27  ;;  %vm1076_vm2 = vcmp.eq.f32.partialorder %v5196_v30, %v935_v27  ;;  %v5797_v60 = vsel %vm1238_vm14, %v1122_v51, %v1237_v0  ;;  %vm1027_vm3 = vcmp.eq.f32.partialorder %v5218_v59, %v835_v39 }
 0x19d   : > { %v1177_v49 = vsel %vm1077_vm1, %v5751_v26, 200  ;;  %v5795_v22 = vcvt.s32.f32 %v1666_v4  ;;  %v1241_v35 = vshra.s32 %v5797_v60, 16  ;;  %vm1255_vm4 = vcmp.lt.s32.totalorder %v1124_v7, %v1254_v56 }
 0x19e   : > { %2818 = vadd.xlane.f32.xlu1 %v2817_v20  ;;  %v1176_v46 = vsel %vm1076_vm2, %v5746_v57, 200  ;;  %v1696_v30 = vsel %vm451_vm0, %v1177_v49, 2147483647  ;;  %vm1026_vm5 = vcmp.eq.f32.partialorder %v5212_v13, %v835_v39  ;;  %v1127_v40 = vsel %vm1027_vm3, %v5751_v26, 200 }
 0x19f   : > { %1669 = vmin.xlane.f32.xlu0 %v5795_v22  ;;  %v939_v24 = vpop.xlane.xlu1 %938  ;;  %v839_v6 = vpop.xlane.xlu0 %838  ;;  %v5808_v34 = vcvt.s32.f32 %v1241_v35  ;;  %v1683_v59 = vshra.s32 %v5801_v41, 16  ;;  %v5812_v42 = vsel %vm1255_vm4, %v1124_v7, %v1254_v56  ;;  %vm1697_vm7 = vcmp.lt.s32.totalorder %v1176_v46, %v1696_v30 }
 0x1a0   : > { %vm1079_vm6 = vcmp.eq.f32.partialorder %v5220_v63, %v939_v24  ;;  %v1126_v1 = vsel %vm1026_vm5, %v5746_v57, 200  ;;  %v1271_v32 = vsel %vm451_vm0, %v1127_v40, 2147483647  ;;  %vm1078_vm8 = vcmp.eq.f32.partialorder %v5216_v55, %v939_v24 }
 0x1a1   : > { %v1179_v13 = vsel %vm1079_vm6, %v5751_v26, 200  ;;  %v5819_v28 = vcvt.s32.f32 %v1683_v59  ;;  %v1258_v51 = vshra.s32 %v5812_v42, 16  ;;  %vm1029_vm9 = vcmp.eq.f32.partialorder %v5236_v31, %v839_v6 }
 0x1a2   : > { %v5823_v63 = vsel %vm1697_vm7, %v1176_v46, %v1696_v30  ;;  %vm1272_vm10 = vcmp.lt.s32.totalorder %v1126_v1, %v1271_v32  ;;  %v1178_v0 = vsel %vm1078_vm8, %v5746_v57, 200  ;;  %v1713_v19 = vsel %vm451_vm0, %v1179_v13, 2147483647 }
 0x1a3   : > { %1244 = vmin.xlane.f32.xlu0 %v5808_v34  ;;  %v943_v37 = vpop.xlane.xlu0 %942  ;;  %vm1028_vm11 = vcmp.eq.f32.partialorder %v5229_v8, %v839_v6  ;;  %v1129_v55 = vsel %vm1029_vm9, %v5751_v26, 200  ;;  %v843_v27 = vpop.xlane.xlu1 %842  ;;  %v5830_v39 = vcvt.s32.f32 %v1258_v51  ;;  %v1700_v4 = vshra.s32 %v5823_v63, 16 }
 0x1a4   : > { %vm1081_vm12 = vcmp.eq.f32.partialorder %v5238_v52, %v943_v37  ;;  %v5834_v31 = vsel %vm1272_vm10, %v1126_v1, %v1271_v32  ;;  %vm1714_vm13 = vcmp.lt.s32.totalorder %v1178_v0, %v1713_v19  ;;  %v1128_v20 = vsel %vm1028_vm11, %v5746_v57, 200 }
 0x1a5   : > { %v1288_v7 = vsel %vm451_vm0, %v1129_v55, 2147483647  ;;  %vm1080_vm14 = vcmp.eq.f32.partialorder %v5232_v43, %v943_v37  ;;  %v1181_v8 = vsel %vm1081_vm12, %v5751_v26, 200  ;;  %v5841_v56 = vcvt.s32.f32 %v1700_v4 }
 0x1a6   : > { %v1275_v49 = vshra.s32 %v5834_v31, 16  ;;  %vm1031_vm15 = vcmp.eq.f32.partialorder %v5252_v16, %v843_v27  ;;  %v5845_v52 = vsel %vm1714_vm13, %v1178_v0, %v1713_v19  ;;  %vm1289_vm1 = vcmp.lt.s32.totalorder %v1128_v20, %v1288_v7 }
 0x1a7   : > { %1686 = vmin.xlane.f32.xlu0 %v5819_v28  ;;  %v947_v35 = vpop.xlane.xlu1 %946  ;;  %v1180_v24 = vsel %vm1080_vm14, %v5746_v57, 200  ;;  %v1730_v46 = vsel %vm451_vm0, %v1181_v8, 2147483647  ;;  %vm1030_vm2 = vcmp.eq.f32.partialorder %v5245_v12, %v843_v27  ;;  %v1131_v43 = vsel %vm1031_vm15, %v5751_v26, 200  ;;  %v847_v30 = vpop.xlane.xlu0 %846 }
 0x1a8   : > { %v5852_v40 = vcvt.s32.f32 %v1275_v49  ;;  %v1717_v6 = vshra.s32 %v5845_v52, 16  ;;  %vm1083_vm3 = vcmp.eq.f32.partialorder %v5254_v17, %v947_v35  ;;  %v5856_v16 = vsel %vm1289_vm1, %v1128_v20, %v1288_v7 }
 0x1a9   : > { %vm1731_vm4 = vcmp.lt.s32.totalorder %v1180_v24, %v1730_v46  ;;  %v1130_v59 = vsel %vm1030_vm2, %v5746_v57, 200  ;;  %v1305_v1 = vsel %vm451_vm0, %v1131_v43, 2147483647  ;;  %vm1082_vm5 = vcmp.eq.f32.partialorder %v5248_v53, %v947_v35 }
 0x1aa   : > { %v1183_v12 = vsel %vm1083_vm3, %v5751_v26, 200  ;;  %v5863_v32 = vcvt.s32.f32 %v1717_v6  ;;  %v1292_v13 = vshra.s32 %v5856_v16, 16  ;;  %vm1033_vm6 = vcmp.eq.f32.partialorder %v5268_v48, %v847_v30 }
 0x1ab   : > { %1261 = vmin.xlane.f32.xlu0 %v5830_v39  ;;  %v5867_v17 = vsel %vm1731_vm4, %v1180_v24, %v1730_v46  ;;  %vm1306_vm7 = vcmp.lt.s32.totalorder %v1130_v59, %v1305_v1  ;;  %v951_v51 = vpop.xlane.xlu0 %950  ;;  %v1182_v37 = vsel %vm1082_vm5, %v5746_v57, 200  ;;  %v1747_v0 = vsel %vm451_vm0, %v1183_v12, 2147483647  ;;  %v851_v19 = vpop.xlane.xlu1 %850 }
 0x1ac   : > { %vm1032_vm8 = vcmp.eq.f32.partialorder %v5263_v36, %v847_v30  ;;  %v1133_v53 = vsel %vm1033_vm6, %v5751_v26, 200  ;;  %v5874_v55 = vcvt.s32.f32 %v1292_v13  ;;  %v1734_v27 = vshra.s32 %v5867_v17, 16 }
 0x1ad   : > { %vm1085_vm9 = vcmp.eq.f32.partialorder %v5270_v14, %v951_v51  ;;  %v5878_v48 = vsel %vm1306_vm7, %v1130_v59, %v1305_v1  ;;  %vm1748_vm10 = vcmp.lt.s32.totalorder %v1182_v37, %v1747_v0  ;;  %v1132_v4 = vsel %vm1032_vm8, %v5746_v57, 200 }
 0x1ae   : > { %v1322_v20 = vsel %vm451_vm0, %v1133_v53, 2147483647  ;;  %vm1084_vm11 = vcmp.eq.f32.partialorder %v5266_v23, %v951_v51  ;;  %v1185_v36 = vsel %vm1085_vm9, %v5751_v26, 200  ;;  %v5885_v7 = vcvt.s32.f32 %v1734_v27 }
 0x1af   : > { %1703 = vmin.xlane.f32.xlu0 %v5841_v56  ;;  %v1309_v8 = vshra.s32 %v5878_v48, 16  ;;  %vm1035_vm12 = vcmp.eq.f32.partialorder %v5286_v44, %v851_v19  ;;  %v5889_v14 = vsel %vm1748_vm10, %v1182_v37, %v1747_v0  ;;  %vm1323_vm13 = vcmp.lt.s32.totalorder %v1132_v4, %v1322_v20  ;;  %v955_v49 = vpop.xlane.xlu1 %954  ;;  %v855_v46 = vpop.xlane.xlu0 %854 }
 0x1b0   : > { %v1184_v35 = vsel %vm1084_vm11, %v5746_v57, 200  ;;  %v1764_v24 = vsel %vm451_vm0, %v1185_v36, 2147483647  ;;  %vm1034_vm14 = vcmp.eq.f32.partialorder %v5279_v38, %v851_v19  ;;  %v1135_v23 = vsel %vm1035_vm12, %v5751_v26, 200 }
 0x1b1   : > { %v5896_v43 = vcvt.s32.f32 %v1309_v8  ;;  %v1751_v30 = vshra.s32 %v5889_v14, 16  ;;  %vm1087_vm15 = vcmp.eq.f32.partialorder %v5288_v21, %v955_v49  ;;  %v5900_v44 = vsel %vm1323_vm13, %v1132_v4, %v1322_v20 }
 0x1b2   : > { %vm1765_vm1 = vcmp.lt.s32.totalorder %v1184_v35, %v1764_v24  ;;  %v1134_v6 = vsel %vm1034_vm14, %v5746_v57, 200  ;;  %v1339_v59 = vsel %vm451_vm0, %v1135_v23, 2147483647  ;;  %vm1086_vm2 = vcmp.eq.f32.partialorder %v5282_v58, %v955_v49 }
 0x1b3   : > { %1278 = vmin.xlane.f32.xlu0 %v5852_v40  ;;  %v1187_v38 = vsel %vm1087_vm15, %v5751_v26, 200  ;;  %v5907_v1 = vcvt.s32.f32 %v1751_v30  ;;  %v1326_v12 = vshra.s32 %v5900_v44, 16  ;;  %vm1037_vm3 = vcmp.eq.f32.partialorder %v5302_v5, %v855_v46  ;;  %v959_v21 = vpop.xlane.xlu0 %958  ;;  %v859_v0 = vpop.xlane.xlu1 %858  ;;  %v8556_v5 = vld [vmem:[#allocation89_spill] sm:$0xff] }
 0x1b4   : > { %v5911_v13 = vsel %vm1765_vm1, %v1184_v35, %v1764_v24  ;;  %vm1340_vm4 = vcmp.lt.s32.totalorder %v1134_v6, %v1339_v59  ;;  %v1186_v51 = vsel %vm1086_vm2, %v5746_v57, 200  ;;  %v1781_v37 = vsel %vm451_vm0, %v1187_v38, 2147483647  ;;  %v8558_v24 = vld [vmem:[#allocation93_spill] sm:$0xff] }
 0x1b5   : > { %vm1036_vm5 = vcmp.eq.f32.partialorder %v5295_v25, %v855_v46  ;;  %v1137_v58 = vsel %vm1037_vm3, %v5751_v26, 200  ;;  %v5918_v53 = vcvt.s32.f32 %v1326_v12  ;;  %v1768_v19 = vshra.s32 %v5911_v13, 16  ;;  %v8557_v25 = vld [vmem:[#allocation87_spill] sm:$0xff] }
 0x1b6   : > { %vm1089_vm6 = vcmp.eq.f32.partialorder %v8556_v5, %v959_v21  ;;  %v5922_v27 = vsel %vm1340_vm4, %v1134_v6, %v1339_v59  ;;  %vm1782_vm7 = vcmp.lt.s32.totalorder %v1186_v51, %v1781_v37  ;;  %v1136_v4 = vsel %vm1036_vm5, %v5746_v57, 200  ;;  %v8559_v59 = vld [vmem:[#allocation91_spill] sm:$0xff] }
 0x1b7   : > { %1720 = vmin.xlane.f32.xlu0 %v5863_v32  ;;  %v1356_v20 = vsel %vm451_vm0, %v1137_v58, 2147483647  ;;  %v863_v36 = vpop.xlane.xlu0 %862  ;;  %vm1088_vm8 = vcmp.eq.f32.partialorder %v8557_v25, %v959_v21  ;;  %v1189_v8 = vsel %vm1089_vm6, %v5751_v26, 200  ;;  %v5929_v49 = vcvt.s32.f32 %v1768_v19  ;;  %v963_v23 = vpop.xlane.xlu1 %962  ;;  %v8560_v58 = vld [vmem:[#allocation94_spill] sm:$0xff]  ;;  %v8561_v25 = vld [vmem:[#allocation92_spill] sm:$0xff] }
 0x1b8   : > { %v1343_v35 = vshra.s32 %v5922_v27, 16  ;;  %vm1039_vm9 = vcmp.eq.f32.partialorder %v8558_v24, %v859_v0  ;;  %v5933_v46 = vsel %vm1782_vm7, %v1186_v51, %v1781_v37  ;;  %vm1357_vm10 = vcmp.lt.s32.totalorder %v1136_v4, %v1356_v20  ;;  %v8562_v24 = vld [vmem:[#allocation99_spill] sm:$0xff] }
 0x1b9   : > { %v1188_v30 = vsel %vm1088_vm8, %v5746_v57, 200  ;;  %v1798_v6 = vsel %vm451_vm0, %v1189_v8, 2147483647  ;;  %vm1038_vm11 = vcmp.eq.f32.partialorder %v8559_v59, %v859_v0  ;;  %v1139_v38 = vsel %vm1039_vm9, %v5751_v26, 200 }
 0x1ba   : > { %v5940_v12 = vcvt.s32.f32 %v1343_v35  ;;  %v1785_v21 = vshra.s32 %v5933_v46, 16  ;;  %vm1091_vm12 = vcmp.eq.f32.partialorder %v8560_v58, %v963_v23  ;;  %v5944_v37 = vsel %vm1357_vm10, %v1136_v4, %v1356_v20  ;;  %v8564_v58 = vld [vmem:[#allocation96_spill] sm:$0xff] }
 0x1bb   : > { %1295 = vmin.xlane.f32.xlu0 %v5874_v55  ;;  %v967_v51 = vpop.xlane.xlu0 %966  ;;  %vm1799_vm13 = vcmp.lt.s32.totalorder %v1188_v30, %v1798_v6  ;;  %v1138_v19 = vsel %vm1038_vm11, %v5746_v57, 200  ;;  %v1373_v5 = vsel %vm451_vm0, %v1139_v38, 2147483647  ;;  %vm1090_vm14 = vcmp.eq.f32.partialorder %v8561_v25, %v963_v23 }
 0x1bc   : > { %v1191_v0 = vsel %vm1091_vm12, %v5751_v26, 200  ;;  %v5951_v8 = vcvt.s32.f32 %v1785_v21  ;;  %v1360_v35 = vshra.s32 %v5944_v37, 16  ;;  %vm1041_vm15 = vcmp.eq.f32.partialorder %v8562_v24, %v863_v36  ;;  %v867_v21 = vpop.xlane.xlu1 %866  ;;  %v8566_v24 = vld [vmem:[#allocation100_spill] sm:$0xff] }
 0x1bd   : > { %v5955_v59 = vsel %vm1799_vm13, %v1188_v30, %v1798_v6  ;;  %vm1374_vm1 = vcmp.lt.s32.totalorder %v1138_v19, %v1373_v5  ;;  %v1190_v4 = vsel %vm1090_vm14, %v5746_v57, 200  ;;  %v1815_v20 = vsel %vm451_vm0, %v1191_v0, 2147483647 }
 0x1be   : > { %8563 = vst [vmem:[#allocation89_spill] sm:$0xff] %v5955_v59  ;;  %vm1040_vm2 = vcmp.eq.f32.partialorder %v8564_v58, %v863_v36  ;;  %v1141_v23 = vsel %vm1041_vm15, %v5751_v26, 200  ;;  %v5962_v25 = vcvt.s32.f32 %v1360_v35  ;;  %v1802_v62 = vshra.s32 %v5955_v59, 16 }
 0x1bf   : > { %1737 = vmin.xlane.f32.xlu0 %v5885_v7  ;;  %v871_v38 = vpop.xlane.xlu0 %870  ;;  %vm1093_vm3 = vcmp.eq.f32.partialorder %v8566_v24, %v967_v51  ;;  %v5966_v30 = vsel %vm1374_vm1, %v1138_v19, %v1373_v5  ;;  %vm1816_vm4 = vcmp.lt.s32.totalorder %v1190_v4, %v1815_v20  ;;  %v1140_v6 = vsel %vm1040_vm2, %v5746_v57, 200 }
 0x1c0   : > { %8565 = vst [vmem:[#allocation87_spill] sm:$0xff] %v5962_v25  ;;  %8567 = vst [vmem:[#allocation93_spill] sm:$0xff] %v5966_v30  ;;  %v1390_v0 = vsel %vm451_vm0, %v1141_v23, 2147483647  ;;  %vm1092_vm5 = vcmp.eq.f32.partialorder %v8568_v9, %v967_v51  ;;  %v1193_v36 = vsel %vm1093_vm3, %v5751_v26, 200  ;;  %v5973_v58 = vcvt.s32.f32 %v1802_v62  ;;  %v971_v5 = vpop.xlane.xlu1 %970  ;;  %v8572_v9 = vld [vmem:[#allocation101_spill] sm:$0xff] }
 0x1c1   : > { %v1377_v35 = vshra.s32 %v5966_v30, 16  ;;  %vm1043_vm6 = vcmp.eq.f32.partialorder %v8570_v33, %v867_v21  ;;  %v5977_v19 = vsel %vm1816_vm4, %v1190_v4, %v1815_v20  ;;  %vm1391_vm7 = vcmp.lt.s32.totalorder %v1140_v6, %v1390_v0  ;;  %v8574_v33 = vld [vmem:[#allocation105_spill] sm:$0xff]  ;;  %v8604_v30 = vld [vmem:[#allocation123_spill] sm:$0xff] }
 0x1c2   : > { %8569 = vst [vmem:[#allocation91_spill] sm:$0xff] %v5973_v58  ;;  %8571 = vst [vmem:[#allocation94_spill] sm:$0xff] %v5977_v19  ;;  %v1192_v61 = vsel %vm1092_vm5, %v5746_v57, 200  ;;  %v1832_v23 = vsel %vm451_vm0, %v1193_v36, 2147483647  ;;  %vm1042_vm8 = vcmp.eq.f32.partialorder %v8572_v9, %v867_v21  ;;  %v1143_v62 = vsel %vm1043_vm6, %v5751_v26, 200 }
 0x1c3   : > { %1312 = vmin.xlane.f32.xlu0 %v5896_v43  ;;  %v975_v24 = vpop.xlane.xlu0 %974  ;;  %v5984_v51 = vcvt.s32.f32 %v1377_v35  ;;  %v1819_v18 = vshra.s32 %v5977_v19, 16  ;;  %vm1095_vm9 = vcmp.eq.f32.partialorder %v8574_v33, %v971_v5  ;;  %v5988_v4 = vsel %vm1391_vm7, %v1140_v6, %v1390_v0  ;;  %v8576_v21 = vld [vmem:[#allocation102_spill] sm:$0xff]  ;;  %v8578_v33 = vld [vmem:[#allocation109_spill] sm:$0xff] }
 0x1c4   : > { %8575 = vst [vmem:[#allocation99_spill] sm:$0xff] %v5988_v4  ;;  %vm1833_vm10 = vcmp.lt.s32.totalorder %v1192_v61, %v1832_v23  ;;  %v1142_v20 = vsel %vm1042_vm8, %v5746_v57, 200  ;;  %v1407_v50 = vsel %vm451_vm0, %v1143_v62, 2147483647  ;;  %vm1094_vm11 = vcmp.eq.f32.partialorder %v8576_v21, %v971_v5  ;;  %v875_v21 = vpop.xlane.xlu1 %874 }
 0x1c5   : > { %8573 = vst [vmem:[#allocation92_spill] sm:$0xff] %v5984_v51  ;;  %v1195_v35 = vsel %vm1095_vm9, %v5751_v26, 200  ;;  %v5997_v9 = vcvt.s32.f32 %v1819_v18  ;;  %v1394_v19 = vshra.s32 %v5988_v4, 16  ;;  %vm1045_vm12 = vcmp.eq.f32.partialorder %v8578_v33, %v871_v38 }
 0x1c6   : > { %v6001_v6 = vsel %vm1833_vm10, %v1192_v61, %v1832_v23  ;;  %vm1408_vm13 = vcmp.lt.s32.totalorder %v1142_v20, %v1407_v50  ;;  %v1194_v0 = vsel %vm1094_vm11, %v5746_v57, 200  ;;  %v1849_v62 = vsel %vm451_vm0, %v1195_v35, 2147483647 }
 0x1c7   : > { %1754 = vmin.xlane.f32.xlu0 %v5907_v1  ;;  %v5993_v36 = vpop.xlane.xlu0 %878  ;;  %8577 = vst [vmem:[#allocation96_spill] sm:$0xff] %v5997_v9  ;;  %8579 = vst [vmem:[#allocation100_spill] sm:$0xff] %v6001_v6  ;;  %v1145_v5 = vsel %vm1045_vm12, %v5751_v26, 200  ;;  %v6008_v18 = vcvt.s32.f32 %v1394_v19  ;;  %v1836_v4 = vshra.s32 %v6001_v6, 16  ;;  %v6012_v23 = vsel %vm1408_vm13, %v1142_v20, %v1407_v50 }
 0x1c8   : > { %8583 = vst [vmem:[#allocation104_spill] sm:$0xff] %v6012_v23  ;;  %vm1850_vm1 = vcmp.lt.s32.totalorder %v1194_v0, %v1849_v62  ;;  %v1424_v35 = vsel %vm451_vm0, %v1145_v5, 2147483647  ;;  %v1411_v6 = vshra.s32 %v6012_v23, 16  ;;  %v979_v50 = vpop.xlane.xlu1 %978  ;;  %v8592_v23 = vld [vmem:[#allocation113_spill] sm:$0xff] }
 0x1c9   : > { %8581 = vst [vmem:[#allocation97_spill] sm:$0xff] %v6008_v18  ;;  %v6019_v19 = vcvt.s32.f32 %v1836_v4  ;;  %vm1098_vm8 = vcmp.eq.f32.partialorder %v8592_v23, %v979_v50 }
 0x1cb   : > { %1329 = vmin.xlane.f32.xlu0 %v5918_v53  ;;  %v983_v61 = vpop.xlane.xlu0 %982  ;;  %8585 = vst [vmem:[#allocation101_spill] sm:$0xff] %v6019_v19 }
 0x1cf   : > { %1771 = vmin.xlane.f32.xlu0 %v5929_v49 }
 0x1d3   : > { %1346 = vmin.xlane.f32.xlu0 %v5940_v12 }
 0x1d7   : > { %1788 = vmin.xlane.f32.xlu0 %v5951_v8 }
 0x1db   : > { %1363 = vmin.xlane.f32.xlu0 %v5962_v25  ;;  %v8636_v25 = vld [vmem:[#allocation144_spill] sm:$0xff] }
 0x1df   : > { %1805 = vmin.xlane.f32.xlu0 %v5973_v58  ;;  %v8582_v58 = vld [vmem:[#allocation110_spill] sm:$0xff] }
 0x1e0   : > { %vm1097_vm15 = vcmp.eq.f32.partialorder %v8582_v58, %v975_v24  ;;  %v6023_v58 = vsel %vm1850_vm1, %v1194_v0, %v1849_v62  ;;  %v8590_v0 = vld [vmem:[#allocation116_spill] sm:$0xff] }
 0x1e1   : > { %8587 = vst [vmem:[#allocation105_spill] sm:$0xff] %v6023_v58  ;;  %vm1099_vm6 = vcmp.eq.f32.partialorder %v8590_v0, %v979_v50  ;;  %v8596_v50 = vld [vmem:[#allocation117_spill] sm:$0xff]  ;;  %v883_v0 = vpop.xlane.xlu1 %882 }
 0x1e2   : > { %vm1048_vm11 = vcmp.eq.f32.partialorder %v8596_v50, %v5993_v36 }
 0x1e3   : > { %1380 = vmin.xlane.f32.xlu0 %v5984_v51  ;;  %v8580_v51 = vld [vmem:[#allocation107_spill] sm:$0xff] }
 0x1e4   : > { %vm1044_vm14 = vcmp.eq.f32.partialorder %v8580_v51, %v871_v38  ;;  %v8584_v38 = vld [vmem:[#allocation108_spill] sm:$0xff]  ;;  %v1197_v51 = vsel %vm1097_vm15, %v5751_v26, 200 }
 0x1e5   : > { %v1144_v33 = vsel %vm1044_vm14, %v5746_v57, 200  ;;  %vm1096_vm2 = vcmp.eq.f32.partialorder %v8584_v38, %v975_v24  ;;  %v1866_v5 = vsel %vm451_vm0, %v1197_v51, 2147483647  ;;  %v8588_v24 = vld [vmem:[#allocation112_spill] sm:$0xff]  ;;  %v6032_v38 = vcvt.s32.f32 %v1411_v6 }
 0x1e6   : > { %vm1425_vm4 = vcmp.lt.s32.totalorder %v1144_v33, %v1424_v35  ;;  %v1196_v20 = vsel %vm1096_vm2, %v5746_v57, 200  ;;  %vm1046_vm5 = vcmp.eq.f32.partialorder %v8588_v24, %v875_v21  ;;  %vm1050_vm2 = vcmp.eq.f32.partialorder %v8604_v30, %v883_v0  ;;  %v8608_v30 = vld [vmem:[#allocation124_spill] sm:$0xff] }
 0x1e7   : > { %1822 = vmin.xlane.f32.xlu0 %v5997_v9  ;;  %v8586_v9 = vld [vmem:[#allocation115_spill] sm:$0xff]  ;;  %8589 = vst [vmem:[#allocation102_spill] sm:$0xff] %v6032_v38  ;;  %v6036_v62 = vsel %vm1425_vm4, %v1144_v33, %v1424_v35  ;;  %vm1867_vm7 = vcmp.lt.s32.totalorder %v1196_v20, %v1866_v5 }
 0x1e8   : > { %vm1047_vm3 = vcmp.eq.f32.partialorder %v8586_v9, %v875_v21  ;;  %v1853_v9 = vshra.s32 %v6023_v58, 16  ;;  %8591 = vst [vmem:[#allocation109_spill] sm:$0xff] %v6036_v62  ;;  %v1199_v21 = vsel %vm1099_vm6, %v5751_v26, 200  ;;  %v1428_v6 = vshra.s32 %v6036_v62, 16  ;;  %v8594_v58 = vld [vmem:[#allocation120_spill] sm:$0xff] }
 0x1e9   : > { %v1147_v4 = vsel %vm1047_vm3, %v5751_v26, 200  ;;  %vm1049_vm9 = vcmp.eq.f32.partialorder %v8594_v58, %v5993_v36  ;;  %v6050_v35 = vsel %vm1867_vm7, %v1196_v20, %v1866_v5  ;;  %v1883_v23 = vsel %vm451_vm0, %v1199_v21, 2147483647  ;;  %v8600_v36 = vld [vmem:[#allocation118_spill] sm:$0xff] }
 0x1ea   : > { %v1441_v51 = vsel %vm451_vm0, %v1147_v4, 2147483647  ;;  %v6043_v24 = vcvt.s32.f32 %v1853_v9  ;;  %8595 = vst [vmem:[#allocation110_spill] sm:$0xff] %v6050_v35  ;;  %v1198_v4 = vsel %vm1098_vm8, %v5746_v57, 200  ;;  %v1149_v9 = vsel %vm1049_vm9, %v5751_v26, 200 }
 0x1eb   : > { %1397 = vmin.xlane.f32.xlu0 %v6008_v18  ;;  %v6028_v18 = vpop.xlane.xlu0 %886  ;;  %v6058_v62 = vcvt.s32.f32 %v1428_v6  ;;  %v1870_v58 = vshra.s32 %v6050_v35, 16  ;;  %vm1884_vm13 = vcmp.lt.s32.totalorder %v1198_v4, %v1883_v23  ;;  %v1148_v5 = vsel %vm1048_vm11, %v5746_v57, 200 }
 0x1ec   : > { %8593 = vst [vmem:[#allocation107_spill] sm:$0xff] %v6043_v24  ;;  %v1458_v21 = vsel %vm451_vm0, %v1149_v9, 2147483647  ;;  %vm1100_vm14 = vcmp.eq.f32.partialorder %v8600_v36, %v983_v61 }
 0x1ed   : > { %8597 = vst [vmem:[#allocation108_spill] sm:$0xff] %v6058_v62  ;;  %v6071_v50 = vcvt.s32.f32 %v1870_v58  ;;  %vm1459_vm1 = vcmp.lt.s32.totalorder %v1148_v5, %v1458_v21  ;;  %v1200_v9 = vsel %vm1100_vm14, %v5746_v57, 200 }
 0x1ef   : > { %1839 = vmin.xlane.f32.xlu0 %v6019_v19  ;;  %v1146_v19 = vsel %vm1046_vm5, %v5746_v57, 200  ;;  %v6048_v33 = vpop.xlane.xlu0 %990  ;;  %8601 = vst [vmem:[#allocation112_spill] sm:$0xff] %v6071_v50 }
 0x1f0   : > { %vm1442_vm10 = vcmp.lt.s32.totalorder %v1146_v19, %v1441_v51 }
 0x1f1   : > { %v6062_v20 = vsel %vm1442_vm10, %v1146_v19, %v1441_v51  ;;  %v6075_v19 = vsel %vm1884_vm13, %v1198_v4, %v1883_v23  ;;  %v987_v51 = vpop.xlane.xlu1 %986  ;;  %v6088_v23 = vsel %vm1459_vm1, %v1148_v5, %v1458_v21 }
 0x1f2   : > { %8599 = vst [vmem:[#allocation115_spill] sm:$0xff] %v6062_v20  ;;  %v1445_v35 = vshra.s32 %v6062_v20, 16  ;;  %8603 = vst [vmem:[#allocation116_spill] sm:$0xff] %v6075_v19  ;;  %v1887_v36 = vshra.s32 %v6075_v19, 16  ;;  %v8606_v20 = vld [vmem:[#allocation126_spill] sm:$0xff]  ;;  %vm1102_vm5 = vcmp.eq.f32.partialorder %v8608_v30, %v987_v51  ;;  %v1462_v19 = vshra.s32 %v6088_v23, 16 }
 0x1f3   : > { %1414 = vmin.xlane.f32.xlu0 %v6032_v38  ;;  %v8598_v38 = vld [vmem:[#allocation121_spill] sm:$0xff]  ;;  %vm1103_vm3 = vcmp.eq.f32.partialorder %v8606_v20, %v987_v51  ;;  %8607 = vst [vmem:[#allocation120_spill] sm:$0xff] %v6088_v23  ;;  %v8610_v20 = vld [vmem:[#allocation131_spill] sm:$0xff]  ;;  %v1202_v21 = vsel %vm1102_vm5, %v5746_v57, 200  ;;  %v8612_v51 = vld [vmem:[#allocation128_spill] sm:$0xff] }
 0x1f4   : > { %vm1101_vm12 = vcmp.eq.f32.partialorder %v8598_v38, %v983_v61  ;;  %v8602_v38 = vld [vmem:[#allocation125_spill] sm:$0xff]  ;;  %v6082_v58 = vcvt.s32.f32 %v1445_v35  ;;  %v1203_v35 = vsel %vm1103_vm3, %v5751_v26, 200  ;;  %vm1053_vm6 = vcmp.eq.f32.partialorder %v8610_v20, %v6028_v18 }
 0x1f5   : > { %v1201_v6 = vsel %vm1101_vm12, %v5751_v26, 200  ;;  %vm1051_vm15 = vcmp.eq.f32.partialorder %v8602_v38, %v883_v0  ;;  %v1150_v38 = vsel %vm1050_vm2, %v5746_v57, 200  ;;  %v6095_v0 = vcvt.s32.f32 %v1887_v36  ;;  %v891_v30 = vpop.xlane.xlu1 %890 }
 0x1f6   : > { %v1151_v61 = vsel %vm1051_vm15, %v5751_v26, 200  ;;  %8605 = vst [vmem:[#allocation113_spill] sm:$0xff] %v6082_v58  ;;  %vm1052_vm8 = vcmp.eq.f32.partialorder %v8612_v51, %v6028_v18  ;;  %v1153_v36 = vsel %vm1053_vm6, %v5751_v26, 200  ;;  %v6110_v23 = vcvt.s32.f32 %v1462_v19  ;;  %v8616_v18 = vld [vmem:[#allocation129_spill] sm:$0xff] }
 0x1f7   : > { %1856 = vmin.xlane.f32.xlu0 %v6043_v24  ;;  %v6067_v24 = vpop.xlane.xlu0 %894  ;;  %8609 = vst [vmem:[#allocation117_spill] sm:$0xff] %v6095_v0  ;;  %vm1104_vm11 = vcmp.eq.f32.partialorder %v8616_v18, %v6048_v33  ;;  %v8620_v18 = vld [vmem:[#allocation133_spill] sm:$0xff] }
 0x1f8   : > { %8613 = vst [vmem:[#allocation118_spill] sm:$0xff] %v6110_v23  ;;  %vm1054_vm14 = vcmp.eq.f32.partialorder %v8620_v18, %v891_v30 }
 0x1fb   : > { %1431 = vmin.xlane.f32.xlu0 %v6058_v62  ;;  %v1900_v62 = vsel %vm451_vm0, %v1201_v6, 2147483647  ;;  %v6086_v4 = vpop.xlane.xlu0 %998  ;;  %v1475_v6 = vsel %vm451_vm0, %v1151_v61, 2147483647  ;;  %v1917_v61 = vsel %vm451_vm0, %v1203_v35, 2147483647 }
 0x1fc   : > { %vm1901_vm4 = vcmp.lt.s32.totalorder %v1200_v9, %v1900_v62  ;;  %vm1476_vm7 = vcmp.lt.s32.totalorder %v1150_v38, %v1475_v6  ;;  %vm1918_vm10 = vcmp.lt.s32.totalorder %v1202_v21, %v1917_v61  ;;  %v1152_v35 = vsel %vm1052_vm8, %v5746_v57, 200 }
 0x1fd   : > { %v6100_v5 = vsel %vm1901_vm4, %v1200_v9, %v1900_v62  ;;  %v8614_v9 = vld [vmem:[#allocation132_spill] sm:$0xff]  ;;  %v6115_v20 = vsel %vm1476_vm7, %v1150_v38, %v1475_v6  ;;  %v6129_v6 = vsel %vm1918_vm10, %v1202_v21, %v1917_v61  ;;  %v1154_v61 = vsel %vm1054_vm14, %v5746_v57, 200 }
 0x1fe   : > { %8611 = vst [vmem:[#allocation121_spill] sm:$0xff] %v6100_v5  ;;  %v1904_v62 = vshra.s32 %v6100_v5, 16  ;;  %vm1105_vm9 = vcmp.eq.f32.partialorder %v8614_v9, %v6048_v33  ;;  %8615 = vst [vmem:[#allocation125_spill] sm:$0xff] %v6115_v20  ;;  %v1479_v5 = vshra.s32 %v6115_v20, 16  ;;  %v995_v9 = vpop.xlane.xlu1 %994  ;;  %v8622_v20 = vld [vmem:[#allocation137_spill] sm:$0xff] }
 0x1ff   : > { %1873 = vmin.xlane.f32.xlu0 %v6071_v50  ;;  %v1205_v19 = vsel %vm1105_vm9, %v5751_v26, 200  ;;  %v8618_v50 = vld [vmem:[#allocation136_spill] sm:$0xff]  ;;  %8619 = vst [vmem:[#allocation126_spill] sm:$0xff] %v6129_v6  ;;  %vm1107_vm15 = vcmp.eq.f32.partialorder %v8622_v20, %v995_v9 }
 0x200   : > { %v6123_v51 = vcvt.s32.f32 %v1904_v62  ;;  %vm1055_vm12 = vcmp.eq.f32.partialorder %v8618_v50, %v891_v30  ;;  %v1934_v33 = vsel %vm451_vm0, %v1205_v19, 2147483647  ;;  %v1921_v50 = vshra.s32 %v6129_v6, 16  ;;  %v8624_v30 = vld [vmem:[#allocation134_spill] sm:$0xff] }
 0x201   : > { %v1155_v62 = vsel %vm1055_vm12, %v5751_v26, 200  ;;  %vm1106_vm2 = vcmp.eq.f32.partialorder %v8624_v30, %v995_v9  ;;  %v8628_v9 = vld [vmem:[#allocation139_spill] sm:$0xff] }
 0x202   : > { %8617 = vst [vmem:[#allocation123_spill] sm:$0xff] %v6123_v51  ;;  %v6149_v18 = vcvt.s32.f32 %v1921_v50  ;;  %vm1056_vm5 = vcmp.eq.f32.partialorder %v8628_v9, %v6067_v24  ;;  %v899_v30 = vpop.xlane.xlu1 %898  ;;  %v8632_v9 = vld [vmem:[#allocation140_spill] sm:$0xff] }
 0x203   : > { %1448 = vmin.xlane.f32.xlu0 %v6082_v58  ;;  %v6105_v58 = vpop.xlane.xlu0 %902  ;;  %vm1108_vm8 = vcmp.eq.f32.partialorder %v8632_v9, %v6086_v4 }
 0x204   : > { %8625 = vst [vmem:[#allocation128_spill] sm:$0xff] %v6149_v18 }
 0x207   : > { %1890 = vmin.xlane.f32.xlu0 %v6095_v0  ;;  %v1492_v0 = vsel %vm451_vm0, %v1153_v36, 2147483647  ;;  %v6127_v38 = vpop.xlane.xlu0 %1006  ;;  %v1204_v36 = vsel %vm1104_vm11, %v5746_v57, 200  ;;  %vm1058_vm11 = vcmp.eq.f32.partialorder %v8636_v25, %v899_v30 }
 0x208   : > { %vm1493_vm13 = vcmp.lt.s32.totalorder %v1152_v35, %v1492_v0  ;;  %vm1935_vm1 = vcmp.lt.s32.totalorder %v1204_v36, %v1934_v33 }
 0x209   : > { %v6140_v21 = vsel %vm1493_vm13, %v1152_v35, %v1492_v0  ;;  %v8626_v0 = vld [vmem:[#allocation141_spill] sm:$0xff]  ;;  %v6154_v20 = vsel %vm1935_vm1, %v1204_v36, %v1934_v33  ;;  %v1206_v35 = vsel %vm1106_vm2, %v5746_v57, 200  ;;  %v8630_v36 = vld [vmem:[#allocation142_spill] sm:$0xff] }
 0x20a   : > { %8623 = vst [vmem:[#allocation131_spill] sm:$0xff] %v6140_v21  ;;  %v1496_v6 = vshra.s32 %v6140_v21, 16  ;;  %vm1057_vm3 = vcmp.eq.f32.partialorder %v8626_v0, %v6067_v24  ;;  %8627 = vst [vmem:[#allocation132_spill] sm:$0xff] %v6154_v20  ;;  %v1938_v21 = vshra.s32 %v6154_v20, 16  ;;  %vm1109_vm6 = vcmp.eq.f32.partialorder %v8630_v36, %v6086_v4 }
 0x20b   : > { %1465 = vmin.xlane.f32.xlu0 %v6110_v23  ;;  %v6136_v23 = vcvt.s32.f32 %v1479_v5  ;;  %v6145_v19 = vpop.xlane.xlu0 %910  ;;  %v1207_v5 = vsel %vm1107_vm15, %v5751_v26, 200  ;;  %v1157_v50 = vsel %vm1057_vm3, %v5751_v26, 200 }
 0x20c   : > { %v1526_v24 = vsel %vm451_vm0, %v1157_v50, 2147483647  ;;  %v6177_v20 = vcvt.s32.f32 %v1938_v21  ;;  %v1223_v21 = vand.u32 65535, %v5769_v10 }
 0x20d   : > { %8621 = vst [vmem:[#allocation124_spill] sm:$0xff] %v6136_v23 }
 0x20e   : > { %8633 = vst [vmem:[#allocation133_spill] sm:$0xff] %v6177_v20 }
 0x20f   : > { %1907 = vmin.xlane.f32.xlu0 %v6123_v51  ;;  %v1509_v51 = vsel %vm451_vm0, %v1155_v62, 2147483647  ;;  %v1951_v62 = vsel %vm451_vm0, %v1207_v5, 2147483647  ;;  %v6167_v33 = vpop.xlane.xlu0 %1014  ;;  %v1156_v5 = vsel %vm1056_vm5, %v5746_v57, 200 }
 0x210   : > { %vm1510_vm4 = vcmp.lt.s32.totalorder %v1154_v61, %v1509_v51  ;;  %vm1952_vm7 = vcmp.lt.s32.totalorder %v1206_v35, %v1951_v62  ;;  %vm1527_vm10 = vcmp.lt.s32.totalorder %v1156_v5, %v1526_v24 }
 0x211   : > { %v6169_v0 = vsel %vm1510_vm4, %v1154_v61, %v1509_v51  ;;  %v6181_v51 = vsel %vm1952_vm7, %v1206_v35, %v1951_v62  ;;  %v1003_v61 = vpop.xlane.xlu1 %1002  ;;  %v8637_v35 = vld [vmem:[#allocation148_spill] sm:$0xff]  ;;  %v6195_v62 = vsel %vm1527_vm10, %v1156_v5, %v1526_v24  ;;  %v8640_v24 = vld [vmem:[#allocation153_spill] sm:$0xff] }
 0x212   : > { %8631 = vst [vmem:[#allocation136_spill] sm:$0xff] %v6169_v0  ;;  %v1513_v36 = vshra.s32 %v6169_v0, 16  ;;  %8635 = vst [vmem:[#allocation137_spill] sm:$0xff] %v6181_v51  ;;  %vm1111_vm12 = vcmp.eq.f32.partialorder %v8637_v35, %v1003_v61  ;;  %v1530_v5 = vshra.s32 %v6195_v62, 16  ;;  %vm1061_vm1 = vcmp.eq.f32.partialorder %v8640_v24, %v6105_v58 }
 0x213   : > { %1482 = vmin.xlane.f32.xlu0 %v6136_v23  ;;  %v6162_v23 = vcvt.s32.f32 %v1496_v6  ;;  %v1209_v6 = vsel %vm1109_vm6, %v5751_v26, 200  ;;  %v6187_v4 = vpop.xlane.xlu0 %918 }
 0x214   : > { %v1968_v50 = vsel %vm451_vm0, %v1209_v6, 2147483647  ;;  %v6191_v0 = vcvt.s32.f32 %v1513_v36  ;;  %v1225_v6 = vcvt.s32.f32 %v1223_v21  ;;  %v1665_v36 = vand.u32 65535, %v5786_v3 }
 0x215   : > { %8629 = vst [vmem:[#allocation129_spill] sm:$0xff] %v6162_v23 }
 0x217   : > { %1924 = vmin.xlane.f32.xlu0 %v6149_v18  ;;  %v8634_v18 = vld [vmem:[#allocation147_spill] sm:$0xff] }
 0x218   : > { %vm1059_vm9 = vcmp.eq.f32.partialorder %v8634_v18, %v899_v30  ;;  %v1955_v18 = vshra.s32 %v6181_v51, 16  ;;  %v8638_v30 = vld [vmem:[#allocation145_spill] sm:$0xff]  ;;  %v1211_v51 = vsel %vm1111_vm12, %v5751_v26, 200 }
 0x219   : > { %v1159_v9 = vsel %vm1059_vm9, %v5751_v26, 200  ;;  %vm1110_vm14 = vcmp.eq.f32.partialorder %v8638_v30, %v1003_v61  ;;  %v8641_v61 = vld [vmem:[#allocation149_spill] sm:$0xff]  ;;  %v1985_v21 = vsel %vm451_vm0, %v1211_v51, 2147483647  ;;  %v1240_v30 = vand.u32 65535, %v5797_v60 }
 0x21a   : > { %v1543_v25 = vsel %vm451_vm0, %v1159_v9, 2147483647  ;;  %v6205_v59 = vcvt.s32.f32 %v1955_v18  ;;  %vm1060_vm3 = vcmp.eq.f32.partialorder %v8641_v61, %v6105_v58  ;;  %v1210_v3 = vsel %vm1110_vm14, %v5746_v57, 200 }
 0x21b   : > { %1499 = vmin.xlane.f32.xlu0 %v6162_v23  ;;  %v1208_v23 = vsel %vm1108_vm8, %v5746_v57, 200  ;;  %v1667_v18 = vcvt.s32.f32 %v1665_v36  ;;  %vm1986_vm6 = vcmp.lt.s32.totalorder %v1210_v3, %v1985_v21  ;;  %v1160_v60 = vsel %vm1060_vm3, %v5746_v57, 200  ;;  %v8643_v36 = vld [vmem:[#allocation150_spill] sm:$0xff] }
 0x21c   : > { %vm1969_vm13 = vcmp.lt.s32.totalorder %v1208_v23, %v1968_v50  ;;  %8639 = vst [vmem:[#allocation134_spill] sm:$0xff] %v6205_v59  ;;  %vm1112_vm7 = vcmp.eq.f32.partialorder %v8643_v36, %v6127_v38 }
 0x21d   : > { %v6212_v35 = vsel %vm1969_vm13, %v1208_v23, %v1968_v50  ;;  %v907_v23 = vpop.xlane.xlu1 %906  ;;  %v6223_v50 = vcvt.s32.f32 %v1530_v5 }
 0x21e   : > { %v1972_v24 = vshra.s32 %v6212_v35, 16 }
 0x21f   : > { %1941 = vmin.xlane.f32.xlu0 %v6177_v20  ;;  %v1158_v20 = vsel %vm1058_vm11, %v5746_v57, 200  ;;  %vm1062_vm11 = vcmp.eq.f32.partialorder %v5522_v2, %v907_v23 }
 0x220   : > { %vm1544_vm2 = vcmp.lt.s32.totalorder %v1158_v20, %v1543_v25 }
 0x221   : > { %v6231_v51 = vsel %vm1544_vm2, %v1158_v20, %v1543_v25  ;;  %v1682_v20 = vand.u32 65535, %v5801_v41  ;;  %v1212_v41 = vsel %vm1112_vm7, %v5746_v57, 200 }
 0x222   : > { %v1547_v58 = vshra.s32 %v6231_v51, 16 }
 0x223   : > { %1516 = vmin.xlane.f32.xlu0 %v6191_v0 }
 0x224   : > { %v6201_v10 = vpop.xlane.xlu0 %1227 }
 0x225   : > { %vm1229_vm15 = vcmp.eq.f32.partialorder %v5783_v15, %v6201_v10 }
 0x226   : > { %v1230_v9 = vsel %vm1229_vm15, %v1225_v6, inf  ;;  %v1161_v6 = vsel %vm1061_vm1, %v5751_v26, 200 }
 0x227   : > { %1958 = vmin.xlane.f32.xlu0 %v6205_v59  ;;  %1231 = vmin.xlane.f32.xlu1 %v1230_v9  ;;  %v8642_v9 = vld [vmem:[#allocation154_spill] sm:$0xff] }
 0x228   : > { %v6219_v15 = vpop.xlane.xlu0 %1669  ;;  %vm1113_vm5 = vcmp.eq.f32.partialorder %v8642_v9, %v6127_v38  ;;  %v6245_v9 = vcvt.s32.f32 %v1972_v24 }
 0x229   : > { %vm1671_vm4 = vcmp.eq.f32.partialorder %v5795_v22, %v6219_v15  ;;  %v1560_v22 = vsel %vm451_vm0, %v1161_v6, 2147483647  ;;  %v1213_v25 = vsel %vm1113_vm5, %v5751_v26, 200  ;;  %v6251_v6 = vsel %vm1986_vm6, %v1210_v3, %v1985_v21 }
 0x22a   : > { %v1672_v59 = vsel %vm1671_vm4, %v1667_v18, inf  ;;  %v1242_v18 = vcvt.s32.f32 %v1240_v30  ;;  %vm1561_vm10 = vcmp.lt.s32.totalorder %v1160_v60, %v1560_v22  ;;  %v1011_v30 = vpop.xlane.xlu1 %1010  ;;  %v1257_v3 = vand.u32 65535, %v5812_v42 }
 0x22b   : > { %1533 = vmin.xlane.f32.xlu0 %v6223_v50  ;;  %1673 = vmin.xlane.f32.xlu1 %v1672_v59  ;;  %v8645_v59 = vld [vmem:[#allocation159_spill] sm:$0xff]  ;;  %v6271_v36 = vsel %vm1561_vm10, %v1160_v60, %v1560_v22  ;;  %v1162_v42 = vsel %vm1062_vm11, %v5746_v57, 200  ;;  %vm1064_vm4 = vcmp.eq.f32.partialorder %v5548_v29, %v6145_v19 }
 0x22c   : > { %v6241_v5 = vpop.xlane.xlu0 %1244  ;;  %vm1063_vm9 = vcmp.eq.f32.partialorder %v8645_v59, %v907_v23  ;;  %v1684_v59 = vcvt.s32.f32 %v1682_v20  ;;  %v1564_v2 = vshra.s32 %v6271_v36, 16  ;;  %v8649_v23 = vld [vmem:[#allocation166_spill] sm:$0xff] }
 0x22d   : > { %8644 = vst [vmem:[#allocation141_spill] sm:$0xff] %v6241_v5  ;;  %vm1246_vm8 = vcmp.eq.f32.partialorder %v5808_v34, %v6241_v5  ;;  %v2002_v34 = vsel %vm451_vm0, %v1213_v25, 2147483647  ;;  %v1163_v21 = vsel %vm1063_vm9, %v5751_v26, 200  ;;  %v8647_v5 = vld [vmem:[#allocation160_spill] sm:$0xff]  ;;  %v8648_v25 = vld [vmem:[#allocation157_spill] sm:$0xff]  ;;  %vm1065_vm2 = vcmp.eq.f32.partialorder %v8649_v23, %v6145_v19 }
 0x22e   : > { %v1247_v61 = vsel %vm1246_vm8, %v1242_v18, inf  ;;  %v6264_v18 = vcvt.s32.f32 %v1547_v58  ;;  %vm1115_vm13 = vcmp.eq.f32.partialorder %v8647_v5, %v1011_v30  ;;  %vm2003_vm14 = vcmp.lt.s32.totalorder %v1212_v41, %v2002_v34  ;;  %v8653_v19 = vld [vmem:[#allocation171_spill] sm:$0xff] }
 0x22f   : > { %1975 = vmin.xlane.f32.xlu0 %v6245_v9  ;;  %1248 = vmin.xlane.f32.xlu1 %v1247_v61  ;;  %v1989_v61 = vshra.s32 %v6251_v6, 16  ;;  %v1577_v20 = vsel %vm451_vm0, %v1163_v21, 2147483647  ;;  %vm1114_vm15 = vcmp.eq.f32.partialorder %v8648_v25, %v1011_v30  ;;  %v1259_v58 = vcvt.s32.f32 %v1257_v3 }
 0x230   : > { %v6260_v24 = vpop.xlane.xlu0 %1686  ;;  %v1699_v5 = vand.u32 65535, %v5823_v63  ;;  %v1215_v60 = vsel %vm1115_vm13, %v5751_v26, 200  ;;  %v6290_v21 = vsel %vm2003_vm14, %v1212_v41, %v2002_v34  ;;  %vm1578_vm3 = vcmp.lt.s32.totalorder %v1162_v42, %v1577_v20  ;;  %v915_v41 = vpop.xlane.xlu1 %914 }
 0x231   : > { %8646 = vst [vmem:[#allocation139_spill] sm:$0xff] %v6260_v24  ;;  %vm1688_vm12 = vcmp.eq.f32.partialorder %v5819_v28, %v6260_v24  ;;  %v6283_v22 = vcvt.s32.f32 %v1989_v61  ;;  %v1214_v63 = vsel %vm1114_vm15, %v5746_v57, 200  ;;  %v2019_v30 = vsel %vm451_vm0, %v1215_v60, 2147483647 }
 0x232   : > { %v1689_v38 = vsel %vm1688_vm12, %v1684_v59, inf  ;;  %v1701_v3 = vcvt.s32.f32 %v1699_v5  ;;  %v1274_v61 = vand.u32 65535, %v5834_v31  ;;  %v6301_v34 = vcvt.s32.f32 %v1564_v2  ;;  %v8651_v5 = vld [vmem:[#allocation163_spill] sm:$0xff] }
 0x233   : > { %1550 = vmin.xlane.f32.xlu0 %v6264_v18  ;;  %1690 = vmin.xlane.f32.xlu1 %v1689_v38  ;;  %v1165_v38 = vsel %vm1065_vm2, %v5751_v26, 200  ;;  %v2006_v25 = vshra.s32 %v6290_v21, 16  ;;  %v6309_v60 = vsel %vm1578_vm3, %v1162_v42, %v1577_v20  ;;  %vm2020_vm7 = vcmp.lt.s32.totalorder %v1214_v63, %v2019_v30 }
 0x234   : > { %v6279_v28 = vpop.xlane.xlu0 %1261  ;;  %v1164_v31 = vsel %vm1064_vm4, %v5746_v57, 200  ;;  %vm1116_vm8 = vcmp.eq.f32.partialorder %v8651_v5, %v6167_v33  ;;  %v1716_v42 = vand.u32 65535, %v5845_v52  ;;  %v1581_v29 = vshra.s32 %v6309_v60, 16 }
 0x235   : > { %vm1263_vm1 = vcmp.eq.f32.partialorder %v5830_v39, %v6279_v28  ;;  %vm1067_vm10 = vcmp.eq.f32.partialorder %v8653_v19, %v915_v41  ;;  %vm1066_vm12 = vcmp.eq.f32.partialorder %v5574_v54, %v915_v41  ;;  %v1216_v52 = vsel %vm1116_vm8, %v5746_v57, 200  ;;  %v4292_v41 = vld [vmem:[%s4376_s29 + $0x188] sm:$0xff] }
 0x236   : > { %v1264_v59 = vsel %vm1263_vm1, %v1259_v58, inf  ;;  %v8650_v58 = vld [vmem:[#allocation167_spill] sm:$0xff]  ;;  %vm1069_vm3 = vcmp.eq.f32.partialorder %v5610_v11, %v6187_v4 }
 0x237   : > { %1992 = vmin.xlane.f32.xlu0 %v6283_v22  ;;  %1265 = vmin.xlane.f32.xlu1 %v1264_v59  ;;  %vm1117_vm6 = vcmp.eq.f32.partialorder %v8650_v58, %v6167_v33  ;;  %v1276_v59 = vcvt.s32.f32 %v1274_v61  ;;  %v6329_v58 = vsel %vm2020_vm7, %v1214_v63, %v2019_v30  ;;  %v1019_v61 = vpop.xlane.xlu1 %1018  ;;  %v1291_v63 = vand.u32 65535, %v5856_v16 }
 0x238   : > { %v6297_v39 = vpop.xlane.xlu0 %1703  ;;  %v1217_v20 = vsel %vm1117_vm6, %v5751_v26, 200  ;;  %v1167_v30 = vsel %vm1067_vm10, %v5751_v26, 200  ;;  %v2023_v19 = vshra.s32 %v6329_v58, 16  ;;  %v1166_v16 = vsel %vm1066_vm12, %v5746_v57, 200 }
 0x239   : > { %vm1705_vm5 = vcmp.eq.f32.partialorder %v5841_v56, %v6297_v39  ;;  %v1594_v56 = vsel %vm451_vm0, %v1165_v38, 2147483647  ;;  %vm1118_vm1 = vcmp.eq.f32.partialorder %v5576_v47, %v1019_v61 }
 0x23a   : > { %v1706_v23 = vsel %vm1705_vm5, %v1701_v3, inf  ;;  %v6323_v3 = vcvt.s32.f32 %v2006_v25  ;;  %vm1595_vm11 = vcmp.lt.s32.totalorder %v1164_v31, %v1594_v56 }
 0x23b   : > { %1567 = vmin.xlane.f32.xlu0 %v6301_v34  ;;  %1707 = vmin.xlane.f32.xlu1 %v1706_v23  ;;  %v1718_v23 = vcvt.s32.f32 %v1716_v42  ;;  %v6349_v5 = vsel %vm1595_vm11, %v1164_v31, %v1594_v56  ;;  %v8656_v42 = vld [vmem:[#allocation74_spill] sm:$0xff]  ;;  %v1293_v56 = vcvt.s32.f32 %v1291_v63  ;;  %v923_v24 = vpop.xlane.xlu1 %922 }
 0x23c   : > { %v6319_v2 = vpop.xlane.xlu0 %1278  ;;  %v1598_v54 = vshra.s32 %v6349_v5, 16 }
 0x23d   : > { %8652 = vst [vmem:[#allocation142_spill] sm:$0xff] %v6319_v2  ;;  %vm1280_vm9 = vcmp.eq.f32.partialorder %v5852_v40, %v6319_v2  ;;  %v2036_v40 = vsel %vm451_vm0, %v1217_v20, 2147483647  ;;  %v4291_v20 = vld [vmem:[%s4376_s29 + $0x180] sm:$0xff] }
 0x23e   : > { %v1281_v38 = vsel %vm1280_vm9, %v1276_v59, inf  ;;  %v6342_v59 = vcvt.s32.f32 %v1581_v29  ;;  %v6353_v2 = vsub.f32 %v4291_v20, %v8656_v42  ;;  %vm2037_vm15 = vcmp.lt.s32.totalorder %v1216_v52, %v2036_v40  ;;  %v8660_v20 = vld [vmem:[#allocation76_spill] sm:$0xff] }
 0x23f   : > { %2009 = vmin.xlane.f32.xlu0 %v6323_v3  ;;  %1282 = vmin.xlane.f32.xlu1 %v1281_v38  ;;  %v8655_v38 = vld [vmem:[#allocation172_spill] sm:$0xff]  ;;  %v1733_v29 = vand.u32 65535, %v5867_v17  ;;  %v6377_v63 = vsel %vm2037_vm15, %v1216_v52, %v2036_v40  ;;  %v1218_v52 = vsel %vm1118_vm1, %v5746_v57, 200  ;;  %vm1070_vm9 = vcmp.eq.f32.partialorder %v5622_v45, %v923_v24 }
 0x240   : > { %v6338_v25 = vpop.xlane.xlu0 %1720  ;;  %vm1119_vm14 = vcmp.eq.f32.partialorder %v8655_v38, %v1019_v61  ;;  %8657 = vst [vmem:[#allocation147_spill] sm:$0xff] %v6353_v2  ;;  %v6365_v38 = vcvt.s32.f32 %v2023_v19  ;;  %v2516_v17 = vmul.f32 1.442695, %v6353_v2  ;;  %v4293_v19 = vld [vmem:[%s4376_s29 + $0x1a8] sm:$0xff]  ;;  %v6398_v2 = vcvt.s32.f32 %v1598_v54 }
 0x241   : > { %8654 = vst [vmem:[#allocation140_spill] sm:$0xff] %v6338_v25  ;;  %vm1722_vm13 = vcmp.eq.f32.partialorder %v5863_v32, %v6338_v25  ;;  %v1611_v32 = vsel %vm451_vm0, %v1167_v30, 2147483647  ;;  %v6382_v25 = vsub.f32 %v4293_v19, %v8660_v20  ;;  %v1308_v19 = vand.u32 65535, %v5878_v48  ;;  %v4294_v48 = vld [vmem:[%s4376_s29 + $0x1a0] sm:$0xff] }
 0x242   : > { %v1723_v33 = vsel %vm1722_vm13, %v1718_v23, inf  ;;  %v1219_v23 = vsel %vm1119_vm14, %v5751_v26, 200  ;;  %8658 = vst [vmem:[#allocation144_spill] sm:$0xff] %v6365_v38  ;;  %vm1612_vm4 = vcmp.lt.s32.totalorder %v1166_v16, %v1611_v32  ;;  %v2040_v47 = vshra.s32 %v6377_v63, 16 }
 0x243   : > { %1584 = vmin.xlane.f32.xlu0 %v6342_v59  ;;  %1724 = vmin.xlane.f32.xlu1 %v1723_v33  ;;  %v6372_v33 = vsub.f32 %v4292_v41, %v8656_v42  ;;  %v2053_v40 = vsel %vm451_vm0, %v1219_v23, 2147483647  ;;  %v1735_v41 = vcvt.s32.f32 %v1733_v29  ;;  %v1169_v42 = vsel %vm1069_vm3, %v5751_v26, 200  ;;  %v8662_v23 = vld [vmem:[#allocation181_spill] sm:$0xff] }
 0x244   : > { %v6361_v31 = vpop.xlane.xlu0 %1295  ;;  %vm1071_vm7 = vcmp.eq.f32.partialorder %v8662_v23, %v923_v24  ;;  %v6406_v29 = vsel %vm1612_vm4, %v1166_v16, %v1611_v32  ;;  %v2526_v11 = vmul.f32 1.442695, %v6382_v25  ;;  %vm2054_vm8 = vcmp.lt.s32.totalorder %v1218_v52, %v2053_v40  ;;  %v4297_v24 = vld [vmem:[%s4376_s29 + $0x1e8] sm:$0xff] }
 0x245   : > { %vm1297_vm2 = vcmp.eq.f32.partialorder %v5874_v55, %v6361_v31  ;;  %8659 = vst [vmem:[#allocation148_spill] sm:$0xff] %v6372_v33  ;;  %v8661_v55 = vld [vmem:[#allocation175_spill] sm:$0xff]  ;;  %v2518_v61 = vmul.f32 1.442695, %v6372_v33  ;;  %v1628_v54 = vsel %vm451_vm0, %v1169_v42, 2147483647  ;;  %v1310_v32 = vcvt.s32.f32 %v1308_v19 }
 0x246   : > { %v1298_v30 = vsel %vm1297_vm2, %v1293_v56, inf  ;;  %vm1068_vm5 = vcmp.eq.f32.partialorder %v8661_v55, %v6187_v4  ;;  %v1171_v23 = vsel %vm1071_vm7, %v5751_v26, 200  ;;  %v1615_v4 = vshra.s32 %v6406_v29, 16  ;;  %v4295_v55 = vld [vmem:[%s4376_s29 + $0x1c8] sm:$0xff]  ;;  %v8664_v42 = vld [vmem:[#allocation78_spill] sm:$0xff] }
 0x247   : > { %2026 = vmin.xlane.f32.xlu0 %v6365_v38  ;;  %1299 = vmin.xlane.f32.xlu1 %v1298_v30  ;;  %v6410_v38 = vsub.f32 %v4294_v48, %v8660_v20  ;;  %v6424_v48 = vcvt.s32.f32 %v2040_v47  ;;  %4113 = vpow2.f32 %v2518_v61  ;;  %v6434_v20 = vsel %vm2054_vm8, %v1218_v52, %v2053_v40  ;;  %v4296_v19 = vld [vmem:[%s4376_s29 + $0x1c0] sm:$0xff] }
 0x248   : > { %v6391_v56 = vpop.xlane.xlu0 %1737  ;;  %4115 = vpow2.f32 %v2516_v17  ;;  %v6439_v47 = vsub.f32 %v4296_v19, %v8664_v42  ;;  %v1645_v61 = vsel %vm451_vm0, %v1171_v23, 2147483647  ;;  %v1325_v40 = vand.u32 65535, %v5900_v44 }
 0x249   : > { %vm1739_vm6 = vcmp.eq.f32.partialorder %v5885_v7, %v6391_v56  ;;  %v1168_v7 = vsel %vm1068_vm5, %v5746_v57, 200  ;;  %4117 = vpow2.f32 %v2526_v11 }
 0x24a   : > { %v1740_v30 = vsel %vm1739_vm6, %v1735_v41, inf  ;;  %v1750_v41 = vand.u32 65535, %v5889_v14  ;;  %v2524_v14 = vmul.f32 1.442695, %v6410_v38  ;;  %vm1629_vm11 = vcmp.lt.s32.totalorder %v1168_v7, %v1628_v54 }
 0x24b   : > { %1601 = vmin.xlane.f32.xlu0 %v6398_v2  ;;  %1741 = vmin.xlane.f32.xlu1 %v1740_v30  ;;  %v6431_v30 = vsub.f32 %v4295_v55, %v8664_v42  ;;  %v8666_v55 = vld [vmem:[#allocation80_spill] sm:$0xff]  ;;  %v2532_v44 = vmul.f32 1.442695, %v6439_v47  ;;  %v4299_v42 = vld [vmem:[%s4376_s29 + $0x208] sm:$0xff] }
 0x24c   : > { %v6420_v16 = vpop.xlane.xlu0 %1312  ;;  %v1752_v17 = vcvt.s32.f32 %v1750_v41  ;;  %v6457_v23 = vsub.f32 %v4297_v24, %v8666_v55  ;;  %v6460_v41 = vsel %vm1629_vm11, %v1168_v7, %v1628_v54  ;;  %4119 = vpow2.f32 %v2524_v14  ;;  %v8667_v7 = vld [vmem:[#allocation82_spill] sm:$0xff] }
 0x24d   : > { %8663 = vst [vmem:[#allocation145_spill] sm:$0xff] %v6420_v16  ;;  %vm1314_vm10 = vcmp.eq.f32.partialorder %v5896_v43, %v6420_v16  ;;  %v1170_v43 = vsel %vm1070_vm9, %v5746_v57, 200  ;;  %v2534_v45 = vmul.f32 1.442695, %v6431_v30  ;;  %v1327_v24 = vcvt.s32.f32 %v1325_v40 }
 0x24e   : > { %v1315_v33 = vsel %vm1314_vm10, %v1310_v32, inf  ;;  %v6449_v32 = vcvt.s32.f32 %v1615_v4  ;;  %vm1646_vm13 = vcmp.lt.s32.totalorder %v1170_v43, %v1645_v61  ;;  %v6473_v54 = vsub.f32 %v4299_v42, %v8667_v7  ;;  %v4300_v42 = vld [vmem:[%s4376_s29 + $0x200] sm:$0xff] }
 0x24f   : > { %2043 = vmin.xlane.f32.xlu0 %v6424_v48  ;;  %1316 = vmin.xlane.f32.xlu1 %v1315_v33  ;;  %v2057_v33 = vshra.s32 %v6434_v20, 16  ;;  %v1632_v14 = vshra.s32 %v6460_v41, 16  ;;  %4121 = vpow2.f32 %v2534_v45  ;;  %v6482_v40 = vsel %vm1646_vm13, %v1170_v43, %v1645_v61  ;;  %v4301_v61 = vld [vmem:[%s4376_s29 + $0x228] sm:$0xff] }
 0x250   : > { %v6446_v52 = vpop.xlane.xlu0 %1754  ;;  %8668 = vst [vmem:[#allocation149_spill] sm:$0xff] %v6473_v54  ;;  %8670 = vst [vmem:[#allocation150_spill] sm:$0xff] %v6482_v40  ;;  %4123 = vpow2.f32 %v2532_v44  ;;  %v1649_v43 = vshra.s32 %v6482_v40, 16  ;;  %v8673_v44 = vld [vmem:[#allocation84_spill] sm:$0xff]  ;;  %v6544_v40 = vpop.xlane.xlu1 %2722 }
 0x251   : > { %8665 = vst [vmem:[#allocation153_spill] sm:$0xff] %v6446_v52  ;;  %vm1756_vm12 = vcmp.eq.f32.partialorder %v5907_v1, %v6446_v52  ;;  %v4298_v1 = vld [vmem:[%s4376_s29 + $0x1e0] sm:$0xff]  ;;  %v6475_v52 = vcvt.s32.f32 %v2057_v33  ;;  %v6488_v33 = vsub.f32 %v4300_v42, %v8667_v7  ;;  %v6494_v16 = vcvt.s32.f32 %v1632_v14  ;;  %8685 = vst [vmem:[#allocation211_spill] sm:$0xff] %v6544_v40 }
 0x252   : > { %v1757_v19 = vsel %vm1756_vm12, %v1752_v17, inf  ;;  %v6466_v11 = vsub.f32 %v4298_v1, %v8666_v55  ;;  %v1767_v17 = vand.u32 65535, %v5911_v13  ;;  %v1342_v55 = vand.u32 65535, %v5922_v27 }
 0x253   : > { %1618 = vmin.xlane.f32.xlu0 %v6449_v32  ;;  %1758 = vmin.xlane.f32.xlu1 %v1757_v19  ;;  %8669 = vst [vmem:[#allocation154_spill] sm:$0xff] %v6475_v52  ;;  %v2542_v19 = vmul.f32 1.442695, %v6457_v23  ;;  %8671 = vst [vmem:[#allocation159_spill] sm:$0xff] %v6488_v33 }
 0x254   : > { %v6468_v4 = vpop.xlane.xlu0 %1329  ;;  %v2540_v13 = vmul.f32 1.442695, %v6466_v11  ;;  %v1769_v45 = vcvt.s32.f32 %v1767_v17  ;;  %8672 = vst [vmem:[#allocation160_spill] sm:$0xff] %v6494_v16  ;;  %v4114_v7 = vpop.eup %4113  ;;  %v2548_v17 = vmul.f32 1.442695, %v6488_v33  ;;  %v4303_v33 = vld [vmem:[%s4376_s29 + $0x248] sm:$0xff] }
 0x255   : > { %vm1331_vm14 = vcmp.eq.f32.partialorder %v5918_v53, %v6468_v4  ;;  %4125 = vpow2.f32 %v2542_v19  ;;  %v4116_v27 = vpop.eup %4115  ;;  %v1784_v19 = vand.u32 65535, %v5933_v46  ;;  %v2716_v46 = vsel %vm451_vm0, %v4114_v7, 0.0 }
 0x256   : > { %v1332_v1 = vsel %vm1331_vm14, %v1327_v24, inf  ;;  %v2550_v24 = vmul.f32 1.442695, %v6473_v54  ;;  %4127 = vpow2.f32 %v2540_v13  ;;  %v4302_v54 = vld [vmem:[%s4376_s29 + $0x220] sm:$0xff] }
 0x257   : > { %2060 = vmin.xlane.f32.xlu0 %v6475_v52  ;;  %1333 = vmin.xlane.f32.xlu1 %v1332_v1  ;;  %v6501_v1 = vsub.f32 %v4301_v61, %v8673_v44  ;;  %v6510_v61 = vsub.f32 %v4302_v54, %v8673_v44  ;;  %v4304_v54 = vld [vmem:[%s4376_s29 + $0x240] sm:$0xff]  ;;  %v1359_v44 = vand.u32 65535, %v5944_v37 }
 0x258   : > { %v6490_v53 = vpop.xlane.xlu0 %1771  ;;  %4129 = vpow2.f32 %v2550_v24 }
 0x259   : > { %vm1773_vm15 = vcmp.eq.f32.partialorder %v5929_v49, %v6490_v53  ;;  %8674 = vst [vmem:[#allocation157_spill] sm:$0xff] %v6501_v1  ;;  %v1344_v49 = vcvt.s32.f32 %v1342_v55  ;;  %8676 = vst [vmem:[#allocation167_spill] sm:$0xff] %v6510_v61  ;;  %v2558_v13 = vmul.f32 1.442695, %v6501_v1  ;;  %4131 = vpow2.f32 %v2548_v17 }
 0x25a   : > { %v1774_v42 = vsel %vm1773_vm15, %v1769_v45, inf  ;;  %v6514_v45 = vcvt.s32.f32 %v1649_v43  ;;  %v1786_v43 = vcvt.s32.f32 %v1784_v19 }
 0x25b   : > { %1635 = vmin.xlane.f32.xlu0 %v6494_v16  ;;  %1775 = vmin.xlane.f32.xlu1 %v1774_v42  ;;  %v4118_v42 = vpop.eup %4117  ;;  %v8678_v16 = vld [vmem:[#allocation86_spill] sm:$0xff]  ;;  %4133 = vpow2.f32 %v2558_v13  ;;  %v8686_v13 = vld [vmem:[#allocation89_spill] sm:$0xff] }
 0x25c   : > { %v6505_v14 = vpop.xlane.xlu0 %1346  ;;  %8677 = vst [vmem:[#allocation163_spill] sm:$0xff] %v6514_v45  ;;  %v6519_v55 = vsub.f32 %v4303_v33, %v8678_v16  ;;  %v4120_v1 = vpop.eup %4119  ;;  %v2556_v33 = vmul.f32 1.442695, %v6510_v61  ;;  %v2724_v19 = vsel %vm451_vm0, %v4118_v42, 0.0 }
 0x25d   : > { %8675 = vst [vmem:[#allocation166_spill] sm:$0xff] %v6505_v14  ;;  %vm1348_vm1 = vcmp.eq.f32.partialorder %v5940_v12, %v6505_v14  ;;  %v6525_v12 = vsub.f32 %v4304_v54, %v8678_v16  ;;  %v8682_v14 = vld [vmem:[#allocation90_spill] sm:$0xff]  ;;  %v4122_v16 = vpop.eup %4121 }
 0x25e   : > { %8679 = vst [vmem:[#allocation171_spill] sm:$0xff] %v6519_v55  ;;  %v1349_v52 = vsel %vm1348_vm1, %v1344_v49, inf  ;;  %v4305_v49 = vld [vmem:[%s4376_s29 + $0x268] sm:$0xff]  ;;  %v2566_v17 = vmul.f32 1.442695, %v6519_v55  ;;  %v4124_v37 = vpop.eup %4123  ;;  %4135 = vpow2.f32 %v2556_v33  ;;  %v8688_v55 = vld [vmem:[#allocation98_spill] sm:$0xff] }
 0x25f   : > { %1350 = vmin.xlane.f32.xlu1 %v1349_v52  ;;  %1652 = vmin.xlane.f32.xlu0 %v6514_v45  ;;  %8680 = vst [vmem:[#allocation172_spill] sm:$0xff] %v6525_v12  ;;  %v6533_v7 = vsub.f32 %v4305_v49, %v8682_v14  ;;  %v2717_v52 = vadd.f32 %v4116_v27, %v2716_v46  ;;  %v2564_v61 = vmul.f32 1.442695, %v6525_v12  ;;  %v4306_v45 = vld [vmem:[%s4376_s29 + $0x260] sm:$0xff]  ;;  %v1361_v27 = vcvt.s32.f32 %v1359_v44 }
 0x260   : > { %v6527_v24 = vpop.xlane.xlu0 %1788  ;;  %v6542_v49 = vsub.f32 %v4306_v45, %v8682_v14  ;;  %v1801_v46 = vand.u32 65535, %v8686_v13  ;;  %4137 = vpow2.f32 %v2566_v17  ;;  %v2732_v40 = vsel %vm451_vm0, %v4122_v16, 0.0  ;;  %v8693_v16 = vld [vmem:[#allocation91_spill] sm:$0xff] }
 0x261   : > { %8681 = vst [vmem:[#allocation175_spill] sm:$0xff] %v6527_v24  ;;  %8683 = vst [vmem:[#allocation181_spill] sm:$0xff] %v6533_v7  ;;  %vm1790_vm2 = vcmp.eq.f32.partialorder %v5951_v8, %v6527_v24  ;;  %v2574_v42 = vmul.f32 1.442695, %v6533_v7  ;;  %4139 = vpow2.f32 %v2564_v61  ;;  %v8694_v7 = vld [vmem:[#allocation106_spill] sm:$0xff] }
 0x262   : > { %v1791_v54 = vsel %vm1790_vm2, %v1786_v43, inf  ;;  %8684 = vst [vmem:[#allocation210_spill] sm:$0xff] %v6542_v49  ;;  %v8687_v43 = vld [vmem:[#allocation87_spill] sm:$0xff]  ;;  %v4126_v12 = vpop.eup %4125  ;;  %v2572_v44 = vmul.f32 1.442695, %v6542_v49  ;;  %v1803_v13 = vcvt.s32.f32 %v1801_v46 }
 0x263   : > { %1792 = vmin.xlane.f32.xlu1 %v1791_v54  ;;  %2718 = vadd.xlane.f32.xlu0 %v2717_v52  ;;  %v2725_v52 = vadd.f32 %v4120_v1, %v2724_v19  ;;  %v4307_v54 = vld [vmem:[%s4376_s29 + $0x288] sm:$0xff]  ;;  %v8691_v1 = vld [vmem:[#allocation93_spill] sm:$0xff]  ;;  %v4128_v17 = vpop.eup %4127  ;;  %4141 = vpow2.f32 %v2574_v42  ;;  %v2740_v42 = vsel %vm451_vm0, %v4126_v12, 0.0  ;;  %v8701_v12 = vld [vmem:[#allocation92_spill] sm:$0xff] }
 0x264   : > { %v6546_v8 = vpop.xlane.xlu0 %1363  ;;  %v6554_v45 = vsub.f32 %v4307_v54, %v8688_v55  ;;  %v1376_v19 = vand.u32 65535, %v8691_v1  ;;  %v4309_v54 = vld [vmem:[%s4376_s29 + $0x2a8] sm:$0xff]  ;;  %v6572_v1 = vpop.xlane.xlu1 %2730  ;;  %4143 = vpow2.f32 %v2572_v44 }
 0x265   : > { %vm1365_vm3 = vcmp.eq.f32.partialorder %v8687_v43, %v6546_v8  ;;  %v4308_v43 = vld [vmem:[%s4376_s29 + $0x280] sm:$0xff]  ;;  %v6570_v46 = vsub.f32 %v4309_v54, %v8694_v7  ;;  %8696 = vst [vmem:[#allocation212_spill] sm:$0xff] %v6572_v1  ;;  %v4311_v1 = vld [vmem:[%s4376_s29 + $0x2c8] sm:$0xff] }
 0x266   : > { %8689 = vst [vmem:[#allocation89_spill] sm:$0xff] %v6554_v45  ;;  %v1366_v14 = vsel %vm1365_vm3, %v1361_v27, inf  ;;  %v6563_v27 = vsub.f32 %v4308_v43, %v8688_v55  ;;  %v2582_v61 = vmul.f32 1.442695, %v6554_v45  ;;  %v4310_v43 = vld [vmem:[%s4376_s29 + $0x2a0] sm:$0xff] }
 0x267   : > { %1367 = vmin.xlane.f32.xlu1 %v1366_v14  ;;  %2726 = vadd.xlane.f32.xlu0 %v2725_v52  ;;  %v2733_v14 = vadd.f32 %v4124_v37, %v2732_v40  ;;  %v4130_v52 = vpop.eup %4129  ;;  %8695 = vst [vmem:[#allocation91_spill] sm:$0xff] %v6570_v46  ;;  %v1378_v37 = vcvt.s32.f32 %v1376_v19  ;;  %v8698_v55 = vld [vmem:[#allocation94_spill] sm:$0xff]  ;;  %v2590_v44 = vmul.f32 1.442695, %v6570_v46  ;;  %v4313_v46 = vld [vmem:[%s4376_s29 + $0x2e8] sm:$0xff] }
 0x268   : > { %v6558_v33 = vpop.xlane.xlu0 %1805  ;;  %8692 = vst [vmem:[#allocation93_spill] sm:$0xff] %v6563_v27  ;;  %v1818_v45 = vand.u32 65535, %v8698_v55  ;;  %v4132_v54 = vpop.eup %4131  ;;  %v2580_v24 = vmul.f32 1.442695, %v6563_v27  ;;  %4145 = vpow2.f32 %v2582_v61  ;;  %v2748_v19 = vsel %vm451_vm0, %v4130_v52, 0.0  ;;  %v8705_v61 = vld [vmem:[#allocation99_spill] sm:$0xff] }
 0x269   : > { %8690 = vst [vmem:[#allocation87_spill] sm:$0xff] %v6558_v33  ;;  %vm1807_vm4 = vcmp.eq.f32.partialorder %v8693_v16, %v6558_v33  ;;  %v6577_v16 = vsub.f32 %v4310_v43, %v8694_v7  ;;  %v4134_v43 = vpop.eup %4133  ;;  %v4312_v7 = vld [vmem:[%s4376_s29 + $0x2c0] sm:$0xff]  ;;  %v6596_v27 = vpop.xlane.xlu1 %2738 }
 0x26a   : > { %v1808_v49 = vsel %vm1807_vm4, %v1803_v13, inf  ;;  %v8699_v13 = vld [vmem:[#allocation114_spill] sm:$0xff]  ;;  %8703 = vst [vmem:[#allocation214_spill] sm:$0xff] %v6596_v27  ;;  %4147 = vpow2.f32 %v2580_v24 }
 0x26b   : > { %1809 = vmin.xlane.f32.xlu1 %v1808_v49  ;;  %2734 = vadd.xlane.f32.xlu0 %v2733_v14  ;;  %8697 = vst [vmem:[#allocation213_spill] sm:$0xff] %v6577_v16  ;;  %v6585_v33 = vsub.f32 %v4311_v1, %v8699_v13  ;;  %v2741_v49 = vadd.f32 %v4128_v17, %v2740_v42  ;;  %v2588_v55 = vmul.f32 1.442695, %v6577_v16  ;;  %v1820_v17 = vcvt.s32.f32 %v1818_v45 }
 0x26c   : > { %v6579_v40 = vpop.xlane.xlu0 %1380  ;;  %v6594_v1 = vsub.f32 %v4312_v7, %v8699_v13  ;;  %v1393_v42 = vand.u32 65535, %v8705_v61  ;;  %4149 = vpow2.f32 %v2590_v44  ;;  %v8707_v7 = vld [vmem:[#allocation122_spill] sm:$0xff]  ;;  %v2756_v16 = vsel %vm451_vm0, %v4134_v43, 0.0  ;;  %v8712_v43 = vld [vmem:[#allocation97_spill] sm:$0xff] }
 0x26d   : > { %8700 = vst [vmem:[#allocation94_spill] sm:$0xff] %v6585_v33  ;;  %vm1382_vm5 = vcmp.eq.f32.partialorder %v8701_v12, %v6579_v40  ;;  %v2598_v52 = vmul.f32 1.442695, %v6585_v33  ;;  %v6606_v13 = vsub.f32 %v4313_v46, %v8707_v7  ;;  %4151 = vpow2.f32 %v2588_v55  ;;  %v4314_v33 = vld [vmem:[%s4376_s29 + $0x2e0] sm:$0xff] }
 0x26e   : > { %v1383_v14 = vsel %vm1382_vm5, %v1378_v37, inf  ;;  %8702 = vst [vmem:[#allocation92_spill] sm:$0xff] %v6594_v1  ;;  %v8706_v37 = vld [vmem:[#allocation96_spill] sm:$0xff]  ;;  %v2596_v24 = vmul.f32 1.442695, %v6594_v1  ;;  %v6615_v46 = vsub.f32 %v4314_v33, %v8707_v7  ;;  %v8713_v1 = vld [vmem:[#allocation130_spill] sm:$0xff] }
 0x26f   : > { %1384 = vmin.xlane.f32.xlu1 %v1383_v14  ;;  %2742 = vadd.xlane.f32.xlu0 %v2741_v49  ;;  %v2749_v49 = vadd.f32 %v4132_v54, %v2748_v19  ;;  %v4136_v14 = vpop.eup %4135  ;;  %8708 = vst [vmem:[#allocation99_spill] sm:$0xff] %v6606_v13  ;;  %v1395_v54 = vcvt.s32.f32 %v1393_v42  ;;  %v8710_v19 = vld [vmem:[#allocation100_spill] sm:$0xff]  ;;  %4153 = vpow2.f32 %v2598_v52  ;;  %v2606_v55 = vmul.f32 1.442695, %v6606_v13  ;;  %v6624_v42 = vpop.xlane.xlu1 %2746 }
 0x270   : > { %v6598_v12 = vpop.xlane.xlu0 %1822  ;;  %v4138_v45 = vpop.eup %4137  ;;  %8711 = vst [vmem:[#allocation100_spill] sm:$0xff] %v6615_v46  ;;  %8715 = vst [vmem:[#allocation216_spill] sm:$0xff] %v6624_v42  ;;  %4155 = vpow2.f32 %v2596_v24  ;;  %v2604_v13 = vmul.f32 1.442695, %v6615_v46  ;;  %v8718_v42 = vld [vmem:[#allocation101_spill] sm:$0xff] }
 0x271   : > { %8704 = vst [vmem:[#allocation215_spill] sm:$0xff] %v6598_v12  ;;  %vm1824_vm6 = vcmp.eq.f32.partialorder %v8706_v37, %v6598_v12  ;;  %v1835_v37 = vand.u32 65535, %v8710_v19  ;;  %v4140_v44 = vpop.eup %4139  ;;  %v2764_v52 = vsel %vm451_vm0, %v4138_v45, 0.0  ;;  %4157 = vpow2.f32 %v2606_v55 }
 0x272   : > { %v1825_v27 = vsel %vm1824_vm6, %v1820_v17, inf  ;;  %v2757_v17 = vadd.f32 %v4136_v14, %v2756_v16  ;;  %v8716_v16 = vld [vmem:[#allocation104_spill] sm:$0xff]  ;;  %4159 = vpow2.f32 %v2604_v13 }
 0x273   : > { %1826 = vmin.xlane.f32.xlu1 %v1825_v27  ;;  %2750 = vadd.xlane.f32.xlu0 %v2749_v49  ;;  %v4142_v27 = vpop.eup %4141  ;;  %v4315_v49 = vld [vmem:[%s4376_s29 + $0x308] sm:$0xff]  ;;  %v1410_v14 = vand.u32 65535, %v8716_v16 }
 0x274   : > { %v6610_v61 = vpop.xlane.xlu0 %1397  ;;  %v6622_v12 = vsub.f32 %v4315_v49, %v8713_v1  ;;  %v4144_v7 = vpop.eup %4143 }
 0x275   : > { %8709 = vst [vmem:[#allocation96_spill] sm:$0xff] %v6610_v61  ;;  %vm1399_vm7 = vcmp.eq.f32.partialorder %v8712_v43, %v6610_v61  ;;  %v1837_v43 = vcvt.s32.f32 %v1835_v37  ;;  %v4316_v61 = vld [vmem:[%s4376_s29 + $0x300] sm:$0xff]  ;;  %v4146_v37 = vpop.eup %4145  ;;  %v1412_v46 = vcvt.s32.f32 %v1410_v14  ;;  %s3786_s29 = sshll.u32 %s9005_s13, 3 }
 0x276   : > { %8714 = vst [vmem:[#allocation97_spill] sm:$0xff] %v6622_v12  ;;  %v1400_v19 = vsel %vm1399_vm7, %v1395_v54, inf  ;;  %v6633_v49 = vsub.f32 %v4316_v61, %v8713_v1  ;;  %v2765_v54 = vadd.f32 %v4140_v44, %v2764_v52  ;;  %v2614_v45 = vmul.f32 1.442695, %v6622_v12  ;;  %v8720_v61 = vld [vmem:[#allocation105_spill] sm:$0xff]  ;;  %v8721_v44 = vld [vmem:[#allocation102_spill] sm:$0xff]  ;;  %s7244_s16 = scalar_lea.vmem %s7985_s2, %s3786_s29 }
 0x277   : > { %1401 = vmin.xlane.f32.xlu1 %v1400_v19  ;;  %2758 = vadd.xlane.f32.xlu0 %v2757_v17  ;;  %v2772_v17 = vsel %vm451_vm0, %v4142_v27, 0.0  ;;  %v6639_v19 = vpop.xlane.xlu1 %2754  ;;  %v1852_v1 = vand.u32 65535, %v8720_v61  ;;  %v4148_v52 = vpop.eup %4147 }
 0x278   : > { %v6627_v33 = vpop.xlane.xlu0 %1839  ;;  %8717 = vst [vmem:[#allocation104_spill] sm:$0xff] %v6633_v49  ;;  %8719 = vst [vmem:[#allocation101_spill] sm:$0xff] %v6639_v19  ;;  %v2773_v55 = vadd.f32 %v4144_v7, %v2772_v17  ;;  %4161 = vpow2.f32 %v2614_v45  ;;  %v8723_v19 = vld [vmem:[#allocation109_spill] sm:$0xff] }
 0x279   : > { %vm1841_vm8 = vcmp.eq.f32.partialorder %v8718_v42, %v6627_v33  ;;  %v2612_v42 = vmul.f32 1.442695, %v6633_v49  ;;  %v1854_v14 = vcvt.s32.f32 %v1852_v1  ;;  %v1427_v61 = vand.u32 65535, %v8723_v19  ;;  %v8724_v49 = vld [vmem:[#allocation107_spill] sm:$0xff]  ;;  %v8727_v1 = vld [vmem:[#allocation110_spill] sm:$0xff] }
 0x27a   : > { %v1842_v24 = vsel %vm1841_vm8, %v1837_v43, inf  ;;  %v2780_v43 = vsel %vm451_vm0, %v4146_v37, 0.0 }
 0x27b   : > { %1843 = vmin.xlane.f32.xlu1 %v1842_v24  ;;  %2766 = vadd.xlane.f32.xlu0 %v2765_v54  ;;  %v4150_v54 = vpop.eup %4149  ;;  %4163 = vpow2.f32 %v2612_v42  ;;  %v6653_v17 = vpop.xlane.xlu1 %2762  ;;  %v8728_v42 = vld [vmem:[#allocation108_spill] sm:$0xff] }
 0x27c   : > { %v6641_v16 = vpop.xlane.xlu0 %1414  ;;  %v4152_v13 = vpop.eup %4151  ;;  %8725 = vst [vmem:[#allocation102_spill] sm:$0xff] %v6653_v17  ;;  %v2788_v45 = vsel %vm451_vm0, %v4150_v54, 0.0 }
 0x27d   : > { %vm1416_vm9 = vcmp.eq.f32.partialorder %v8721_v44, %v6641_v16  ;;  %v2781_v44 = vadd.f32 %v4148_v52, %v2780_v43  ;;  %v4154_v7 = vpop.eup %4153  ;;  %v2789_v12 = vadd.f32 %v4152_v13, %v2788_v45 }
 0x27e   : > { %v1417_v27 = vsel %vm1416_vm9, %v1412_v46, inf  ;;  %v4156_v19 = vpop.eup %4155  ;;  %v2796_v52 = vsel %vm451_vm0, %v4154_v7, 0.0 }
 0x27f   : > { %1418 = vmin.xlane.f32.xlu1 %v1417_v27  ;;  %2774 = vadd.xlane.f32.xlu0 %v2773_v55  ;;  %v1429_v55 = vcvt.s32.f32 %v1427_v61  ;;  %v1869_v27 = vand.u32 65535, %v8727_v1  ;;  %v4158_v43 = vpop.eup %4157  ;;  %v8731_v1 = vld [vmem:[#allocation112_spill] sm:$0xff]  ;;  %v2797_v17 = vadd.f32 %v4156_v19, %v2796_v52 }
 0x280   : > { %v6648_v24 = vpop.xlane.xlu0 %1856  ;;  %v2804_v13 = vsel %vm451_vm0, %v4158_v43, 0.0 }
 0x281   : > { %8722 = vst [vmem:[#allocation105_spill] sm:$0xff] %v6648_v24  ;;  %vm1858_vm10 = vcmp.eq.f32.partialorder %v8724_v49, %v6648_v24  ;;  %v4160_v24 = vpop.eup %4159 }
 0x282   : > { %v1859_v46 = vsel %vm1858_vm10, %v1854_v14, inf  ;;  %v6662_v14 = vpop.xlane.xlu1 %2770 }
 0x283   : > { %1860 = vmin.xlane.f32.xlu1 %v1859_v46  ;;  %2782 = vadd.xlane.f32.xlu0 %v2781_v44  ;;  %8729 = vst [vmem:[#allocation107_spill] sm:$0xff] %v6662_v14  ;;  %v1871_v44 = vcvt.s32.f32 %v1869_v27  ;;  %v8730_v46 = vld [vmem:[#allocation115_spill] sm:$0xff]  ;;  %v8733_v27 = vld [vmem:[#allocation113_spill] sm:$0xff] }
 0x284   : > { %v6656_v37 = vpop.xlane.xlu0 %1431  ;;  %v1444_v61 = vand.u32 65535, %v8730_v46  ;;  %v2805_v46 = vadd.f32 %v4160_v24, %v2804_v13 }
 0x285   : > { %8726 = vst [vmem:[#allocation109_spill] sm:$0xff] %v6656_v37  ;;  %vm1433_vm11 = vcmp.eq.f32.partialorder %v8728_v42, %v6656_v37  ;;  %v4162_v45 = vpop.eup %4161 }
 0x286   : > { %v1434_v49 = vsel %vm1433_vm11, %v1429_v55, inf  ;;  %v8732_v55 = vld [vmem:[#allocation116_spill] sm:$0xff]  ;;  %v6675_v37 = vpop.xlane.xlu1 %2778  ;;  %v2812_v52 = vsel %vm451_vm0, %v4162_v45, 0.0  ;;  %v8738_v45 = vld [vmem:[#allocation121_spill] sm:$0xff] }
 0x287   : > { %1435 = vmin.xlane.f32.xlu1 %v1434_v49  ;;  %2790 = vadd.xlane.f32.xlu0 %v2789_v12  ;;  %v1446_v12 = vcvt.s32.f32 %v1444_v61  ;;  %v1886_v49 = vand.u32 65535, %v8732_v55  ;;  %8734 = vst [vmem:[#allocation110_spill] sm:$0xff] %v6675_v37  ;;  %v8736_v61 = vld [vmem:[#allocation117_spill] sm:$0xff] }
 0x288   : > { %v6664_v54 = vpop.xlane.xlu0 %1873  ;;  %v4164_v14 = vpop.eup %4163 }
 0x289   : > { %vm1875_vm12 = vcmp.eq.f32.partialorder %v8731_v1, %v6664_v54 }
 0x28a   : > { %v1876_v42 = vsel %vm1875_vm12, %v1871_v44, inf  ;;  %v8735_v44 = vld [vmem:[#allocation120_spill] sm:$0xff]  ;;  %v6683_v24 = vpop.xlane.xlu1 %2786 }
 0x28b   : > { %1877 = vmin.xlane.f32.xlu1 %v1876_v42  ;;  %2798 = vadd.xlane.f32.xlu0 %v2797_v17  ;;  %v1888_v17 = vcvt.s32.f32 %v1886_v49  ;;  %v1461_v1 = vand.u32 65535, %v8735_v44  ;;  %v2813_v42 = vadd.f32 %v4164_v14, %v2812_v52  ;;  %8737 = vst [vmem:[#allocation108_spill] sm:$0xff] %v6683_v24  ;;  %v8742_v52 = vld [vmem:[#allocation123_spill] sm:$0xff] }
 0x28c   : > { %v6670_v7 = vpop.xlane.xlu0 %1448 }
 0x28d   : > { %vm1450_vm13 = vcmp.eq.f32.partialorder %v8733_v27, %v6670_v7  ;;  %v1903_v27 = vand.u32 65535, %v8738_v45  ;;  %v8745_v45 = vld [vmem:[#allocation126_spill] sm:$0xff] }
 0x28e   : > { %v1451_v19 = vsel %vm1450_vm13, %v1446_v12, inf  ;;  %v1463_v12 = vcvt.s32.f32 %v1461_v1  ;;  %v1920_v24 = vand.u32 65535, %v8745_v45 }
 0x28f   : > { %1452 = vmin.xlane.f32.xlu1 %v1451_v19  ;;  %2806 = vadd.xlane.f32.xlu0 %v2805_v46  ;;  %v8739_v46 = vld [vmem:[#allocation118_spill] sm:$0xff]  ;;  %v1905_v44 = vcvt.s32.f32 %v1903_v27 }
 0x290   : > { %v6678_v43 = vpop.xlane.xlu0 %1890 }
 0x291   : > { %vm1892_vm14 = vcmp.eq.f32.partialorder %v8736_v61, %v6678_v43  ;;  %v8741_v61 = vld [vmem:[#allocation125_spill] sm:$0xff] }
 0x292   : > { %v1893_v55 = vsel %vm1892_vm14, %v1888_v17, inf  ;;  %v1478_v14 = vand.u32 65535, %v8741_v61  ;;  %v6695_v17 = vpop.xlane.xlu1 %2794  ;;  %v1922_v61 = vcvt.s32.f32 %v1920_v24 }
 0x293   : > { %1894 = vmin.xlane.f32.xlu1 %v1893_v55  ;;  %2814 = vadd.xlane.f32.xlu0 %v2813_v42  ;;  %8743 = vst [vmem:[#allocation112_spill] sm:$0xff] %v6695_v17  ;;  %v8751_v17 = vld [vmem:[#allocation132_spill] sm:$0xff] }
 0x294   : > { %v6685_v13 = vpop.xlane.xlu0 %1465  ;;  %v1480_v55 = vcvt.s32.f32 %v1478_v14 }
 0x295   : > { %vm1467_vm15 = vcmp.eq.f32.partialorder %v8739_v46, %v6685_v13 }
 0x296   : > { %v1468_v49 = vsel %vm1467_vm15, %v1463_v12, inf  ;;  %v8746_v12 = vld [vmem:[#allocation124_spill] sm:$0xff]  ;;  %v6702_v27 = vpop.xlane.xlu1 %2802 }
 0x297   : > { %1469 = vmin.xlane.f32.xlu1 %v1468_v49  ;;  %8747 = vst [vmem:[#allocation113_spill] sm:$0xff] %v6702_v27  ;;  %v8755_v27 = vld [vmem:[#allocation136_spill] sm:$0xff] }
 0x298   : > { %v6690_v19 = vpop.xlane.xlu0 %1907 }
 0x299   : > { %8740 = vst [vmem:[#allocation115_spill] sm:$0xff] %v6690_v19  ;;  %vm1909_vm1 = vcmp.eq.f32.partialorder %v8742_v52, %v6690_v19  ;;  %v8748_v52 = vld [vmem:[#allocation131_spill] sm:$0xff]  ;;  %v1937_v19 = vand.u32 65535, %v8751_v17 }
 0x29a   : > { %v1910_v42 = vsel %vm1909_vm1, %v1905_v44, inf  ;;  %v1495_v37 = vand.u32 65535, %v8748_v52  ;;  %v8749_v44 = vld [vmem:[#allocation128_spill] sm:$0xff] }
 0x29b   : > { %1911 = vmin.xlane.f32.xlu1 %v1910_v42  ;;  %v1939_v52 = vcvt.s32.f32 %v1937_v19 }
 0x29c   : > { %v6697_v1 = vpop.xlane.xlu0 %1482  ;;  %v1497_v45 = vcvt.s32.f32 %v1495_v37 }
 0x29d   : > { %8744 = vst [vmem:[#allocation116_spill] sm:$0xff] %v6697_v1  ;;  %vm1484_vm2 = vcmp.eq.f32.partialorder %v8746_v12, %v6697_v1  ;;  %v6714_v12 = vpop.xlane.xlu1 %2810  ;;  %v1512_v1 = vand.u32 65535, %v8755_v27 }
 0x29e   : > { %v1485_v46 = vsel %vm1484_vm2, %v1480_v55, inf  ;;  %v8752_v55 = vld [vmem:[#allocation129_spill] sm:$0xff]  ;;  %8753 = vst [vmem:[#allocation117_spill] sm:$0xff] %v6714_v12 }
 0x29f   : > { %1486 = vmin.xlane.f32.xlu1 %v1485_v46 }
 0x2a0   : > { %v6704_v49 = vpop.xlane.xlu0 %1924 }
 0x2a1   : > { %vm1926_vm3 = vcmp.eq.f32.partialorder %v8749_v44, %v6704_v49  ;;  %v6721_v37 = vpop.xlane.xlu1 %2818 }
 0x2a2   : > { %v1927_v42 = vsel %vm1926_vm3, %v1922_v61, inf  ;;  %v8756_v61 = vld [vmem:[#allocation133_spill] sm:$0xff]  ;;  %8757 = vst [vmem:[#allocation118_spill] sm:$0xff] %v6721_v37  ;;  %v1676_v37 = vcvt.f32.s32 %v6219_v15 }
 0x2a3   : > { %1928 = vmin.xlane.f32.xlu1 %v1927_v42  ;;  %v1514_v42 = vcvt.s32.f32 %v1512_v1  ;;  %v8760_v1 = vld [vmem:[#allocation134_spill] sm:$0xff] }
 0x2a4   : > { %v6709_v14 = vpop.xlane.xlu0 %1499 }
 0x2a5   : > { %8750 = vst [vmem:[#allocation120_spill] sm:$0xff] %v6709_v14  ;;  %vm1501_vm4 = vcmp.eq.f32.partialorder %v8752_v55, %v6709_v14  ;;  %v8759_v55 = vld [vmem:[#allocation137_spill] sm:$0xff] }
 0x2a6   : > { %v1502_v46 = vsel %vm1501_vm4, %v1497_v45, inf  ;;  %v1954_v14 = vand.u32 65535, %v8759_v55  ;;  %v1234_v45 = vcvt.f32.s32 %v6201_v10 }
 0x2a7   : > { %1503 = vmin.xlane.f32.xlu1 %v1502_v46 }
 0x2a8   : > { %v6716_v24 = vpop.xlane.xlu0 %1941 }
 0x2a9   : > { %8754 = vst [vmem:[#allocation121_spill] sm:$0xff] %v6716_v24  ;;  %vm1943_vm5 = vcmp.eq.f32.partialorder %v8756_v61, %v6716_v24  ;;  %v1956_v61 = vcvt.s32.f32 %v1954_v14 }
 0x2aa   : > { %v1944_v44 = vsel %vm1943_vm5, %v1939_v52, inf  ;;  %v1529_v52 = vand.u32 65535, %v6195_v62  ;;  %v1971_v62 = vand.u32 65535, %v6212_v35 }
 0x2ab   : > { %1945 = vmin.xlane.f32.xlu1 %v1944_v44  ;;  %v1235_v44 = vshll.u32 %v1234_v45, 16 }
 0x2ac   : > { %v6723_v17 = vpop.xlane.xlu0 %1516 }
 0x2ad   : > { %8758 = vst [vmem:[#allocation125_spill] sm:$0xff] %v6723_v17  ;;  %vm1518_vm6 = vcmp.eq.f32.partialorder %v6191_v0, %v6723_v17  ;;  %v1677_v17 = vshll.u32 %v1676_v37, 16 }
 0x2ae   : > { %v1519_v19 = vsel %vm1518_vm6, %v1514_v42, inf }
 0x2af   : > { %1520 = vmin.xlane.f32.xlu1 %v1519_v19  ;;  %v1531_v19 = vcvt.s32.f32 %v1529_v52 }
 0x2b0   : > { %v6729_v27 = vpop.xlane.xlu0 %1958  ;;  %v1232_v46 = vpop.xlane.xlu1 %1231 }
 0x2b1   : > { %v1233_v12 = vcvt.f32.s32 %v1232_v46  ;;  %vm1960_vm7 = vcmp.eq.f32.partialorder %v8760_v1, %v6729_v27  ;;  %v8762_v46 = vld [vmem:[#allocation3_spill] sm:$0xff]  ;;  %v1546_v1 = vand.u32 65535, %v6231_v51 }
 0x2b2   : > { %v1961_v55 = vsel %vm1960_vm7, %v1956_v61, inf }
 0x2b3   : > { %v6735_v10 = vadd.s32 %v1235_v44, %v1233_v12  ;;  %1962 = vmin.xlane.f32.xlu1 %v1961_v55  ;;  %v8761_v12 = vld [vmem:[#allocation2_spill] sm:$0xff]  ;;  %v1973_v44 = vcvt.s32.f32 %v1971_v62 }
 0x2b4   : > { %v6737_v0 = vpop.xlane.xlu0 %1533  ;;  %v1674_v42 = vpop.xlane.xlu1 %1673 }
 0x2b5   : > { %v1675_v24 = vcvt.f32.s32 %v1674_v42  ;;  %vm1535_vm8 = vcmp.eq.f32.partialorder %v6223_v50, %v6737_v0  ;;  %vm2820_vm9 = vcmp.eq.s32.totalorder %v5746_v57, %v6735_v10  ;;  %vm2821_vm10 = vcmp.eq.s32.totalorder %v5751_v26, %v6735_v10 }
 0x2b6   : > { %v1536_v15 = vsel %vm1535_vm8, %v1531_v19, inf  ;;  %v2920_v45 = vsel %vm2820_vm9, %v8761_v12, 0.0  ;;  %v2921_v37 = vsel %vm2821_vm10, %v8762_v46, 0.0  ;;  %v1988_v19 = vand.u32 65535, %v6251_v6 }
 0x2b7   : > { %v6746_v14 = vadd.s32 %v1677_v17, %v1675_v24  ;;  %1537 = vmin.xlane.f32.xlu1 %v1536_v15  ;;  %v3020_v35 = vsel %vm451_vm0, %v2921_v37, 0.0  ;;  %v1548_v15 = vcvt.s32.f32 %v1546_v1  ;;  %v1710_v6 = vcvt.f32.s32 %v6297_v39 }
 0x2b8   : > { %v6750_v61 = vpop.xlane.xlu0 %1975  ;;  %v6752_v52 = vpop.xlane.xlu1 %1248  ;;  %v3021_v50 = vadd.f32 %v3020_v35, %v2920_v45  ;;  %v1990_v37 = vcvt.s32.f32 %v1988_v19  ;;  %v8763_v19 = vld [vmem:[#allocation4_spill] sm:$0xff] }
 0x2b9   : > { %vm1977_vm11 = vcmp.eq.f32.partialorder %v6245_v9, %v6750_v61  ;;  %vm2872_vm12 = vcmp.eq.s32.totalorder %v5746_v57, %v6746_v14  ;;  %vm2873_vm13 = vcmp.eq.s32.totalorder %v5751_v26, %v6746_v14  ;;  %v1268_v9 = vcvt.f32.s32 %v6279_v28 }
 0x2ba   : > { %3022 = vadd.xlane.f32.xlu0 %v3021_v50  ;;  %v1978_v24 = vsel %vm1977_vm11, %v1973_v44, inf  ;;  %v2972_v17 = vsel %vm2872_vm12, %v6410_v38, 0.0  ;;  %v2973_v51 = vsel %vm2873_vm13, %v6382_v25, 0.0  ;;  %v1563_v25 = vand.u32 65535, %v6271_v36 }
 0x2bb   : > { %1979 = vmin.xlane.f32.xlu1 %v1978_v24  ;;  %v3124_v62 = vsel %vm451_vm0, %v2973_v51, 0.0  ;;  %v1269_v35 = vshll.u32 %v1268_v9, 16  ;;  %v1711_v51 = vshll.u32 %v1710_v6, 16 }
 0x2bc   : > { %v6763_v55 = vpop.xlane.xlu0 %1550  ;;  %v6765_v42 = vpop.xlane.xlu1 %1690  ;;  %v3125_v12 = vadd.f32 %v3124_v62, %v2972_v17  ;;  %v1565_v24 = vcvt.s32.f32 %v1563_v25  ;;  %v2005_v17 = vand.u32 65535, %v6290_v21  ;;  %v8764_v62 = vld [vmem:[#allocation5_spill] sm:$0xff] }
 0x2bd   : > { %vm1552_vm14 = vcmp.eq.f32.partialorder %v6264_v18, %v6763_v55 }
 0x2be   : > { %v1553_v45 = vsel %vm1552_vm14, %v1548_v15, inf  ;;  %3126 = vadd.xlane.f32.xlu0 %v3125_v12 }
 0x2bf   : > { %1554 = vmin.xlane.f32.xlu1 %v1553_v45  ;;  %v2007_v45 = vcvt.s32.f32 %v2005_v17 }
 0x2c0   : > { %v6773_v38 = vpop.xlane.xlu0 %1992  ;;  %v1266_v46 = vpop.xlane.xlu1 %1265 }
 0x2c1   : > { %vm1994_vm15 = vcmp.eq.f32.partialorder %v6283_v22, %v6773_v38  ;;  %v1267_v28 = vcvt.f32.s32 %v1266_v46  ;;  %v1580_v46 = vand.u32 65535, %v6309_v60 }
 0x2c2   : > { %v1995_v50 = vsel %vm1994_vm15, %v1990_v37, inf }
 0x2c3   : > { %v6779_v44 = vadd.s32 %v1269_v35, %v1267_v28  ;;  %1996 = vmin.xlane.f32.xlu1 %v1995_v50  ;;  %v1582_v50 = vcvt.s32.f32 %v1580_v46  ;;  %v2039_v46 = vand.u32 65535, %v6377_v63 }
 0x2c4   : > { %v6781_v18 = vpop.xlane.xlu0 %1567  ;;  %v1708_v1 = vpop.xlane.xlu1 %1707 }
 0x2c5   : > { %vm1569_vm1 = vcmp.eq.f32.partialorder %v6301_v34, %v6781_v18  ;;  %v1709_v36 = vcvt.f32.s32 %v1708_v1  ;;  %vm2824_vm2 = vcmp.eq.s32.totalorder %v5746_v57, %v6779_v44  ;;  %vm2825_vm3 = vcmp.eq.s32.totalorder %v5751_v26, %v6779_v44 }
 0x2c6   : > { %v1570_v39 = vsel %vm1569_vm1, %v1565_v24, inf  ;;  %v2924_v9 = vsel %vm2824_vm2, %v8763_v19, 0.0  ;;  %v2925_v15 = vsel %vm2825_vm3, %v8764_v62, 0.0  ;;  %v2022_v1 = vand.u32 65535, %v6329_v58  ;;  %v8765_v58 = vld [vmem:[#allocation144_spill] sm:$0xff] }
 0x2c7   : > { %v6790_v22 = vadd.s32 %v1711_v51, %v1709_v36  ;;  %1571 = vmin.xlane.f32.xlu1 %v1570_v39  ;;  %v3028_v34 = vsel %vm451_vm0, %v2925_v15, 0.0  ;;  %v1302_v24 = vcvt.f32.s32 %v6361_v31  ;;  %v1597_v39 = vand.u32 65535, %v6349_v5 }
 0x2c8   : > { %v6794_v21 = vpop.xlane.xlu0 %2009  ;;  %v6796_v12 = vpop.xlane.xlu1 %1282  ;;  %v3029_v37 = vadd.f32 %v3028_v34, %v2924_v9  ;;  %v2024_v36 = vcvt.s32.f32 %v2022_v1  ;;  %v1744_v9 = vcvt.f32.s32 %v6391_v56 }
 0x2c9   : > { %vm2011_vm4 = vcmp.eq.f32.partialorder %v6323_v3, %v6794_v21  ;;  %vm2876_vm5 = vcmp.eq.s32.totalorder %v5746_v57, %v6790_v22  ;;  %vm2877_vm6 = vcmp.eq.s32.totalorder %v5751_v26, %v6790_v22  ;;  %v1303_v19 = vshll.u32 %v1302_v24, 16 }
 0x2ca   : > { %v2012_v25 = vsel %vm2011_vm4, %v2007_v45, inf  ;;  %v2976_v35 = vsel %vm2876_vm5, %v6439_v47, 0.0  ;;  %v2977_v6 = vsel %vm2877_vm6, %v6431_v30, 0.0  ;;  %3030 = vadd.xlane.f32.xlu0 %v3029_v37  ;;  %v1599_v45 = vcvt.s32.f32 %v1597_v39 }
 0x2cb   : > { %2013 = vmin.xlane.f32.xlu1 %v2012_v25  ;;  %v3132_v3 = vsel %vm451_vm0, %v2977_v6, 0.0  ;;  %v1745_v37 = vshll.u32 %v1744_v9, 16  ;;  %v2041_v24 = vcvt.s32.f32 %v2039_v46 }
 0x2cc   : > { %v6808_v28 = vpop.xlane.xlu0 %1584  ;;  %v6810_v60 = vpop.xlane.xlu1 %1724  ;;  %v3133_v17 = vadd.f32 %v3132_v3, %v2976_v35  ;;  %v8766_v35 = vld [vmem:[#allocation8_spill] sm:$0xff]  ;;  %v8767_v3 = vld [vmem:[#allocation9_spill] sm:$0xff] }
 0x2cd   : > { %vm1586_vm7 = vcmp.eq.f32.partialorder %v6342_v59, %v6808_v28 }
 0x2ce   : > { %v1587_v47 = vsel %vm1586_vm7, %v1582_v50, inf  ;;  %3134 = vadd.xlane.f32.xlu0 %v3133_v17  ;;  %v1614_v17 = vand.u32 65535, %v6406_v29 }
 0x2cf   : > { %1588 = vmin.xlane.f32.xlu1 %v1587_v47  ;;  %v8768_v47 = vld [vmem:[#allocation141_spill] sm:$0xff] }
 0x2d0   : > { %v6817_v30 = vpop.xlane.xlu0 %2026  ;;  %v1300_v51 = vpop.xlane.xlu1 %1299 }
 0x2d1   : > { %vm2028_vm8 = vcmp.eq.f32.partialorder %v8765_v58, %v6817_v30  ;;  %v1301_v31 = vcvt.f32.s32 %v1300_v51  ;;  %v1251_v51 = vcvt.f32.s32 %v8768_v47  ;;  %v1250_v58 = vcvt.f32.s32 %v6752_v52  ;;  %v8769_v52 = vld [vmem:[#allocation139_spill] sm:$0xff] }
 0x2d2   : > { %v2029_v62 = vsel %vm2028_vm8, %v2024_v36, inf }
 0x2d3   : > { %v6823_v15 = vadd.s32 %v1303_v19, %v1301_v31  ;;  %2030 = vmin.xlane.f32.xlu1 %v2029_v62  ;;  %v1616_v62 = vcvt.s32.f32 %v1614_v17 }
 0x2d4   : > { %v6825_v59 = vpop.xlane.xlu0 %1601  ;;  %v1742_v34 = vpop.xlane.xlu1 %1741 }
 0x2d5   : > { %vm1603_vm9 = vcmp.eq.f32.partialorder %v6398_v2, %v6825_v59  ;;  %v1743_v5 = vcvt.f32.s32 %v1742_v34  ;;  %vm2828_vm10 = vcmp.eq.s32.totalorder %v5746_v57, %v6823_v15  ;;  %vm2829_vm11 = vcmp.eq.s32.totalorder %v5751_v26, %v6823_v15 }
 0x2d6   : > { %v1604_v56 = vsel %vm1603_vm9, %v1599_v45, inf  ;;  %v2928_v6 = vsel %vm2828_vm10, %v8766_v35, 0.0  ;;  %v2929_v50 = vsel %vm2829_vm11, %v8767_v3, 0.0  ;;  %v2056_v34 = vand.u32 65535, %v6434_v20  ;;  %v8770_v3 = vld [vmem:[#allocation150_spill] sm:$0xff] }
 0x2d7   : > { %v6834_v25 = vadd.s32 %v1745_v37, %v1743_v5  ;;  %1605 = vmin.xlane.f32.xlu1 %v1604_v56  ;;  %v3036_v2 = vsel %vm451_vm0, %v2929_v50, 0.0  ;;  %v1336_v45 = vcvt.f32.s32 %v6468_v4  ;;  %v1693_v37 = vcvt.f32.s32 %v8769_v52 }
 0x2d8   : > { %v6838_v63 = vpop.xlane.xlu0 %2043  ;;  %v6840_v1 = vpop.xlane.xlu1 %1316  ;;  %v3037_v36 = vadd.f32 %v3036_v2, %v2928_v6  ;;  %v1631_v5 = vand.u32 65535, %v6460_v41  ;;  %v1778_v56 = vcvt.f32.s32 %v6490_v53  ;;  %v2058_v4 = vcvt.s32.f32 %v2056_v34  ;;  %v8772_v41 = vld [vmem:[#allocation142_spill] sm:$0xff] }
 0x2d9   : > { %vm2045_vm12 = vcmp.eq.f32.partialorder %v6424_v48, %v6838_v63  ;;  %vm2880_vm13 = vcmp.eq.s32.totalorder %v5746_v57, %v6834_v25  ;;  %vm2881_vm14 = vcmp.eq.s32.totalorder %v5751_v26, %v6834_v25  ;;  %v1648_v50 = vand.u32 65535, %v8770_v3 }
 0x2da   : > { %v2046_v39 = vsel %vm2045_vm12, %v2041_v24, inf  ;;  %v2980_v19 = vsel %vm2880_vm13, %v6466_v11, 0.0  ;;  %v2981_v9 = vsel %vm2881_vm14, %v6457_v23, 0.0  ;;  %3038 = vadd.xlane.f32.xlu0 %v3037_v36  ;;  %v1252_v11 = vshll.u32 %v1251_v51, 16  ;;  %v8771_v24 = vld [vmem:[#allocation154_spill] sm:$0xff]  ;;  %v8773_v36 = vld [vmem:[#allocation140_spill] sm:$0xff] }
 0x2db   : > { %2047 = vmin.xlane.f32.xlu1 %v2046_v39  ;;  %v3140_v48 = vsel %vm451_vm0, %v2981_v9, 0.0  ;;  %v1692_v2 = vcvt.f32.s32 %v6765_v42  ;;  %v1285_v47 = vcvt.f32.s32 %v8772_v41  ;;  %v1694_v51 = vshll.u32 %v1693_v37, 16 }
 0x2dc   : > { %v6854_v29 = vpop.xlane.xlu0 %1618  ;;  %v6856_v31 = vpop.xlane.xlu1 %1758  ;;  %v3141_v23 = vadd.f32 %v3140_v48, %v2980_v19  ;;  %v6866_v35 = vadd.s32 %v1252_v11, %v1250_v58  ;;  %v1727_v39 = vcvt.f32.s32 %v8773_v36  ;;  %v1779_v9 = vshll.u32 %v1778_v56, 16  ;;  %v8774_v11 = vld [vmem:[#allocation160_spill] sm:$0xff]  ;;  %v8775_v56 = vld [vmem:[#allocation23_spill] sm:$0xff] }
 0x2dd   : > { %vm1620_vm15 = vcmp.eq.f32.partialorder %v6449_v32, %v6854_v29  ;;  %v1337_v32 = vshll.u32 %v1336_v45, 16  ;;  %v1650_v34 = vcvt.s32.f32 %v1648_v50  ;;  %v6882_v42 = vadd.s32 %v1694_v51, %v1692_v2  ;;  %v8779_v51 = vld [vmem:[#allocation163_spill] sm:$0xff] }
 0x2de   : > { %v1621_v46 = vsel %vm1620_vm15, %v1616_v62, inf  ;;  %3142 = vadd.xlane.f32.xlu0 %v3141_v23  ;;  %v1633_v62 = vcvt.s32.f32 %v1631_v5  ;;  %vm2823_vm2 = vcmp.eq.s32.totalorder %v5751_v26, %v6866_v35  ;;  %v1284_v45 = vcvt.f32.s32 %v6796_v12  ;;  %v8777_v12 = vld [vmem:[#allocation145_spill] sm:$0xff] }
 0x2df   : > { %1622 = vmin.xlane.f32.xlu1 %v1621_v46  ;;  %v1286_v46 = vshll.u32 %v1285_v47, 16  ;;  %v1728_v37 = vshll.u32 %v1727_v39, 16  ;;  %v1319_v50 = vcvt.f32.s32 %v8777_v12  ;;  %vm2822_vm6 = vcmp.eq.s32.totalorder %v5746_v57, %v6866_v35 }
 0x2e0   : > { %v6868_v6 = vpop.xlane.xlu0 %2060  ;;  %v1334_v20 = vpop.xlane.xlu1 %1333  ;;  %vm2875_vm8 = vcmp.eq.s32.totalorder %v5751_v26, %v6882_v42  ;;  %vm2874_vm11 = vcmp.eq.s32.totalorder %v5746_v57, %v6882_v42 }
 0x2e1   : > { %vm2062_vm1 = vcmp.eq.f32.partialorder %v8771_v24, %v6868_v6  ;;  %v1335_v17 = vcvt.f32.s32 %v1334_v20  ;;  %v6907_v47 = vadd.s32 %v1286_v46, %v1284_v45  ;;  %v1318_v46 = vcvt.f32.s32 %v6840_v1 }
 0x2e2   : > { %v2063_v53 = vsel %vm2062_vm1, %v2058_v4, inf  ;;  %v8776_v4 = vld [vmem:[#allocation12_spill] sm:$0xff]  ;;  %v1320_v1 = vshll.u32 %v1319_v50, 16 }
 0x2e3   : > { %v6876_v19 = vadd.s32 %v1337_v32, %v1335_v17  ;;  %2064 = vmin.xlane.f32.xlu1 %v2063_v53  ;;  %v8778_v17 = vld [vmem:[#allocation7_spill] sm:$0xff]  ;;  %v1726_v53 = vcvt.f32.s32 %v6810_v60  ;;  %vm2827_vm12 = vcmp.eq.s32.totalorder %v5751_v26, %v6907_v47  ;;  %vm2826_vm13 = vcmp.eq.s32.totalorder %v5746_v57, %v6907_v47 }
 0x2e4   : > { %v6878_v58 = vpop.xlane.xlu0 %1635  ;;  %v1776_v48 = vpop.xlane.xlu1 %1775  ;;  %v2923_v41 = vsel %vm2823_vm2, %v8778_v17, 0.0 }
 0x2e5   : > { %vm1637_vm3 = vcmp.eq.f32.partialorder %v8774_v11, %v6878_v58  ;;  %v1777_v23 = vcvt.f32.s32 %v1776_v48  ;;  %vm2832_vm4 = vcmp.eq.s32.totalorder %v5746_v57, %v6876_v19  ;;  %vm2833_vm5 = vcmp.eq.s32.totalorder %v5751_v26, %v6876_v19  ;;  %v8782_v11 = vld [vmem:[#allocation6_spill] sm:$0xff] }
 0x2e6   : > { %v1638_v52 = vsel %vm1637_vm3, %v1633_v62, inf  ;;  %v2932_v20 = vsel %vm2832_vm4, %v8775_v56, 0.0  ;;  %v2933_v3 = vsel %vm2833_vm5, %v8776_v4, 0.0  ;;  %v8781_v62 = vld [vmem:[#allocation149_spill] sm:$0xff]  ;;  %v2922_v60 = vsel %vm2822_vm6, %v8782_v11, 0.0  ;;  %v8783_v56 = vld [vmem:[#allocation158_spill] sm:$0xff] }
 0x2e7   : > { %v6891_v5 = vadd.s32 %v1779_v9, %v1777_v23  ;;  %1639 = vmin.xlane.f32.xlu1 %v1638_v52  ;;  %v3044_v24 = vsel %vm451_vm0, %v2933_v3, 0.0  ;;  %v8780_v9 = vld [vmem:[#allocation159_spill] sm:$0xff]  ;;  %v3024_v23 = vsel %vm451_vm0, %v2923_v41, 0.0  ;;  %v1370_v4 = vcvt.f32.s32 %v6546_v8 }
 0x2e8   : > { %v6896_v32 = vpop.xlane.xlu0 %1652  ;;  %v6898_v2 = vpop.xlane.xlu1 %1350  ;;  %v3045_v36 = vadd.f32 %v3044_v24, %v2932_v20  ;;  %v2975_v20 = vsel %vm2875_vm8, %v8783_v56, 0.0  ;;  %v6930_v3 = vadd.s32 %v1728_v37, %v1726_v53  ;;  %v8784_v24 = vld [vmem:[#allocation153_spill] sm:$0xff]  ;;  %v3025_v41 = vadd.f32 %v3024_v23, %v2922_v60  ;;  %v8787_v37 = vld [vmem:[#allocation11_spill] sm:$0xff]  ;;  %v8788_v23 = vld [vmem:[#allocation166_spill] sm:$0xff] }
 0x2e9   : > { %vm1654_vm7 = vcmp.eq.f32.partialorder %v8779_v51, %v6896_v32  ;;  %vm2884_vm9 = vcmp.eq.s32.totalorder %v5746_v57, %v6891_v5  ;;  %vm2885_vm10 = vcmp.eq.s32.totalorder %v5751_v26, %v6891_v5  ;;  %v1761_v17 = vcvt.f32.s32 %v8784_v24  ;;  %v8785_v51 = vld [vmem:[#allocation162_spill] sm:$0xff]  ;;  %v8789_v56 = vld [vmem:[#allocation175_spill] sm:$0xff] }
 0x2ea   : > { %v1655_v39 = vsel %vm1654_vm7, %v1650_v34, inf  ;;  %v2984_v48 = vsel %vm2884_vm9, %v8780_v9, 0.0  ;;  %v2985_v45 = vsel %vm2885_vm10, %v8781_v62, 0.0  ;;  %3046 = vadd.xlane.f32.xlu0 %v3045_v36  ;;  %v2974_v36 = vsel %vm2874_vm11, %v8785_v51, 0.0  ;;  %v8786_v9 = vld [vmem:[#allocation87_spill] sm:$0xff] }
 0x2eb   : > { %1656 = vmin.xlane.f32.xlu1 %v1655_v39  ;;  %v3148_v34 = vsel %vm451_vm0, %v2985_v45, 0.0  ;;  %v3128_v39 = vsel %vm451_vm0, %v2975_v20, 0.0  ;;  %v1812_v62 = vcvt.f32.s32 %v8786_v9  ;;  %v6938_v45 = vadd.s32 %v1320_v1, %v1318_v46  ;;  %v8790_v1 = vld [vmem:[#allocation10_spill] sm:$0xff] }
 0x2ec   : > { %v6923_v52 = vpop.xlane.xlu1 %1792  ;;  %v3149_v12 = vadd.f32 %v3148_v34, %v2984_v48  ;;  %v2927_v53 = vsel %vm2827_vm12, %v8787_v37, 0.0  ;;  %v1371_v50 = vshll.u32 %v1370_v4, 16  ;;  %v1760_v48 = vcvt.f32.s32 %v6856_v31  ;;  %v8791_v31 = vld [vmem:[#allocation164_spill] sm:$0xff]  ;;  %v8793_v37 = vld [vmem:[#allocation27_spill] sm:$0xff] }
 0x2ed   : > { %vm2879_vm14 = vcmp.eq.s32.totalorder %v5751_v26, %v6930_v3  ;;  %v1762_v60 = vshll.u32 %v1761_v17, 16  ;;  %v1353_v34 = vcvt.f32.s32 %v8788_v23  ;;  %v3129_v46 = vadd.f32 %v3128_v39, %v2974_v36 }
 0x2ee   : > { %3150 = vadd.xlane.f32.xlu0 %v3149_v12  ;;  %v1795_v20 = vcvt.f32.s32 %v8789_v56  ;;  %v2926_v24 = vsel %vm2826_vm13, %v8790_v1, 0.0  ;;  %v1813_v51 = vshll.u32 %v1812_v62, 16  ;;  %vm2878_vm15 = vcmp.eq.s32.totalorder %v5746_v57, %v6930_v3  ;;  %v6970_v56 = vpop.xlane.xlu0 %2718 }
 0x2ef   : > { %3026 = vadd.xlane.f32.xlu1 %v3025_v41  ;;  %v3032_v41 = vsel %vm451_vm0, %v2927_v53, 0.0  ;;  %v2979_v9 = vsel %vm2879_vm14, %v8791_v31, 0.0  ;;  %vm2831_vm1 = vcmp.eq.s32.totalorder %v5751_v26, %v6938_v45  ;;  %v6957_v17 = vadd.s32 %v1762_v60, %v1760_v48  ;;  %8796 = vst [vmem:[#allocation126_spill] sm:$0xff] %v6970_v56 }
 0x2f0   : > { %v1368_v8 = vpop.xlane.xlu1 %1367  ;;  %v1352_v36 = vcvt.f32.s32 %v6898_v2  ;;  %v3033_v62 = vadd.f32 %v3032_v41, %v2926_v24  ;;  %v3136_v60 = vsel %vm451_vm0, %v2979_v9, 0.0  ;;  %v1796_v2 = vshll.u32 %v1795_v20, 16  ;;  %v8797_v24 = vld [vmem:[#allocation14_spill] sm:$0xff] }
 0x2f1   : > { %v1369_v11 = vcvt.f32.s32 %v1368_v8  ;;  %8792 = vst [vmem:[#allocation123_spill] sm:$0xff] %v6957_v17  ;;  %v1354_v8 = vshll.u32 %v1353_v34, 16  ;;  %vm2830_vm4 = vcmp.eq.s32.totalorder %v5746_v57, %v6938_v45  ;;  %v2931_v41 = vsel %vm2831_vm1, %v8797_v24, 0.0 }
 0x2f2   : > { %vm2883_vm5 = vcmp.eq.s32.totalorder %v5751_v26, %v6957_v17  ;;  %v1387_v20 = vcvt.f32.s32 %v6579_v40  ;;  %vm2882_vm8 = vcmp.eq.s32.totalorder %v5746_v57, %v6957_v17 }
 0x2f3   : > { %v6948_v12 = vadd.s32 %v1371_v50, %v1369_v11  ;;  %3130 = vadd.xlane.f32.xlu1 %v3129_v46  ;;  %v8794_v11 = vld [vmem:[#allocation28_spill] sm:$0xff] }
 0x2f4   : > { %v1810_v4 = vpop.xlane.xlu1 %1809  ;;  %v8795_v46 = vld [vmem:[#allocation168_spill] sm:$0xff] }
 0x2f5   : > { %v1811_v39 = vcvt.f32.s32 %v1810_v4  ;;  %vm2836_vm2 = vcmp.eq.s32.totalorder %v5746_v57, %v6948_v12  ;;  %vm2837_vm3 = vcmp.eq.s32.totalorder %v5751_v26, %v6948_v12  ;;  %v2978_v48 = vsel %vm2878_vm15, %v8795_v46, 0.0 }
 0x2f6   : > { %v2936_v53 = vsel %vm2836_vm2, %v8793_v37, 0.0  ;;  %v2937_v23 = vsel %vm2837_vm3, %v8794_v11, 0.0  ;;  %v1794_v4 = vcvt.f32.s32 %v6923_v52  ;;  %v3137_v9 = vadd.f32 %v3136_v60, %v2978_v48  ;;  %v8800_v37 = vld [vmem:[#allocation13_spill] sm:$0xff]  ;;  %v8801_v11 = vld [vmem:[#allocation96_spill] sm:$0xff] }
 0x2f7   : > { %v6965_v50 = vadd.s32 %v1813_v51, %v1811_v39  ;;  %3034 = vadd.xlane.f32.xlu1 %v3033_v62  ;;  %v3052_v34 = vsel %vm451_vm0, %v2937_v23, 0.0  ;;  %v6979_v51 = vadd.s32 %v1354_v8, %v1352_v36  ;;  %v8798_v39 = vld [vmem:[#allocation167_spill] sm:$0xff]  ;;  %v8799_v36 = vld [vmem:[#allocation157_spill] sm:$0xff]  ;;  %v2930_v52 = vsel %vm2830_vm4, %v8800_v37, 0.0 }
 0x2f8   : > { %v1385_v1 = vpop.xlane.xlu1 %1384  ;;  %v3053_v31 = vadd.f32 %v3052_v34, %v2936_v53  ;;  %v3040_v53 = vsel %vm451_vm0, %v2931_v41, 0.0  ;;  %v1404_v23 = vcvt.f32.s32 %v8801_v11  ;;  %v8802_v48 = vld [vmem:[#allocation169_spill] sm:$0xff]  ;;  %v6998_v34 = vadd.s32 %v1796_v2, %v1794_v4  ;;  %v8805_v4 = vld [vmem:[#allocation15_spill] sm:$0xff] }
 0x2f9   : > { %vm2888_vm6 = vcmp.eq.s32.totalorder %v5746_v57, %v6965_v50  ;;  %vm2889_vm7 = vcmp.eq.s32.totalorder %v5751_v26, %v6965_v50  ;;  %v2983_v60 = vsel %vm2883_vm5, %v8802_v48, 0.0  ;;  %v1386_v24 = vcvt.f32.s32 %v1385_v1 }
 0x2fa   : > { %3054 = vadd.xlane.f32.xlu0 %v3053_v31  ;;  %v2988_v62 = vsel %vm2888_vm6, %v8798_v39, 0.0  ;;  %v2989_v8 = vsel %vm2889_vm7, %v8799_v36, 0.0  ;;  %vm2835_vm9 = vcmp.eq.s32.totalorder %v5751_v26, %v6979_v51  ;;  %v8803_v39 = vld [vmem:[#allocation215_spill] sm:$0xff]  ;;  %v7003_v36 = vpop.xlane.xlu0 %2726  ;;  %v1388_v37 = vshll.u32 %v1387_v20, 16 }
 0x2fb   : > { %3138 = vadd.xlane.f32.xlu1 %v3137_v9  ;;  %v3156_v46 = vsel %vm451_vm0, %v2989_v8, 0.0  ;;  %v1829_v41 = vcvt.f32.s32 %v8803_v39  ;;  %v3041_v9 = vadd.f32 %v3040_v53, %v2930_v52  ;;  %v8804_v8 = vld [vmem:[#allocation174_spill] sm:$0xff]  ;;  %v3144_v56 = vsel %vm451_vm0, %v2983_v60, 0.0 }
 0x2fc   : > { %v1827_v40 = vpop.xlane.xlu1 %1826  ;;  %v3157_v31 = vadd.f32 %v3156_v46, %v2988_v62  ;;  %v2982_v11 = vsel %vm2882_vm8, %v8804_v8, 0.0  ;;  %v1405_v17 = vshll.u32 %v1404_v23, 16  ;;  %v1846_v2 = vcvt.f32.s32 %v6627_v33  ;;  %v8807_v23 = vld [vmem:[#allocation26_spill] sm:$0xff] }
 0x2fd   : > { %vm2834_vm10 = vcmp.eq.s32.totalorder %v5746_v57, %v6979_v51  ;;  %v2935_v62 = vsel %vm2835_vm9, %v8805_v4, 0.0  ;;  %v7011_v46 = vadd.s32 %v1388_v37, %v1386_v24  ;;  %v1828_v48 = vcvt.f32.s32 %v1827_v40  ;;  %v8808_v37 = vld [vmem:[#allocation176_spill] sm:$0xff] }
 0x2fe   : > { %3158 = vadd.xlane.f32.xlu0 %v3157_v31  ;;  %vm2887_vm11 = vcmp.eq.s32.totalorder %v5751_v26, %v6998_v34  ;;  %v1830_v20 = vshll.u32 %v1829_v41, 16  ;;  %v3145_v53 = vadd.f32 %v3144_v56, %v2982_v11  ;;  %v2934_v33 = vsel %vm2834_vm10, %v8807_v23, 0.0 }
 0x2ff   : > { %3042 = vadd.xlane.f32.xlu1 %v3041_v9  ;;  %8806 = vst [vmem:[#allocation124_spill] sm:$0xff] %v7011_v46  ;;  %v3048_v31 = vsel %vm451_vm0, %v2935_v62, 0.0  ;;  %vm2886_vm12 = vcmp.eq.s32.totalorder %v5746_v57, %v6998_v34  ;;  %v1847_v39 = vshll.u32 %v1846_v2, 16  ;;  %v1421_v24 = vcvt.f32.s32 %v6641_v16  ;;  %v7022_v9 = vpop.xlane.xlu0 %2734  ;;  %v8809_v16 = vld [vmem:[#allocation33_spill] sm:$0xff]  ;;  %v8810_v2 = vld [vmem:[#allocation178_spill] sm:$0xff] }
 0x300   : > { %v1402_v1 = vpop.xlane.xlu1 %1401  ;;  %v2987_v8 = vsel %vm2887_vm11, %v8808_v37, 0.0  ;;  %v7025_v41 = vadd.s32 %v1830_v20, %v1828_v48  ;;  %vm2839_vm14 = vcmp.eq.s32.totalorder %v5751_v26, %v7011_v46  ;;  %v3049_v56 = vadd.f32 %v3048_v31, %v2934_v33  ;;  %v8812_v62 = vld [vmem:[#allocation34_spill] sm:$0xff]  ;;  %v8813_v33 = vld [vmem:[#allocation32_spill] sm:$0xff] }
 0x301   : > { %v1403_v52 = vcvt.f32.s32 %v1402_v1  ;;  %v2986_v1 = vsel %vm2886_vm12, %v8810_v2, 0.0  ;;  %vm2838_vm1 = vcmp.eq.s32.totalorder %v5746_v57, %v7011_v46  ;;  %v1422_v20 = vshll.u32 %v1421_v24, 16  ;;  %v8815_v24 = vld [vmem:[#allocation31_spill] sm:$0xff] }
 0x302   : > { %v2939_v31 = vsel %vm2839_vm14, %v8813_v33, 0.0  ;;  %vm2891_vm2 = vcmp.eq.s32.totalorder %v5751_v26, %v7025_v41  ;;  %vm2890_vm5 = vcmp.eq.s32.totalorder %v5746_v57, %v7025_v41 }
 0x303   : > { %v7015_v60 = vadd.s32 %v1405_v17, %v1403_v52  ;;  %3146 = vadd.xlane.f32.xlu1 %v3145_v53  ;;  %v3152_v52 = vsel %vm451_vm0, %v2987_v8, 0.0 }
 0x304   : > { %v1844_v40 = vpop.xlane.xlu1 %1843  ;;  %v3153_v8 = vadd.f32 %v3152_v52, %v2986_v1  ;;  %v8819_v52 = vld [vmem:[#allocation179_spill] sm:$0xff] }
 0x305   : > { %v1845_v17 = vcvt.f32.s32 %v1844_v40  ;;  %vm2840_vm13 = vcmp.eq.s32.totalorder %v5746_v57, %v7015_v60  ;;  %vm2841_vm15 = vcmp.eq.s32.totalorder %v5751_v26, %v7015_v60  ;;  %v8814_v40 = vld [vmem:[#allocation105_spill] sm:$0xff] }
 0x306   : > { %v2940_v11 = vsel %vm2840_vm13, %v8809_v16, 0.0  ;;  %v2941_v48 = vsel %vm2841_vm15, %v8812_v62, 0.0  ;;  %v1863_v37 = vcvt.f32.s32 %v8814_v40  ;;  %v8817_v62 = vld [vmem:[#allocation172_spill] sm:$0xff]  ;;  %v2991_v40 = vsel %vm2891_vm2, %v8819_v52, 0.0 }
 0x307   : > { %v7035_v4 = vadd.s32 %v1847_v39, %v1845_v17  ;;  %3050 = vadd.xlane.f32.xlu1 %v3049_v56  ;;  %v3060_v23 = vsel %vm451_vm0, %v2941_v48, 0.0  ;;  %v7046_v39 = vpop.xlane.xlu0 %2742  ;;  %v2938_v17 = vsel %vm2838_vm1, %v8815_v24, 0.0  ;;  %v8820_v24 = vld [vmem:[#allocation109_spill] sm:$0xff] }
 0x308   : > { %v1419_v53 = vpop.xlane.xlu1 %1418  ;;  %v3061_v2 = vadd.f32 %v3060_v23, %v2940_v11  ;;  %v8818_v11 = vld [vmem:[#allocation171_spill] sm:$0xff]  ;;  %v3056_v23 = vsel %vm451_vm0, %v2939_v31, 0.0  ;;  %v1864_v46 = vshll.u32 %v1863_v37, 16  ;;  %v8822_v31 = vld [vmem:[#allocation182_spill] sm:$0xff] }
 0x309   : > { %8811 = vst [vmem:[#allocation131_spill] sm:$0xff] %v7035_v4  ;;  %v1420_v16 = vcvt.f32.s32 %v1419_v53  ;;  %vm2892_vm3 = vcmp.eq.s32.totalorder %v5746_v57, %v7035_v4  ;;  %vm2893_vm4 = vcmp.eq.s32.totalorder %v5751_v26, %v7035_v4  ;;  %v3057_v4 = vadd.f32 %v3056_v23, %v2938_v17  ;;  %v8823_v37 = vld [vmem:[#allocation38_spill] sm:$0xff] }
 0x30a   : > { %3062 = vadd.xlane.f32.xlu0 %v3061_v2  ;;  %v2992_v48 = vsel %vm2892_vm3, %v8817_v62, 0.0  ;;  %v2993_v53 = vsel %vm2893_vm4, %v8818_v11, 0.0  ;;  %v3160_v11 = vsel %vm451_vm0, %v2991_v40, 0.0  ;;  %v1880_v23 = vcvt.f32.s32 %v6664_v54  ;;  %v8825_v40 = vld [vmem:[#allocation37_spill] sm:$0xff] }
 0x30b   : > { %v7053_v56 = vadd.s32 %v1422_v20, %v1420_v16  ;;  %3154 = vadd.xlane.f32.xlu1 %v3153_v8  ;;  %v3164_v1 = vsel %vm451_vm0, %v2993_v53, 0.0  ;;  %v1438_v20 = vcvt.f32.s32 %v8820_v24  ;;  %v2990_v8 = vsel %vm2890_vm5, %v8822_v31, 0.0  ;;  %v7069_v53 = vpop.xlane.xlu0 %2750 }
 0x30c   : > { %v1861_v33 = vpop.xlane.xlu1 %1860  ;;  %v3165_v2 = vadd.f32 %v3164_v1, %v2992_v48  ;;  %v1881_v31 = vshll.u32 %v1880_v23, 16  ;;  %v1455_v54 = vcvt.f32.s32 %v6670_v7 }
 0x30d   : > { %8816 = vst [vmem:[#allocation128_spill] sm:$0xff] %v7053_v56  ;;  %v1862_v16 = vcvt.f32.s32 %v1861_v33  ;;  %vm2843_vm6 = vcmp.eq.s32.totalorder %v5751_v26, %v7053_v56  ;;  %vm2842_vm7 = vcmp.eq.s32.totalorder %v5746_v57, %v7053_v56  ;;  %v1439_v17 = vshll.u32 %v1438_v20, 16 }
 0x30e   : > { %3166 = vadd.xlane.f32.xlu0 %v3165_v2  ;;  %v2943_v48 = vsel %vm2843_vm6, %v8823_v37, 0.0  ;;  %v2942_v24 = vsel %vm2842_vm7, %v8825_v40, 0.0  ;;  %v8826_v2 = vld [vmem:[#allocation183_spill] sm:$0xff]  ;;  %v8829_v40 = vld [vmem:[#allocation186_spill] sm:$0xff] }
 0x30f   : > { %v7065_v62 = vadd.s32 %v1864_v46, %v1862_v16  ;;  %3058 = vadd.xlane.f32.xlu1 %v3057_v4  ;;  %v3161_v46 = vadd.f32 %v3160_v11, %v2990_v8  ;;  %v3064_v4 = vsel %vm451_vm0, %v2943_v48, 0.0  ;;  %v7087_v11 = vpop.xlane.xlu0 %2758  ;;  %v8827_v37 = vld [vmem:[#allocation39_spill] sm:$0xff] }
 0x310   : > { %v1436_v52 = vpop.xlane.xlu1 %1435 }
 0x311   : > { %8821 = vst [vmem:[#allocation132_spill] sm:$0xff] %v7065_v62  ;;  %v1437_v33 = vcvt.f32.s32 %v1436_v52  ;;  %vm2895_vm8 = vcmp.eq.s32.totalorder %v5751_v26, %v7065_v62  ;;  %vm2894_vm9 = vcmp.eq.s32.totalorder %v5746_v57, %v7065_v62  ;;  %v3065_v52 = vadd.f32 %v3064_v4, %v2942_v24 }
 0x312   : > { %v2995_v20 = vsel %vm2895_vm8, %v8826_v2, 0.0  ;;  %v2994_v23 = vsel %vm2894_vm9, %v8829_v40, 0.0  ;;  %v1456_v62 = vshll.u32 %v1455_v54, 16  ;;  %v1897_v24 = vcvt.f32.s32 %v6678_v43 }
 0x313   : > { %v7077_v1 = vadd.s32 %v1439_v17, %v1437_v33  ;;  %3162 = vadd.xlane.f32.xlu1 %v3161_v46  ;;  %v8828_v33 = vld [vmem:[#allocation40_spill] sm:$0xff]  ;;  %v3168_v7 = vsel %vm451_vm0, %v2995_v20, 0.0  ;;  %v8831_v20 = vld [vmem:[#allocation210_spill] sm:$0xff] }
 0x314   : > { %v1878_v16 = vpop.xlane.xlu1 %1877 }
 0x315   : > { %8824 = vst [vmem:[#allocation129_spill] sm:$0xff] %v7077_v1  ;;  %v1879_v8 = vcvt.f32.s32 %v1878_v16  ;;  %vm2844_vm10 = vcmp.eq.s32.totalorder %v5746_v57, %v7077_v1  ;;  %vm2845_vm11 = vcmp.eq.s32.totalorder %v5751_v26, %v7077_v1  ;;  %v3169_v1 = vadd.f32 %v3168_v7, %v2994_v23 }
 0x316   : > { %v2944_v48 = vsel %vm2844_vm10, %v8827_v37, 0.0  ;;  %v2945_v46 = vsel %vm2845_vm11, %v8828_v33, 0.0  ;;  %v7107_v33 = vpop.xlane.xlu0 %2766 }
 0x317   : > { %v7092_v17 = vadd.s32 %v1881_v31, %v1879_v8  ;;  %3066 = vadd.xlane.f32.xlu1 %v3065_v52  ;;  %v3068_v2 = vsel %vm451_vm0, %v2945_v46, 0.0  ;;  %v8832_v52 = vld [vmem:[#allocation181_spill] sm:$0xff]  ;;  %v1472_v46 = vcvt.f32.s32 %v6685_v13 }
 0x318   : > { %v1453_v16 = vpop.xlane.xlu1 %1452  ;;  %v3069_v56 = vadd.f32 %v3068_v2, %v2944_v48  ;;  %v1898_v48 = vshll.u32 %v1897_v24, 16  ;;  %v8836_v2 = vld [vmem:[#allocation115_spill] sm:$0xff] }
 0x319   : > { %v1454_v4 = vcvt.f32.s32 %v1453_v16  ;;  %vm2896_vm12 = vcmp.eq.s32.totalorder %v5746_v57, %v7092_v17  ;;  %vm2897_vm13 = vcmp.eq.s32.totalorder %v5751_v26, %v7092_v17 }
 0x31a   : > { %3070 = vadd.xlane.f32.xlu0 %v3069_v56  ;;  %v2996_v8 = vsel %vm2896_vm12, %v8831_v20, 0.0  ;;  %v2997_v37 = vsel %vm2897_vm13, %v8832_v52, 0.0  ;;  %v1473_v20 = vshll.u32 %v1472_v46, 16 }
 0x31b   : > { %v7103_v31 = vadd.s32 %v1456_v62, %v1454_v4  ;;  %3170 = vadd.xlane.f32.xlu1 %v3169_v1  ;;  %v3172_v54 = vsel %vm451_vm0, %v2997_v37, 0.0  ;;  %v8834_v62 = vld [vmem:[#allocation43_spill] sm:$0xff]  ;;  %v8835_v1 = vld [vmem:[#allocation44_spill] sm:$0xff]  ;;  %v1914_v4 = vcvt.f32.s32 %v8836_v2  ;;  %v7123_v37 = vpop.xlane.xlu0 %2774 }
 0x31c   : > { %v1895_v43 = vpop.xlane.xlu1 %1894  ;;  %v3173_v23 = vadd.f32 %v3172_v54, %v2996_v8 }
 0x31d   : > { %8830 = vst [vmem:[#allocation136_spill] sm:$0xff] %v7103_v31  ;;  %v1896_v40 = vcvt.f32.s32 %v1895_v43  ;;  %vm2846_vm14 = vcmp.eq.s32.totalorder %v5746_v57, %v7103_v31  ;;  %vm2847_vm15 = vcmp.eq.s32.totalorder %v5751_v26, %v7103_v31  ;;  %v8837_v43 = vld [vmem:[#allocation189_spill] sm:$0xff] }
 0x31e   : > { %3174 = vadd.xlane.f32.xlu0 %v3173_v23  ;;  %v2946_v7 = vsel %vm2846_vm14, %v8834_v62, 0.0  ;;  %v2947_v16 = vsel %vm2847_vm15, %v8835_v1, 0.0  ;;  %v1915_v62 = vshll.u32 %v1914_v4, 16 }
 0x31f   : > { %v7115_v56 = vadd.s32 %v1898_v48, %v1896_v40  ;;  %v3072_v13 = vsel %vm451_vm0, %v2947_v16, 0.0  ;;  %v8839_v40 = vld [vmem:[#allocation187_spill] sm:$0xff] }
 0x320   : > { %v1470_v24 = vpop.xlane.xlu1 %1469  ;;  %v3073_v52 = vadd.f32 %v3072_v13, %v2946_v7  ;;  %v8840_v7 = vld [vmem:[#allocation116_spill] sm:$0xff]  ;;  %v8841_v13 = vld [vmem:[#allocation45_spill] sm:$0xff] }
 0x321   : > { %8833 = vst [vmem:[#allocation133_spill] sm:$0xff] %v7115_v56  ;;  %v1471_v8 = vcvt.f32.s32 %v1470_v24  ;;  %vm2898_vm1 = vcmp.eq.s32.totalorder %v5746_v57, %v7115_v56  ;;  %vm2899_vm2 = vcmp.eq.s32.totalorder %v5751_v26, %v7115_v56  ;;  %v1489_v16 = vcvt.f32.s32 %v8840_v7 }
 0x322   : > { %v2998_v54 = vsel %vm2898_vm1, %v8837_v43, 0.0  ;;  %3074 = vadd.xlane.f32.xlu1 %v3073_v52  ;;  %v2999_v23 = vsel %vm2899_vm2, %v8839_v40, 0.0  ;;  %v8843_v52 = vld [vmem:[#allocation46_spill] sm:$0xff]  ;;  %v1931_v43 = vcvt.f32.s32 %v6704_v49  ;;  %v7142_v40 = vpop.xlane.xlu0 %2782  ;;  %v8846_v49 = vld [vmem:[#allocation89_spill] sm:$0xff] }
 0x323   : > { %v7128_v48 = vadd.s32 %v1473_v20, %v1471_v8  ;;  %v3176_v46 = vsel %vm451_vm0, %v2999_v23, 0.0 }
 0x324   : > { %v1912_v1 = vpop.xlane.xlu1 %1911  ;;  %v3177_v24 = vadd.f32 %v3176_v46, %v2998_v54 }
 0x325   : > { %8838 = vst [vmem:[#allocation137_spill] sm:$0xff] %v7128_v48  ;;  %v1913_v2 = vcvt.f32.s32 %v1912_v1  ;;  %vm2848_vm3 = vcmp.eq.s32.totalorder %v5746_v57, %v7128_v48  ;;  %vm2849_vm4 = vcmp.eq.s32.totalorder %v5751_v26, %v7128_v48  ;;  %v1490_v1 = vshll.u32 %v1489_v16, 16  ;;  %v8847_v16 = vld [vmem:[#allocation120_spill] sm:$0xff] }
 0x326   : > { %v2948_v20 = vsel %vm2848_vm3, %v8841_v13, 0.0  ;;  %3178 = vadd.xlane.f32.xlu1 %v3177_v24  ;;  %v2949_v4 = vsel %vm2849_vm4, %v8843_v52, 0.0  ;;  %v1932_v52 = vshll.u32 %v1931_v43, 16  ;;  %v7157_v56 = vpop.xlane.xlu0 %2790  ;;  %v8850_v43 = vld [vmem:[#allocation50_spill] sm:$0xff] }
 0x327   : > { %v7138_v8 = vadd.s32 %v1915_v62, %v1913_v2  ;;  %v3076_v54 = vsel %vm451_vm0, %v2949_v4, 0.0  ;;  %v8844_v62 = vld [vmem:[#allocation93_spill] sm:$0xff]  ;;  %8848 = vst [vmem:[#allocation3_spill] sm:$0xff] %v7157_v56 }
 0x328   : > { %v1487_v23 = vpop.xlane.xlu1 %1486  ;;  %v3077_v7 = vadd.f32 %v3076_v54, %v2948_v20 }
 0x329   : > { %8842 = vst [vmem:[#allocation134_spill] sm:$0xff] %v7138_v8  ;;  %v1488_v46 = vcvt.f32.s32 %v1487_v23  ;;  %vm2900_vm5 = vcmp.eq.s32.totalorder %v5746_v57, %v7138_v8  ;;  %vm2901_vm6 = vcmp.eq.s32.totalorder %v5751_v26, %v7138_v8  ;;  %v1506_v23 = vcvt.f32.s32 %v8847_v16 }
 0x32a   : > { %v3000_v2 = vsel %vm2900_vm5, %v8844_v62, 0.0  ;;  %3078 = vadd.xlane.f32.xlu0 %v3077_v7  ;;  %v3001_v13 = vsel %vm2901_vm6, %v8846_v49, 0.0  ;;  %v8851_v49 = vld [vmem:[#allocation121_spill] sm:$0xff]  ;;  %vm3471_vm6 = vcmp.eq.s32.totalorder %v5746_v57, 1 }
 0x32b   : > { %v7150_v24 = vadd.s32 %v1490_v1, %v1488_v46  ;;  %v3180_v4 = vsel %vm451_vm0, %v3001_v13, 0.0  ;;  %v8849_v1 = vld [vmem:[#allocation49_spill] sm:$0xff]  ;;  %v1948_v13 = vcvt.f32.s32 %v8851_v49 }
 0x32c   : > { %v1929_v48 = vpop.xlane.xlu1 %1928  ;;  %v3181_v54 = vadd.f32 %v3180_v4, %v3000_v2  ;;  %v1507_v2 = vshll.u32 %v1506_v23, 16 }
 0x32d   : > { %8845 = vst [vmem:[#allocation2_spill] sm:$0xff] %v7150_v24  ;;  %v1930_v20 = vcvt.f32.s32 %v1929_v48  ;;  %vm2850_vm7 = vcmp.eq.s32.totalorder %v5746_v57, %v7150_v24  ;;  %vm2851_vm8 = vcmp.eq.s32.totalorder %v5751_v26, %v7150_v24  ;;  %v1949_v24 = vshll.u32 %v1948_v13, 16  ;;  %v8859_v13 = vld [vmem:[#allocation52_spill] sm:$0xff] }
 0x32e   : > { %v2950_v46 = vsel %vm2850_vm7, %v8849_v1, 0.0  ;;  %3182 = vadd.xlane.f32.xlu0 %v3181_v54  ;;  %v2951_v62 = vsel %vm2851_vm8, %v8850_v43, 0.0  ;;  %v8852_v1 = vld [vmem:[#allocation192_spill] sm:$0xff]  ;;  %v8854_v43 = vld [vmem:[#allocation190_spill] sm:$0xff]  ;;  %vm3420_vm8 = vcmp.eq.s32.totalorder %v5746_v57, 0 }
 0x32f   : > { %v7162_v7 = vadd.s32 %v1932_v52, %v1930_v20  ;;  %v3080_v48 = vsel %vm451_vm0, %v2951_v62, 0.0  ;;  %v8853_v20 = vld [vmem:[#allocation138_spill] sm:$0xff]  ;;  %v7176_v62 = vpop.xlane.xlu0 %2798 }
 0x330   : > { %v1504_v16 = vpop.xlane.xlu1 %1503  ;;  %v3081_v8 = vadd.f32 %v3080_v48, %v2950_v46  ;;  %4165 = vlog2.f32 %v8853_v20  ;;  %8855 = vst [vmem:[#allocation4_spill] sm:$0xff] %v7176_v62  ;;  %v1965_v20 = vcvt.f32.s32 %v6729_v27  ;;  %v8863_v27 = vld [vmem:[#allocation91_spill] sm:$0xff] }
 0x331   : > { %v1505_v4 = vcvt.f32.s32 %v1504_v16  ;;  %vm2902_vm9 = vcmp.eq.s32.totalorder %v5746_v57, %v7162_v7  ;;  %vm2903_vm10 = vcmp.eq.s32.totalorder %v5751_v26, %v7162_v7  ;;  %v8856_v16 = vld [vmem:[#allocation125_spill] sm:$0xff]  ;;  %4167 = vlog2.f32 %v7003_v36 }
 0x332   : > { %v3002_v52 = vsel %vm2902_vm9, %v8852_v1, 0.0  ;;  %3082 = vadd.xlane.f32.xlu1 %v3081_v8  ;;  %v3003_v49 = vsel %vm2903_vm10, %v8854_v43, 0.0  ;;  %v1523_v48 = vcvt.f32.s32 %v8856_v16  ;;  %vm3672_vm10 = vcmask 23552  }
 0x333   : > { %v7173_v54 = vadd.s32 %v1507_v2, %v1505_v4  ;;  %v3184_v46 = vsel %vm451_vm0, %v3003_v49, 0.0  ;;  %v8857_v2 = vld [vmem:[#allocation51_spill] sm:$0xff]  ;;  %v7193_v16 = vpop.xlane.xlu0 %2806 }
 0x334   : > { %v1946_v23 = vpop.xlane.xlu1 %1945  ;;  %v3185_v31 = vadd.f32 %v3184_v46, %v3002_v52  ;;  %v1524_v49 = vshll.u32 %v1523_v48, 16  ;;  %8860 = vst [vmem:[#allocation144_spill] sm:$0xff] %v7193_v16 }
 0x335   : > { %v1947_v56 = vcvt.f32.s32 %v1946_v23  ;;  %vm2852_vm11 = vcmp.eq.s32.totalorder %v5746_v57, %v7173_v54  ;;  %vm2853_vm12 = vcmp.eq.s32.totalorder %v5751_v26, %v7173_v54 }
 0x336   : > { %v2952_v8 = vsel %vm2852_vm11, %v8857_v2, 0.0  ;;  %3186 = vadd.xlane.f32.xlu1 %v3185_v31  ;;  %v2953_v1 = vsel %vm2853_vm12, %v8859_v13, 0.0  ;;  %v8861_v31 = vld [vmem:[#allocation213_spill] sm:$0xff]  ;;  %v1966_v2 = vshll.u32 %v1965_v20, 16 }
 0x337   : > { %v7185_v4 = vadd.s32 %v1949_v24, %v1947_v56  ;;  %v3084_v52 = vsel %vm451_vm0, %v2953_v1, 0.0 }
 0x338   : > { %v1521_v43 = vpop.xlane.xlu1 %1520  ;;  %v3085_v46 = vadd.f32 %v3084_v52, %v2952_v8  ;;  %v1540_v8 = vcvt.f32.s32 %v6737_v0  ;;  %v8864_v52 = vld [vmem:[#allocation54_spill] sm:$0xff]  ;;  %v1982_v0 = vcvt.f32.s32 %v6750_v61  ;;  %v8869_v61 = vld [vmem:[#allocation195_spill] sm:$0xff] }
 0x339   : > { %8858 = vst [vmem:[#allocation5_spill] sm:$0xff] %v7185_v4  ;;  %v1522_v23 = vcvt.f32.s32 %v1521_v43  ;;  %vm2904_vm13 = vcmp.eq.s32.totalorder %v5746_v57, %v7185_v4  ;;  %vm2905_vm14 = vcmp.eq.s32.totalorder %v5751_v26, %v7185_v4 }
 0x33a   : > { %v3004_v56 = vsel %vm2904_vm13, %v8861_v31, 0.0  ;;  %3086 = vadd.xlane.f32.xlu0 %v3085_v46  ;;  %v3005_v36 = vsel %vm2905_vm14, %v8863_v27, 0.0  ;;  %v8866_v46 = vld [vmem:[#allocation55_spill] sm:$0xff]  ;;  %v8867_v31 = vld [vmem:[#allocation16_spill] sm:$0xff] }
 0x33b   : > { %v7198_v24 = vadd.s32 %v1524_v49, %v1522_v23  ;;  %v3188_v48 = vsel %vm451_vm0, %v3005_v36, 0.0  ;;  %vm2270_vm2 = vcmp.gt.f32.partialorder %v8867_v31, 0.0  ;;  %v7213_v36 = vpop.xlane.xlu0 %2814 }
 0x33c   : > { %v1963_v13 = vpop.xlane.xlu1 %1962  ;;  %v3189_v43 = vadd.f32 %v3188_v48, %v3004_v56  ;;  %8868 = vst [vmem:[#allocation141_spill] sm:$0xff] %v7213_v36  ;;  %v1541_v48 = vshll.u32 %v1540_v8, 16  ;;  %v1983_v36 = vshll.u32 %v1982_v0, 16 }
 0x33d   : > { %8862 = vst [vmem:[#allocation8_spill] sm:$0xff] %v7198_v24  ;;  %v1964_v1 = vcvt.f32.s32 %v1963_v13  ;;  %vm2854_vm15 = vcmp.eq.s32.totalorder %v5746_v57, %v7198_v24  ;;  %vm2855_vm1 = vcmp.eq.s32.totalorder %v5751_v26, %v7198_v24  ;;  %v4166_v27 = vpop.eup %4165 }
 0x33e   : > { %v2954_v49 = vsel %vm2854_vm15, %v8864_v52, 0.0  ;;  %3190 = vadd.xlane.f32.xlu0 %v3189_v43  ;;  %v2955_v20 = vsel %vm2855_vm1, %v8866_v46, 0.0  ;;  %v8870_v52 = vld [vmem:[#allocation76_spill] sm:$0xff]  ;;  %v8871_v46 = vld [vmem:[#allocation146_spill] sm:$0xff] }
 0x33f   : > { %v7208_v23 = vadd.s32 %v1966_v2, %v1964_v1  ;;  %v3088_v13 = vsel %vm451_vm0, %v2955_v20, 0.0  ;;  %v8314_v2 = vmov 0.0   ;;  %vm2296_vm5 = vcmp.gt.f32.partialorder %v8870_v52, 0.0  ;;  %v8872_v20 = vld [vmem:[#allocation193_spill] sm:$0xff] }
 0x340   : > { %v1538_v56 = vpop.xlane.xlu1 %1537  ;;  %v3089_v24 = vadd.f32 %v3088_v13, %v2954_v49  ;;  %v3839_v1 = vsel %vm2270_vm2, 1.0, %v8314_v2  ;;  %4169 = vlog2.f32 %v8871_v46  ;;  %v3221_v49 = vmul.f32 0.6931472, %v4166_v27 }
 0x341   : > { %8865 = vst [vmem:[#allocation9_spill] sm:$0xff] %v7208_v23  ;;  %v1539_v16 = vcvt.f32.s32 %v1538_v56  ;;  %vm2906_vm3 = vcmp.eq.s32.totalorder %v5746_v57, %v7208_v23  ;;  %vm2907_vm4 = vcmp.eq.s32.totalorder %v5751_v26, %v7208_v23  ;;  %v3421_v13 = vcvt.s32.f32 %v6735_v10  ;;  %v8873_v10 = vld [vmem:[#allocation57_spill] sm:$0xff] }
 0x342   : > { %v3006_v43 = vsel %vm2906_vm3, %v8869_v61, 0.0  ;;  %3090 = vadd.xlane.f32.xlu1 %v3089_v24  ;;  %v3007_v56 = vsel %vm2907_vm4, %v8872_v20, 0.0  ;;  %v1557_v2 = vcvt.f32.s32 %v6763_v55  ;;  %v4168_v61 = vpop.eup %4167  ;;  %4171 = vlog2.f32 %v7022_v9 }
 0x343   : > { %v7226_v8 = vadd.s32 %v1541_v48, %v1539_v16  ;;  %v3023_v4 = vpop.xlane.xlu0 %3022  ;;  %v3192_v23 = vsel %vm451_vm0, %v3007_v56, 0.0 }
 0x344   : > { %v3320_v62 = vsub.f32 %v3221_v49, %v3023_v4  ;;  %v1980_v46 = vpop.xlane.xlu1 %1979  ;;  %v3193_v16 = vadd.f32 %v3192_v23, %v3006_v43  ;;  %v8874_v23 = vld [vmem:[#allocation58_spill] sm:$0xff]  ;;  %v3273_v43 = vmul.f32 0.6931472, %v4168_v61  ;;  %v1999_v49 = vcvt.f32.s32 %v6773_v38  ;;  %v8876_v38 = vld [vmem:[#allocation92_spill] sm:$0xff] }
 0x345   : > { %vm2856_vm7 = vcmp.eq.s32.totalorder %v5746_v57, %v7226_v8  ;;  %v1981_v24 = vcvt.f32.s32 %v1980_v46  ;;  %vm2857_vm9 = vcmp.eq.s32.totalorder %v5751_v26, %v7226_v8 }
 0x346   : > { %v2956_v55 = vsel %vm2856_vm7, %v8873_v10, 0.0  ;;  %v3370_v4 = vsel %vm2270_vm2, %v3320_v62, 0.0  ;;  %3194 = vadd.xlane.f32.xlu1 %v3193_v16  ;;  %v2957_v27 = vsel %vm2857_vm9, %v8874_v23, 0.0  ;;  %v1558_v62 = vshll.u32 %v1557_v2, 16 }
 0x347   : > { %v3572_v0 = vsel %vm3471_vm6, %v3839_v1, %v3370_v4  ;;  %v7251_v48 = vadd.s32 %v1983_v36, %v1981_v24  ;;  %v3092_v9 = vsel %vm451_vm0, %v2957_v27, 0.0  ;;  %v3127_v56 = vpop.xlane.xlu0 %3126  ;;  %v8875_v36 = vmov 0.0  }
 0x348   : > { %v3622_v20 = vsel %vm3420_vm8, %v3421_v13, %v3572_v0  ;;  %v1555_v46 = vpop.xlane.xlu1 %1554  ;;  %v3093_v31 = vadd.f32 %v3092_v9, %v2956_v55  ;;  %v3346_v16 = vsub.f32 %v3273_v43, %v3127_v56  ;;  %v3865_v1 = vsel %vm2296_vm5, 1.0, %v8875_v36  ;;  %v8877_v55 = vld [vmem:[#allocation94_spill] sm:$0xff] }
 0x349   : > { %3673 = vst.msk [vmem:[%s7244_s16] sm:$0xff] %vm3672_vm10, %v3622_v20  ;;  %v1556_v10 = vcvt.f32.s32 %v1555_v46  ;;  %vm2908_vm11 = vcmp.eq.s32.totalorder %v5746_v57, %v7251_v48  ;;  %vm2909_vm12 = vcmp.eq.s32.totalorder %v5751_v26, %v7251_v48  ;;  %v3447_v2 = vcvt.s32.f32 %v6746_v14  ;;  %v8878_v46 = vld [vmem:[#allocation60_spill] sm:$0xff] }
 0x34a   : > { %3094 = vadd.xlane.f32.xlu0 %v3093_v31  ;;  %v3008_v13 = vsel %vm2908_vm11, %v8876_v38, 0.0  ;;  %v3396_v61 = vsel %vm2296_vm5, %v3346_v16, 0.0  ;;  %v3009_v4 = vsel %vm2909_vm12, %v8877_v55, 0.0  ;;  %v2000_v23 = vshll.u32 %v1999_v49, 16  ;;  %v8880_v16 = vld [vmem:[#allocation18_spill] sm:$0xff] }
 0x34b   : > { %v7270_v24 = vadd.s32 %v1558_v62, %v1556_v10  ;;  %v3598_v27 = vsel %vm3471_vm6, %v3865_v1, %v3396_v61  ;;  %v3196_v43 = vsel %vm451_vm0, %v3009_v4, 0.0  ;;  %v1574_v9 = vcvt.f32.s32 %v6781_v18  ;;  %v8879_v18 = vld [vmem:[#allocation61_spill] sm:$0xff]  ;;  %v8881_v4 = vld [vmem:[#allocation198_spill] sm:$0xff] }
 0x34c   : > { %v1997_v0 = vpop.xlane.xlu1 %1996  ;;  %v3648_v20 = vsel %vm3420_vm8, %v3447_v2, %v3598_v27  ;;  %v3197_v56 = vadd.f32 %v3196_v43, %v3008_v13  ;;  %vm2272_vm15 = vcmp.gt.f32.partialorder %v8880_v16, 0.0  ;;  %v2016_v10 = vcvt.f32.s32 %v6794_v21  ;;  %v8882_v21 = vld [vmem:[#allocation155_spill] sm:$0xff] }
 0x34d   : > { %v1998_v14 = vcvt.f32.s32 %v1997_v0  ;;  %3699 = vst.msk [vmem:[%s7244_s16 + $0xd0] sm:$0xff] %vm3672_vm10, %v3648_v20  ;;  %vm2858_vm13 = vcmp.eq.s32.totalorder %v5746_v57, %v7270_v24  ;;  %vm2859_vm14 = vcmp.eq.s32.totalorder %v5751_v26, %v7270_v24  ;;  %v4170_v52 = vpop.eup %4169  ;;  %v1575_v13 = vshll.u32 %v1574_v9, 16  ;;  %v8883_v9 = vld [vmem:[#allocation197_spill] sm:$0xff] }
 0x34e   : > { %3198 = vadd.xlane.f32.xlu0 %v3197_v56  ;;  %v2958_v31 = vsel %vm2858_vm13, %v8878_v46, 0.0  ;;  %v2959_v62 = vsel %vm2859_vm14, %v8879_v18, 0.0  ;;  %v3841_v55 = vsel %vm2272_vm15, 1.0, %v8875_v36  ;;  %4173 = vlog2.f32 %v8882_v21 }
 0x34f   : > { %v7285_v49 = vadd.s32 %v2000_v23, %v1998_v14  ;;  %v3096_v38 = vsel %vm451_vm0, %v2959_v62, 0.0  ;;  %v4172_v27 = vpop.eup %4171  ;;  %v3225_v43 = vmul.f32 0.6931472, %v4170_v52  ;;  %v3423_v14 = vcvt.s32.f32 %v6779_v44  ;;  %v8884_v62 = vld [vmem:[#allocation78_spill] sm:$0xff] }
 0x350   : > { %v1572_v1 = vpop.xlane.xlu1 %1571  ;;  %v3097_v61 = vadd.f32 %v3096_v38, %v2958_v31  ;;  %v2017_v56 = vshll.u32 %v2016_v10, 16  ;;  %vm2298_vm3 = vcmp.gt.f32.partialorder %v8884_v62, 0.0  ;;  %4175 = vlog2.f32 %v7046_v39 }
 0x351   : > { %v1573_v2 = vcvt.f32.s32 %v1572_v1  ;;  %vm2910_vm1 = vcmp.eq.s32.totalorder %v5746_v57, %v7285_v49  ;;  %vm2911_vm2 = vcmp.eq.s32.totalorder %v5751_v26, %v7285_v49  ;;  %v1591_v1 = vcvt.f32.s32 %v6808_v28  ;;  %v8885_v28 = vld [vmem:[#allocation63_spill] sm:$0xff] }
 0x352   : > { %v3010_v23 = vsel %vm2910_vm1, %v8881_v4, 0.0  ;;  %3098 = vadd.xlane.f32.xlu1 %v3097_v61  ;;  %v3011_v20 = vsel %vm2911_vm2, %v8883_v9, 0.0  ;;  %v2033_v39 = vcvt.f32.s32 %v6817_v30 }
 0x353   : > { %v7301_v0 = vadd.s32 %v1575_v13, %v1573_v2  ;;  %v3031_v46 = vpop.xlane.xlu0 %3030  ;;  %v3200_v18 = vsel %vm451_vm0, %v3011_v20, 0.0  ;;  %v3277_v13 = vmul.f32 0.6931472, %v4172_v27  ;;  %v8886_v2 = vld [vmem:[#allocation64_spill] sm:$0xff]  ;;  %v3867_v27 = vsel %vm2298_vm3, 1.0, %v8875_v36 }
 0x354   : > { %v2014_v31 = vpop.xlane.xlu1 %2013  ;;  %v3322_v38 = vsub.f32 %v3225_v43, %v3031_v46  ;;  %v3201_v21 = vadd.f32 %v3200_v18, %v3010_v23  ;;  %v1592_v20 = vshll.u32 %v1591_v1, 16  ;;  %v3449_v18 = vcvt.s32.f32 %v6790_v22 }
 0x355   : > { %v2015_v4 = vcvt.f32.s32 %v2014_v31  ;;  %vm2860_vm4 = vcmp.eq.s32.totalorder %v5746_v57, %v7301_v0  ;;  %vm2861_vm5 = vcmp.eq.s32.totalorder %v5751_v26, %v7301_v0  ;;  %v2034_v22 = vshll.u32 %v2033_v39, 16 }
 0x356   : > { %v3372_v44 = vsel %vm2272_vm15, %v3322_v38, 0.0  ;;  %3202 = vadd.xlane.f32.xlu1 %v3201_v21  ;;  %v2960_v10 = vsel %vm2860_vm4, %v8885_v28, 0.0  ;;  %v2961_v61 = vsel %vm2861_vm5, %v8886_v2, 0.0 }
 0x357   : > { %v7315_v52 = vadd.s32 %v2017_v56, %v2015_v4  ;;  %v3574_v23 = vsel %vm3471_vm6, %v3841_v55, %v3372_v44  ;;  %v3135_v43 = vpop.xlane.xlu0 %3134  ;;  %v3100_v9 = vsel %vm451_vm0, %v2961_v61, 0.0  ;;  %v8888_v4 = vld [vmem:[#allocation99_spill] sm:$0xff] }
 0x358   : > { %v1589_v16 = vpop.xlane.xlu1 %1588  ;;  %v3624_v56 = vsel %vm3420_vm8, %v3423_v14, %v3574_v23  ;;  %v3348_v46 = vsub.f32 %v3277_v13, %v3135_v43  ;;  %v3101_v30 = vadd.f32 %v3100_v9, %v2960_v10  ;;  %v8887_v14 = vld [vmem:[#allocation100_spill] sm:$0xff]  ;;  %v1608_v10 = vcvt.f32.s32 %v6825_v59  ;;  %v8889_v23 = vld [vmem:[#allocation66_spill] sm:$0xff]  ;;  %v8890_v43 = vld [vmem:[#allocation67_spill] sm:$0xff] }
 0x359   : > { %v1590_v31 = vcvt.f32.s32 %v1589_v16  ;;  %3675 = vst.msk [vmem:[%s7244_s16 + $0x10] sm:$0xff] %vm3672_vm10, %v3624_v56  ;;  %vm2912_vm7 = vcmp.eq.s32.totalorder %v5746_v57, %v7315_v52  ;;  %vm2913_vm9 = vcmp.eq.s32.totalorder %v5751_v26, %v7315_v52  ;;  %v8891_v9 = vld [vmem:[#allocation143_spill] sm:$0xff] }
 0x35a   : > { %v3398_v55 = vsel %vm2298_vm3, %v3348_v46, 0.0  ;;  %v3012_v38 = vsel %vm2912_vm7, %v8887_v14, 0.0  ;;  %v3013_v21 = vsel %vm2913_vm9, %v8888_v4, 0.0  ;;  %3102 = vadd.xlane.f32.xlu0 %v3101_v30  ;;  %4177 = vlog2.f32 %v8891_v9  ;;  %v8892_v46 = vld [vmem:[#allocation20_spill] sm:$0xff]  ;;  %v8894_v14 = vld [vmem:[#allocation202_spill] sm:$0xff] }
 0x35b   : > { %v7337_v1 = vadd.s32 %v1592_v20, %v1590_v31  ;;  %v3600_v13 = vsel %vm3471_vm6, %v3867_v27, %v3398_v55  ;;  %v3204_v28 = vsel %vm451_vm0, %v3013_v21, 0.0  ;;  %v4174_v59 = vpop.eup %4173  ;;  %vm2274_vm13 = vcmp.gt.f32.partialorder %v8892_v46, 0.0  ;;  %v8893_v55 = vld [vmem:[#allocation165_spill] sm:$0xff]  ;;  %v8895_v21 = vld [vmem:[#allocation212_spill] sm:$0xff] }
 0x35c   : > { %v2031_v44 = vpop.xlane.xlu1 %2030  ;;  %v3650_v62 = vsel %vm3420_vm8, %v3449_v18, %v3600_v13  ;;  %v3205_v61 = vadd.f32 %v3204_v28, %v3012_v38  ;;  %v1609_v31 = vshll.u32 %v1608_v10, 16  ;;  %4179 = vlog2.f32 %v8893_v55 }
 0x35d   : > { %v2032_v2 = vcvt.f32.s32 %v2031_v44  ;;  %3701 = vst.msk [vmem:[%s7244_s16 + $0xe0] sm:$0xff] %vm3672_vm10, %v3650_v62  ;;  %vm2862_vm11 = vcmp.eq.s32.totalorder %v5746_v57, %v7337_v1  ;;  %vm2863_vm12 = vcmp.eq.s32.totalorder %v5751_v26, %v7337_v1  ;;  %v4176_v4 = vpop.eup %4175  ;;  %4181 = vlog2.f32 %v8895_v21  ;;  %v8896_v44 = vld [vmem:[#allocation200_spill] sm:$0xff] }
 0x35e   : > { %v2962_v27 = vsel %vm2862_vm11, %v8889_v23, 0.0  ;;  %v2963_v16 = vsel %vm2863_vm12, %v8890_v43, 0.0  ;;  %3206 = vadd.xlane.f32.xlu0 %v3205_v61  ;;  %v3229_v13 = vmul.f32 0.6931472, %v4174_v59  ;;  %v3843_v10 = vsel %vm2274_vm13, 1.0, %v8875_v36 }
 0x35f   : > { %v7353_v39 = vadd.s32 %v2034_v22, %v2032_v2  ;;  %v3104_v56 = vsel %vm451_vm0, %v2963_v16, 0.0  ;;  %v1625_v23 = vcvt.f32.s32 %v6854_v29  ;;  %v8897_v16 = vld [vmem:[#allocation17_spill] sm:$0xff]  ;;  %v3425_v9 = vcvt.s32.f32 %v6823_v15 }
 0x360   : > { %v1606_v20 = vpop.xlane.xlu1 %1605  ;;  %v3105_v30 = vadd.f32 %v3104_v56, %v2962_v27  ;;  %vm2271_vm1 = vcmp.gt.f32.partialorder %v8897_v16, 0.0  ;;  %4183 = vlog2.f32 %v7069_v53  ;;  %v3281_v29 = vmul.f32 0.6931472, %v4176_v4 }
 0x361   : > { %v1607_v18 = vcvt.f32.s32 %v1606_v20  ;;  %vm2914_vm14 = vcmp.eq.s32.totalorder %v5746_v57, %v7353_v39  ;;  %vm2915_vm15 = vcmp.eq.s32.totalorder %v5751_v26, %v7353_v39  ;;  %v8898_v20 = vld [vmem:[#allocation69_spill] sm:$0xff]  ;;  %v2050_v15 = vcvt.f32.s32 %v6838_v63  ;;  %v8901_v63 = vld [vmem:[#allocation22_spill] sm:$0xff] }
 0x362   : > { %v3014_v38 = vsel %vm2914_vm14, %v8894_v14, 0.0  ;;  %3106 = vadd.xlane.f32.xlu1 %v3105_v30  ;;  %v3015_v28 = vsel %vm2915_vm15, %v8896_v44, 0.0  ;;  %v8900_v30 = vld [vmem:[#allocation80_spill] sm:$0xff]  ;;  %v1626_v46 = vshll.u32 %v1625_v23, 16  ;;  %vm2276_vm5 = vcmp.gt.f32.partialorder %v8901_v63, 0.0 }
 0x363   : > { %v7367_v22 = vadd.s32 %v1609_v31, %v1607_v18  ;;  %v3039_v62 = vpop.xlane.xlu0 %3038  ;;  %v3208_v61 = vsel %vm451_vm0, %v3015_v28, 0.0  ;;  %v8899_v31 = vld [vmem:[#allocation70_spill] sm:$0xff]  ;;  %vm2300_vm4 = vcmp.gt.f32.partialorder %v8900_v30, 0.0 }
 0x364   : > { %v2048_v2 = vpop.xlane.xlu1 %2047  ;;  %v3324_v27 = vsub.f32 %v3229_v13, %v3039_v62  ;;  %v3209_v43 = vadd.f32 %v3208_v61, %v3014_v38  ;;  %v3451_v62 = vcvt.s32.f32 %v6834_v25  ;;  %v3869_v61 = vsel %vm2300_vm4, 1.0, %v8875_v36 }
 0x365   : > { %vm2864_vm2 = vcmp.eq.s32.totalorder %v5746_v57, %v7367_v22  ;;  %vm2865_vm3 = vcmp.eq.s32.totalorder %v5751_v26, %v7367_v22  ;;  %v2049_v44 = vcvt.f32.s32 %v2048_v2  ;;  %v1642_v25 = vcvt.f32.s32 %v6878_v58  ;;  %v8906_v58 = vld [vmem:[#allocation73_spill] sm:$0xff] }
 0x366   : > { %v3374_v59 = vsel %vm2274_vm13, %v3324_v27, 0.0  ;;  %3210 = vadd.xlane.f32.xlu1 %v3209_v43  ;;  %v2964_v56 = vsel %vm2864_vm2, %v8898_v20, 0.0  ;;  %v2965_v18 = vsel %vm2865_vm3, %v8899_v31, 0.0  ;;  %v2051_v43 = vshll.u32 %v2050_v15, 16  ;;  %v8904_v15 = vld [vmem:[#allocation72_spill] sm:$0xff] }
 0x367   : > { %v3576_v53 = vsel %vm3471_vm6, %v3843_v10, %v3374_v59  ;;  %v3143_v55 = vpop.xlane.xlu0 %3142  ;;  %v3108_v38 = vsel %vm451_vm0, %v2965_v18, 0.0  ;;  %v7399_v10 = vsel %vm2271_vm1, 1.0, %v8875_v36  ;;  %v4178_v20 = vpop.eup %4177 }
 0x368   : > { %v1623_v14 = vpop.xlane.xlu1 %1622  ;;  %v3626_v21 = vsel %vm3420_vm8, %v3425_v9, %v3576_v53  ;;  %v3350_v4 = vsub.f32 %v3281_v29, %v3143_v55  ;;  %v3109_v28 = vadd.f32 %v3108_v38, %v2964_v56  ;;  %v2067_v9 = vcvt.f32.s32 %v6868_v6  ;;  %v8902_v29 = vld [vmem:[#allocation82_spill] sm:$0xff]  ;;  %v8903_v56 = vld [vmem:[#allocation152_spill] sm:$0xff]  ;;  %v8905_v55 = vld [vmem:[#allocation161_spill] sm:$0xff] }
 0x369   : > { %v1624_v13 = vcvt.f32.s32 %v1623_v14  ;;  %3677 = vst.msk [vmem:[%s7244_s16 + $0x20] sm:$0xff] %vm3672_vm10, %v3626_v21  ;;  %vm2302_vm7 = vcmp.gt.f32.partialorder %v8902_v29, 0.0  ;;  %4185 = vlog2.f32 %v8903_v56  ;;  %v7415_v18 = vadd.s32 %v2051_v43, %v2049_v44  ;;  %v4180_v30 = vpop.eup %4179 }
 0x36a   : > { %v3400_v23 = vsel %vm2300_vm4, %v3350_v4, 0.0  ;;  %3110 = vadd.xlane.f32.xlu0 %v3109_v28  ;;  %4187 = vlog2.f32 %v8905_v55  ;;  %v3845_v38 = vsel %vm2276_vm5, 1.0, %v8875_v36  ;;  %v4182_v21 = vpop.eup %4181  ;;  %v8907_v4 = vld [vmem:[#allocation173_spill] sm:$0xff]  ;;  %v1659_v44 = vcvt.f32.s32 %v6896_v32  ;;  %v8909_v55 = vld [vmem:[#allocation216_spill] sm:$0xff] }
 0x36b   : > { %v7403_v27 = vadd.s32 %v1626_v46, %v1624_v13  ;;  %v3602_v2 = vsel %vm3471_vm6, %v3869_v61, %v3400_v23  ;;  %v7430_v46 = vsel %vm2302_vm7, 1.0, %v8875_v36  ;;  %4189 = vlog2.f32 %v8907_v4 }
 0x36c   : > { %v2065_v59 = vpop.xlane.xlu1 %2064  ;;  %v3652_v31 = vsel %vm3420_vm8, %v3451_v62, %v3602_v2  ;;  %v2068_v13 = vshll.u32 %v2067_v9, 16  ;;  %v1643_v61 = vshll.u32 %v1642_v25, 16  ;;  %v3223_v2 = vmul.f32 0.6931472, %v4178_v20  ;;  %v8910_v25 = vld [vmem:[#allocation77_spill] sm:$0xff] }
 0x36d   : > { %vm2866_vm9 = vcmp.eq.s32.totalorder %v5746_v57, %v7403_v27  ;;  %3703 = vst.msk [vmem:[%s7244_s16 + $0xf0] sm:$0xff] %vm3672_vm10, %v3652_v31  ;;  %v2066_v6 = vcvt.f32.s32 %v2065_v59  ;;  %vm2867_vm11 = vcmp.eq.s32.totalorder %v5751_v26, %v7403_v27  ;;  %v8908_v59 = vld [vmem:[#allocation214_spill] sm:$0xff]  ;;  %v3233_v31 = vmul.f32 0.6931472, %v4180_v30 }
 0x36e   : > { %v2966_v53 = vsel %vm2866_vm9, %v8904_v15, 0.0  ;;  %v2967_v14 = vsel %vm2867_vm11, %v8906_v58, 0.0  ;;  %4191 = vlog2.f32 %v8908_v59  ;;  %vm2917_vm12 = vcmp.eq.s32.totalorder %v5751_v26, %v7415_v18  ;;  %v4184_v15 = vpop.eup %4183 }
 0x36f   : > { %v3112_v62 = vsel %vm451_vm0, %v2967_v14, 0.0  ;;  %v7436_v56 = vadd.s32 %v2068_v13, %v2066_v6  ;;  %4193 = vlog2.f32 %v8909_v55  ;;  %v3422_v32 = vcvt.s32.f32 %v6866_v35  ;;  %v8911_v35 = vld [vmem:[#allocation97_spill] sm:$0xff]  ;;  %v8915_v55 = vld [vmem:[#allocation104_spill] sm:$0xff] }
 0x370   : > { %v1640_v28 = vpop.xlane.xlu1 %1639  ;;  %v3113_v43 = vadd.f32 %v3112_v62, %v2966_v53  ;;  %vm2297_vm13 = vcmp.gt.f32.partialorder %v8910_v25, 0.0  ;;  %v3275_v53 = vmul.f32 0.6931472, %v4182_v21  ;;  %v3427_v20 = vcvt.s32.f32 %v6876_v19  ;;  %v8913_v62 = vld [vmem:[#allocation147_spill] sm:$0xff] }
 0x371   : > { %v1641_v23 = vcvt.f32.s32 %v1640_v28  ;;  %v3453_v6 = vcvt.s32.f32 %v6891_v5  ;;  %v1660_v58 = vshll.u32 %v1659_v44, 16  ;;  %vm2916_vm14 = vcmp.eq.s32.totalorder %v5746_v57, %v7415_v18  ;;  %v8912_v5 = vld [vmem:[#allocation19_spill] sm:$0xff] }
 0x372   : > { %3114 = vadd.xlane.f32.xlu1 %v3113_v43  ;;  %v3017_v21 = vsel %vm2917_vm12, %v8911_v35, 0.0  ;;  %4195 = vlog2.f32 %v7087_v11  ;;  %v3285_v19 = vmul.f32 0.6931472, %v4184_v15  ;;  %vm2273_vm3 = vcmp.gt.f32.partialorder %v8912_v5, 0.0  ;;  %v8916_v35 = vld [vmem:[#allocation203_spill] sm:$0xff] }
 0x373   : > { %v7442_v9 = vadd.s32 %v1643_v61, %v1641_v23  ;;  %v3047_v30 = vpop.xlane.xlu0 %3046  ;;  %vm2919_vm4 = vcmp.eq.s32.totalorder %v5751_v26, %v7436_v56  ;;  %v8914_v23 = vld [vmem:[#allocation148_spill] sm:$0xff]  ;;  %v3016_v63 = vsel %vm2916_vm14, %v8915_v55, 0.0 }
 0x374   : > { %v1657_v14 = vpop.xlane.xlu1 %1656  ;;  %v3326_v4 = vsub.f32 %v3233_v31, %v3047_v30  ;;  %v3212_v30 = vsel %vm451_vm0, %v3017_v21, 0.0 }
 0x375   : > { %v1658_v13 = vcvt.f32.s32 %v1657_v14  ;;  %vm2868_vm15 = vcmp.eq.s32.totalorder %v5746_v57, %v7442_v9  ;;  %vm2869_vm2 = vcmp.eq.s32.totalorder %v5751_v26, %v7442_v9 }
 0x376   : > { %v3376_v44 = vsel %vm2276_vm5, %v3326_v4, 0.0  ;;  %v2968_v61 = vsel %vm2868_vm15, %v8913_v62, 0.0  ;;  %v2969_v43 = vsel %vm2869_vm2, %v8914_v23, 0.0  ;;  %vm2918_vm5 = vcmp.eq.s32.totalorder %v5746_v57, %v7436_v56  ;;  %v8918_v62 = vld [vmem:[#allocation151_spill] sm:$0xff] }
 0x377   : > { %v7463_v28 = vadd.s32 %v1660_v58, %v1658_v13  ;;  %v3578_v11 = vsel %vm3471_vm6, %v3845_v38, %v3376_v44  ;;  %v3151_v59 = vpop.xlane.xlu0 %3150  ;;  %v3116_v15 = vsel %vm451_vm0, %v2969_v43, 0.0  ;;  %v4186_v38 = vpop.eup %4185 }
 0x378   : > { %v3027_v31 = vpop.xlane.xlu1 %3026  ;;  %v3628_v58 = vsel %vm3420_vm8, %v3427_v20, %v3578_v11  ;;  %v3352_v14 = vsub.f32 %v3285_v19, %v3151_v59  ;;  %v3117_v13 = vadd.f32 %v3116_v15, %v2968_v61  ;;  %v3019_v20 = vsel %vm2919_vm4, %v8916_v35, 0.0  ;;  %v8917_v19 = vld [vmem:[#allocation156_spill] sm:$0xff]  ;;  %v4188_v23 = vpop.eup %4187  ;;  %v8919_v11 = vld [vmem:[#allocation25_spill] sm:$0xff] }
 0x379   : > { %v3321_v4 = vsub.f32 %v3223_v2, %v3027_v31  ;;  %3679 = vst.msk [vmem:[%s7244_s16 + $0x30] sm:$0xff] %vm3672_vm10, %v3628_v58  ;;  %vm2870_vm9 = vcmp.eq.s32.totalorder %v5746_v57, %v7463_v28  ;;  %vm2871_vm11 = vcmp.eq.s32.totalorder %v5751_v26, %v7463_v28  ;;  %v4190_v59 = vpop.eup %4189 }
 0x37a   : > { %v3402_v2 = vsel %vm2302_vm7, %v3352_v14, 0.0  ;;  %v2970_v44 = vsel %vm2870_vm9, %v8917_v19, 0.0  ;;  %v2971_v61 = vsel %vm2871_vm11, %v8918_v62, 0.0  ;;  %3118 = vadd.xlane.f32.xlu0 %v3117_v13  ;;  %v8920_v14 = vld [vmem:[#allocation206_spill] sm:$0xff]  ;;  %v3448_v13 = vcvt.s32.f32 %v6882_v42  ;;  %v8922_v62 = vld [vmem:[#allocation180_spill] sm:$0xff] }
 0x37b   : > { %v3371_v21 = vsel %vm2271_vm1, %v3321_v4, 0.0  ;;  %v3604_v43 = vsel %vm3471_vm6, %v7430_v46, %v3402_v2  ;;  %v3120_v16 = vsel %vm451_vm0, %v2971_v61, 0.0  ;;  %vm2278_vm1 = vcmp.gt.f32.partialorder %v8919_v11, 0.0  ;;  %v8923_v61 = vld [vmem:[#allocation79_spill] sm:$0xff] }
 0x37c   : > { %v3573_v26 = vsel %vm3471_vm6, %v7399_v10, %v3371_v21  ;;  %v3131_v29 = vpop.xlane.xlu1 %3130  ;;  %v3654_v31 = vsel %vm3420_vm8, %v3453_v6, %v3604_v43  ;;  %v3121_v58 = vadd.f32 %v3120_v16, %v2970_v44  ;;  %v3866_v10 = vsel %vm2297_vm13, 1.0, %v8875_v36 }
 0x37d   : > { %v3623_v15 = vsel %vm3420_vm8, %v3422_v32, %v3573_v26  ;;  %v3347_v55 = vsub.f32 %v3275_v53, %v3131_v29  ;;  %3705 = vst.msk [vmem:[%s7244_s16 + $0x100] sm:$0xff] %vm3672_vm10, %v3654_v31  ;;  %v3213_v46 = vadd.f32 %v3212_v30, %v3016_v63  ;;  %v3018_v4 = vsel %vm2918_vm5, %v8920_v14, 0.0  ;;  %v4192_v32 = vpop.eup %4191  ;;  %v8921_v53 = vld [vmem:[#allocation170_spill] sm:$0xff]  ;;  %v8924_v26 = vld [vmem:[#allocation101_spill] sm:$0xff] }
 0x37e   : > { %3674 = vst.msk [vmem:[%s7244_s16 + $0x8] sm:$0xff] %vm3672_vm10, %v3623_v15  ;;  %v3216_v6 = vsel %vm451_vm0, %v3019_v20, 0.0  ;;  %4197 = vlog2.f32 %v8921_v53  ;;  %3122 = vadd.xlane.f32.xlu1 %v3121_v58  ;;  %v3227_v2 = vmul.f32 0.6931472, %v4186_v38  ;;  %v4194_v21 = vpop.eup %4193  ;;  %v3842_v19 = vsel %vm2273_vm3, 1.0, %v8875_v36  ;;  %v8927_v14 = vld [vmem:[#allocation177_spill] sm:$0xff] }
 0x37f   : > { %v3397_v35 = vsel %vm2297_vm13, %v3347_v55, 0.0  ;;  %3214 = vadd.xlane.f32.xlu0 %v3213_v46  ;;  %v3217_v42 = vadd.f32 %v3216_v6, %v3018_v4  ;;  %4199 = vlog2.f32 %v8922_v62  ;;  %v3237_v25 = vmul.f32 0.6931472, %v4190_v59  ;;  %v4196_v43 = vpop.eup %4195  ;;  %v8926_v46 = vld [vmem:[#allocation21_spill] sm:$0xff] }
 0x380   : > { %v3599_v63 = vsel %vm3471_vm6, %v3866_v10, %v3397_v35  ;;  %v3035_v30 = vpop.xlane.xlu1 %3034  ;;  %v3847_v38 = vsel %vm2278_vm1, 1.0, %v8875_v36  ;;  %vm2299_vm0 = vcmp.gt.f32.partialorder %v8923_v61, 0.0  ;;  %4201 = vlog2.f32 %v8924_v26  ;;  %v8925_v10 = vld [vmem:[#allocation84_spill] sm:$0xff] }
 0x381   : > { %v3649_v20 = vsel %vm3420_vm8, %v3448_v13, %v3599_v63  ;;  %v3323_v44 = vsub.f32 %v3227_v2, %v3035_v30  ;;  %v3424_v29 = vcvt.s32.f32 %v6907_v47  ;;  %v3279_v15 = vmul.f32 0.6931472, %v4192_v32 }
 0x382   : > { %3700 = vst.msk [vmem:[%s7244_s16 + $0xd8] sm:$0xff] %vm3672_vm10, %v3649_v20  ;;  %3218 = vadd.xlane.f32.xlu1 %v3217_v42  ;;  %vm2304_vm7 = vcmp.gt.f32.partialorder %v8925_v10, 0.0  ;;  %vm2275_vm12 = vcmp.gt.f32.partialorder %v8926_v46, 0.0  ;;  %4203 = vlog2.f32 %v8927_v14  ;;  %v3868_v5 = vsel %vm2299_vm0, 1.0, %v8875_v36  ;;  %v8928_v42 = vld [vmem:[#allocation102_spill] sm:$0xff]  ;;  %v8931_v10 = vld [vmem:[#allocation184_spill] sm:$0xff] }
 0x383   : > { %v3373_v16 = vsel %vm2273_vm3, %v3323_v44, 0.0  ;;  %v3055_v31 = vpop.xlane.xlu0 %3054  ;;  %v3429_v6 = vcvt.s32.f32 %v6948_v12  ;;  %4205 = vlog2.f32 %v7107_v33  ;;  %v3289_v53 = vmul.f32 0.6931472, %v4196_v43  ;;  %v8932_v46 = vld [vmem:[#allocation123_spill] sm:$0xff] }
 0x384   : > { %v3575_v59 = vsel %vm3471_vm6, %v3842_v19, %v3373_v16  ;;  %v3328_v55 = vsub.f32 %v3237_v25, %v3055_v31  ;;  %v3139_v58 = vpop.xlane.xlu1 %3138  ;;  %v3450_v13 = vcvt.s32.f32 %v6930_v3  ;;  %v3231_v30 = vmul.f32 0.6931472, %v4188_v23 }
 0x385   : > { %v3625_v47 = vsel %vm3420_vm8, %v3424_v29, %v3575_v59  ;;  %v3349_v4 = vsub.f32 %v3279_v15, %v3139_v58  ;;  %v3873_v19 = vsel %vm2304_vm7, 1.0, %v8875_v36  ;;  %v3844_v23 = vsel %vm2275_vm12, 1.0, %v8875_v36 }
 0x386   : > { %3676 = vst.msk [vmem:[%s7244_s16 + $0x18] sm:$0xff] %vm3672_vm10, %v3625_v47  ;;  %v3378_v32 = vsel %vm2278_vm1, %v3328_v55, 0.0  ;;  %4207 = vlog2.f32 %v8928_v42  ;;  %v3455_v62 = vcvt.s32.f32 %v6965_v50  ;;  %v3426_v61 = vcvt.s32.f32 %v6938_v45  ;;  %v8930_v55 = vld [vmem:[#allocation24_spill] sm:$0xff] }
 0x387   : > { %v3580_v35 = vsel %vm3471_vm6, %v3847_v38, %v3378_v32  ;;  %v3399_v2 = vsel %vm2299_vm0, %v3349_v4, 0.0  ;;  %v3159_v63 = vpop.xlane.xlu0 %3158  ;;  %v8929_v38 = vld [vmem:[#allocation81_spill] sm:$0xff]  ;;  %v3283_v29 = vmul.f32 0.6931472, %v4194_v21  ;;  %vm2277_vm14 = vcmp.gt.f32.partialorder %v8930_v55, 0.0 }
 0x388   : > { %v3630_v12 = vsel %vm3420_vm8, %v3429_v6, %v3580_v35  ;;  %v3601_v33 = vsel %vm3471_vm6, %v3868_v5, %v3399_v2  ;;  %v3354_v11 = vsub.f32 %v3289_v53, %v3159_v63  ;;  %v3043_v20 = vpop.xlane.xlu1 %3042  ;;  %vm2301_vm13 = vcmp.gt.f32.partialorder %v8929_v38, 0.0  ;;  %v8933_v35 = vld [vmem:[#allocation30_spill] sm:$0xff]  ;;  %v8934_v63 = vld [vmem:[#allocation185_spill] sm:$0xff] }
 0x389   : > { %3681 = vst.msk [vmem:[%s7244_s16 + $0x40] sm:$0xff] %vm3672_vm10, %v3630_v12  ;;  %v3651_v3 = vsel %vm3420_vm8, %v3450_v13, %v3601_v33  ;;  %v3325_v44 = vsub.f32 %v3231_v30, %v3043_v20  ;;  %v3870_v21 = vsel %vm2301_vm13, 1.0, %v8875_v36  ;;  %4209 = vlog2.f32 %v8931_v10  ;;  %v8935_v33 = vld [vmem:[#allocation83_spill] sm:$0xff] }
 0x38a   : > { %3702 = vst.msk [vmem:[%s7244_s16 + $0xe8] sm:$0xff] %vm3672_vm10, %v3651_v3  ;;  %v3404_v25 = vsel %vm2304_vm7, %v3354_v11, 0.0  ;;  %v3452_v14 = vcvt.s32.f32 %v8932_v46  ;;  %vm2280_vm15 = vcmp.gt.f32.partialorder %v8933_v35, 0.0  ;;  %4211 = vlog2.f32 %v8934_v63  ;;  %v8936_v20 = vld [vmem:[#allocation107_spill] sm:$0xff] }
 0x38b   : > { %v3606_v43 = vsel %vm3471_vm6, %v3873_v19, %v3404_v25  ;;  %v3375_v26 = vsel %vm2275_vm12, %v3325_v44, 0.0  ;;  %v4198_v16 = vpop.eup %4197  ;;  %v3846_v30 = vsel %vm2277_vm14, 1.0, %v8875_v36  ;;  %vm2303_vm2 = vcmp.gt.f32.partialorder %v8935_v33, 0.0 }
 0x38c   : > { %v3656_v50 = vsel %vm3420_vm8, %v3455_v62, %v3606_v43  ;;  %v3577_v31 = vsel %vm3471_vm6, %v3844_v23, %v3375_v26  ;;  %v3147_v15 = vpop.xlane.xlu1 %3146  ;;  %v4200_v58 = vpop.eup %4199  ;;  %v3235_v5 = vmul.f32 0.6931472, %v4198_v16  ;;  %4213 = vlog2.f32 %v8936_v20  ;;  %v8942_v20 = vld [vmem:[#allocation85_spill] sm:$0xff] }
 0x38d   : > { %3707 = vst.msk [vmem:[%s7244_s16 + $0x110] sm:$0xff] %vm3672_vm10, %v3656_v50  ;;  %v3627_v45 = vsel %vm3420_vm8, %v3426_v61, %v3577_v31  ;;  %v3351_v59 = vsub.f32 %v3283_v29, %v3147_v15  ;;  %v4202_v4 = vpop.eup %4201  ;;  %v3241_v12 = vmul.f32 0.6931472, %v4200_v58  ;;  %v3428_v3 = vcvt.s32.f32 %v6979_v51  ;;  %v8937_v61 = vld [vmem:[#allocation29_spill] sm:$0xff]  ;;  %v8938_v29 = vld [vmem:[#allocation86_spill] sm:$0xff] }
 0x38e   : > { %3678 = vst.msk [vmem:[%s7244_s16 + $0x28] sm:$0xff] %vm3672_vm10, %v3627_v45  ;;  %v3287_v44 = vmul.f32 0.6931472, %v4202_v4  ;;  %v3849_v62 = vsel %vm2280_vm15, 1.0, %v8875_v36  ;;  %vm2279_vm3 = vcmp.gt.f32.partialorder %v8937_v61, 0.0  ;;  %v3872_v51 = vsel %vm2303_vm2, 1.0, %v8875_v36 }
 0x38f   : > { %v3401_v47 = vsel %vm2301_vm13, %v3351_v59, 0.0  ;;  %v4204_v2 = vpop.eup %4203  ;;  %vm2306_vm4 = vcmp.gt.f32.partialorder %v8938_v29, 0.0  ;;  %v3431_v16 = vcvt.s32.f32 %v7015_v60  ;;  %4215 = vlog2.f32 %v7123_v37  ;;  %v8940_v4 = vld [vmem:[#allocation131_spill] sm:$0xff] }
 0x390   : > { %v3603_v6 = vsel %vm3471_vm6, %v3870_v21, %v3401_v47  ;;  %v3051_v32 = vpop.xlane.xlu1 %3050  ;;  %v4206_v11 = vpop.eup %4205  ;;  %v3454_v45 = vcvt.s32.f32 %v6998_v34  ;;  %v3239_v60 = vmul.f32 0.6931472, %v4204_v2  ;;  %vm2305_vm5 = vcmp.gt.f32.partialorder %v8942_v20, 0.0 }
 0x391   : > { %v3653_v53 = vsel %vm3420_vm8, %v3452_v14, %v3603_v6  ;;  %v3327_v13 = vsub.f32 %v3235_v5, %v3051_v32  ;;  %v3293_v31 = vmul.f32 0.6931472, %v4206_v11  ;;  %v3848_v14 = vsel %vm2279_vm3, 1.0, %v8875_v36  ;;  %v8939_v5 = vld [vmem:[#allocation188_spill] sm:$0xff] }
 0x392   : > { %3704 = vst.msk [vmem:[%s7244_s16 + $0xf8] sm:$0xff] %vm3672_vm10, %v3653_v53  ;;  %4217 = vlog2.f32 %v8939_v5  ;;  %v3457_v6 = vcvt.s32.f32 %v8940_v4  ;;  %v3875_v32 = vsel %vm2306_vm4, 1.0, %v8875_v36 }
 0x393   : > { %v3377_v19 = vsel %vm2277_vm14, %v3327_v13, 0.0  ;;  %v3063_v23 = vpop.xlane.xlu0 %3062  ;;  %v4208_v15 = vpop.eup %4207  ;;  %v8941_v13 = vld [vmem:[#allocation124_spill] sm:$0xff] }
 0x394   : > { %v3579_v42 = vsel %vm3471_vm6, %v3846_v30, %v3377_v19  ;;  %v3330_v25 = vsub.f32 %v3241_v12, %v3063_v23  ;;  %v3155_v38 = vpop.xlane.xlu1 %3154  ;;  %v3430_v35 = vcvt.s32.f32 %v8941_v13  ;;  %v3291_v30 = vmul.f32 0.6931472, %v4208_v15 }
 0x395   : > { %v3629_v43 = vsel %vm3420_vm8, %v3428_v3, %v3579_v42  ;;  %v3353_v26 = vsub.f32 %v3287_v44, %v3155_v38  ;;  %v8943_v44 = vld [vmem:[#allocation110_spill] sm:$0xff] }
 0x396   : > { %3680 = vst.msk [vmem:[%s7244_s16 + $0x38] sm:$0xff] %vm3672_vm10, %v3629_v43  ;;  %v3380_v50 = vsel %vm2280_vm15, %v3330_v25, 0.0  ;;  %v4210_v12 = vpop.eup %4209  ;;  %4219 = vlog2.f32 %v8943_v44  ;;  %v3874_v25 = vsel %vm2305_vm5, 1.0, %v8875_v36 }
 0x397   : > { %v3582_v59 = vsel %vm3471_vm6, %v3849_v62, %v3380_v50  ;;  %v3403_v21 = vsel %vm2303_vm2, %v3353_v26, 0.0  ;;  %v3167_v55 = vpop.xlane.xlu0 %3166  ;;  %v4212_v42 = vpop.eup %4211  ;;  %v3456_v62 = vcvt.s32.f32 %v7025_v41  ;;  %v3243_v61 = vmul.f32 0.6931472, %v4210_v12  ;;  %v8944_v26 = vld [vmem:[#allocation35_spill] sm:$0xff]  ;;  %v8946_v41 = vld [vmem:[#allocation36_spill] sm:$0xff] }
 0x398   : > { %v3632_v37 = vsel %vm3420_vm8, %v3431_v16, %v3582_v59  ;;  %v3605_v58 = vsel %vm3471_vm6, %v3872_v51, %v3403_v21  ;;  %v3356_v10 = vsub.f32 %v3293_v31, %v3167_v55  ;;  %v3059_v46 = vpop.xlane.xlu1 %3058  ;;  %vm2281_vm9 = vcmp.gt.f32.partialorder %v8944_v26, 0.0  ;;  %v8945_v31 = vld [vmem:[#allocation191_spill] sm:$0xff]  ;;  %v8947_v59 = vld [vmem:[#allocation128_spill] sm:$0xff] }
 0x399   : > { %3683 = vst.msk [vmem:[%s7244_s16 + $0x50] sm:$0xff] %vm3672_vm10, %v3632_v37  ;;  %v3655_v34 = vsel %vm3420_vm8, %v3454_v45, %v3605_v58  ;;  %v3329_v47 = vsub.f32 %v3239_v60, %v3059_v46  ;;  %v4214_v43 = vpop.eup %4213  ;;  %4221 = vlog2.f32 %v8945_v31  ;;  %vm2282_vm11 = vcmp.gt.f32.partialorder %v8946_v41, 0.0  ;;  %v8955_v31 = vld [vmem:[#allocation108_spill] sm:$0xff] }
 0x39a   : > { %3706 = vst.msk [vmem:[%s7244_s16 + $0x108] sm:$0xff] %vm3672_vm10, %v3655_v34  ;;  %v3406_v53 = vsel %vm2306_vm4, %v3356_v10, 0.0  ;;  %v3245_v15 = vmul.f32 0.6931472, %v4212_v42  ;;  %v3432_v21 = vcvt.s32.f32 %v8947_v59  ;;  %v3850_v55 = vsel %vm2281_vm9, 1.0, %v8875_v36  ;;  %v8948_v34 = vld [vmem:[#allocation88_spill] sm:$0xff] }
 0x39b   : > { %v3608_v2 = vsel %vm3471_vm6, %v3875_v32, %v3406_v53  ;;  %v3379_v63 = vsel %vm2279_vm3, %v3329_v47, 0.0  ;;  %v3295_v58 = vmul.f32 0.6931472, %v4214_v43  ;;  %vm2307_vm1 = vcmp.gt.f32.partialorder %v8948_v34, 0.0  ;;  %v8950_v32 = vld [vmem:[#allocation129_spill] sm:$0xff]  ;;  %v8956_v41 = vld [vmem:[#allocation136_spill] sm:$0xff] }
 0x39c   : > { %v3658_v33 = vsel %vm3420_vm8, %v3457_v6, %v3608_v2  ;;  %v3581_v11 = vsel %vm3471_vm6, %v3848_v14, %v3379_v63  ;;  %v3163_v3 = vpop.xlane.xlu1 %3162  ;;  %v4216_v45 = vpop.eup %4215  ;;  %v3851_v5 = vsel %vm2282_vm11, 1.0, %v8875_v36  ;;  %v8949_v6 = vld [vmem:[#allocation90_spill] sm:$0xff]  ;;  %4223 = vlog2.f32 %v7142_v40  ;;  %v8951_v63 = vld [vmem:[#allocation132_spill] sm:$0xff]  ;;  %v8952_v42 = vld [vmem:[#allocation41_spill] sm:$0xff] }
 0x39d   : > { %3709 = vst.msk [vmem:[%s7244_s16 + $0x120] sm:$0xff] %vm3672_vm10, %v3658_v33  ;;  %v3631_v19 = vsel %vm3420_vm8, %v3430_v35, %v3581_v11  ;;  %v3355_v23 = vsub.f32 %v3291_v30, %v3163_v3  ;;  %vm2308_vm0 = vcmp.gt.f32.partialorder %v8949_v6, 0.0  ;;  %v3433_v53 = vcvt.s32.f32 %v8950_v32  ;;  %v8958_v34 = vld [vmem:[#allocation196_spill] sm:$0xff] }
 0x39e   : > { %3682 = vst.msk [vmem:[%s7244_s16 + $0x48] sm:$0xff] %vm3672_vm10, %v3631_v19  ;;  %v3297_v35 = vmul.f32 0.6931472, %v4216_v45  ;;  %v3458_v30 = vcvt.s32.f32 %v8951_v63  ;;  %v3876_v33 = vsel %vm2307_vm1, 1.0, %v8875_v36  ;;  %v3877_v44 = vsel %vm2308_vm0, 1.0, %v8875_v36  ;;  %v8960_v63 = vld [vmem:[#allocation98_spill] sm:$0xff] }
 0x39f   : > { %v3405_v38 = vsel %vm2305_vm5, %v3355_v23, 0.0  ;;  %v4218_v2 = vpop.eup %4217  ;;  %vm2283_vm7 = vcmp.gt.f32.partialorder %v8952_v42, 0.0  ;;  %vm2310_vm14 = vcmp.gt.f32.partialorder %v8960_v63, 0.0  ;;  %v3437_v63 = vcvt.s32.f32 %v7173_v54  ;;  %v8973_v54 = vld [vmem:[#allocation5_spill] sm:$0xff] }
 0x3a0   : > { %v3607_v51 = vsel %vm3471_vm6, %v3874_v25, %v3405_v38  ;;  %v3067_v29 = vpop.xlane.xlu1 %3066  ;;  %v3459_v25 = vcvt.s32.f32 %v7092_v17  ;;  %v3852_v17 = vsel %vm2283_vm7, 1.0, %v8875_v36  ;;  %v3879_v42 = vsel %vm2310_vm14, 1.0, %v8875_v36 }
 0x3a1   : > { %v3657_v16 = vsel %vm3420_vm8, %v3456_v62, %v3607_v51  ;;  %v3331_v50 = vsub.f32 %v3243_v61, %v3067_v29  ;;  %v8953_v62 = vld [vmem:[#allocation194_spill] sm:$0xff]  ;;  %v3247_v61 = vmul.f32 0.6931472, %v4218_v2 }
 0x3a2   : > { %3708 = vst.msk [vmem:[%s7244_s16 + $0x118] sm:$0xff] %vm3672_vm10, %v3657_v16  ;;  %4225 = vlog2.f32 %v8953_v62  ;;  %v8963_v62 = vld [vmem:[#allocation47_spill] sm:$0xff] }
 0x3a3   : > { %v3381_v60 = vsel %vm2281_vm9, %v3331_v50, 0.0  ;;  %v3071_v37 = vpop.xlane.xlu0 %3070  ;;  %v4220_v43 = vpop.eup %4219  ;;  %v8954_v50 = vld [vmem:[#allocation95_spill] sm:$0xff]  ;;  %4227 = vlog2.f32 %v8955_v31  ;;  %vm2285_vm15 = vcmp.gt.f32.partialorder %v8963_v62, 0.0 }
 0x3a4   : > { %v3583_v10 = vsel %vm3471_vm6, %v3850_v55, %v3381_v60  ;;  %v3332_v46 = vsub.f32 %v3245_v15, %v3071_v37  ;;  %v3171_v14 = vpop.xlane.xlu1 %3170  ;;  %vm2309_vm12 = vcmp.gt.f32.partialorder %v8954_v50, 0.0  ;;  %v3434_v15 = vcvt.s32.f32 %v8956_v41  ;;  %v8966_v41 = vld [vmem:[#allocation103_spill] sm:$0xff] }
 0x3a5   : > { %v3633_v47 = vsel %vm3420_vm8, %v3432_v21, %v3583_v10  ;;  %v3357_v4 = vsub.f32 %v3295_v58, %v3171_v14  ;;  %v3299_v59 = vmul.f32 0.6931472, %v4220_v43  ;;  %v3878_v10 = vsel %vm2309_vm12, 1.0, %v8875_v36  ;;  %v8959_v14 = vld [vmem:[#allocation133_spill] sm:$0xff] }
 0x3a6   : > { %3684 = vst.msk [vmem:[%s7244_s16 + $0x58] sm:$0xff] %vm3672_vm10, %v3633_v47  ;;  %v3382_v13 = vsel %vm2282_vm11, %v3332_v46, 0.0  ;;  %v4222_v21 = vpop.eup %4221  ;;  %v8957_v46 = vld [vmem:[#allocation42_spill] sm:$0xff]  ;;  %4229 = vlog2.f32 %v8958_v34  ;;  %v3460_v47 = vcvt.s32.f32 %v8959_v14  ;;  %v3854_v31 = vsel %vm2285_vm15, 1.0, %v8875_v36  ;;  %v8969_v14 = vld [vmem:[#allocation201_spill] sm:$0xff] }
 0x3a7   : > { %v3584_v12 = vsel %vm3471_vm6, %v3851_v5, %v3382_v13  ;;  %v3407_v11 = vsel %vm2307_vm1, %v3357_v4, 0.0  ;;  %v3175_v20 = vpop.xlane.xlu0 %3174  ;;  %vm2284_vm13 = vcmp.gt.f32.partialorder %v8957_v46, 0.0  ;;  %v3249_v4 = vmul.f32 0.6931472, %v4222_v21 }
 0x3a8   : > { %v3634_v40 = vsel %vm3420_vm8, %v3433_v53, %v3584_v12  ;;  %v3609_v3 = vsel %vm3471_vm6, %v3876_v33, %v3407_v11  ;;  %v3358_v19 = vsub.f32 %v3297_v35, %v3175_v20  ;;  %v3853_v2 = vsel %vm2284_vm13, 1.0, %v8875_v36  ;;  %v8962_v12 = vld [vmem:[#allocation137_spill] sm:$0xff] }
 0x3a9   : > { %3685 = vst.msk [vmem:[%s7244_s16 + $0x60] sm:$0xff] %vm3672_vm10, %v3634_v40  ;;  %v3659_v23 = vsel %vm3420_vm8, %v3458_v30, %v3609_v3  ;;  %v4224_v6 = vpop.eup %4223  ;;  %v8961_v30 = vld [vmem:[#allocation3_spill] sm:$0xff]  ;;  %v3435_v33 = vcvt.s32.f32 %v8962_v12  ;;  %vm2311_vm2 = vcmp.gt.f32.partialorder %v8966_v41, 0.0 }
 0x3aa   : > { %3710 = vst.msk [vmem:[%s7244_s16 + $0x128] sm:$0xff] %vm3672_vm10, %v3659_v23  ;;  %v3408_v38 = vsel %vm2308_vm0, %v3358_v19, 0.0  ;;  %4231 = vlog2.f32 %v8961_v30  ;;  %v3301_v20 = vmul.f32 0.6931472, %v4224_v6  ;;  %v3880_v34 = vsel %vm2311_vm2, 1.0, %v8875_v36 }
 0x3ab   : > { %v3610_v51 = vsel %vm3471_vm6, %v3877_v44, %v3408_v38  ;;  %v3075_v26 = vpop.xlane.xlu1 %3074  ;;  %v8965_v38 = vld [vmem:[#allocation134_spill] sm:$0xff] }
 0x3ac   : > { %v3660_v29 = vsel %vm3420_vm8, %v3459_v25, %v3610_v51  ;;  %v3333_v16 = vsub.f32 %v3247_v61, %v3075_v26  ;;  %v8964_v25 = vld [vmem:[#allocation199_spill] sm:$0xff]  ;;  %v3461_v61 = vcvt.s32.f32 %v8965_v38 }
 0x3ad   : > { %3711 = vst.msk [vmem:[%s7244_s16 + $0x130] sm:$0xff] %vm3672_vm10, %v3660_v29  ;;  %4233 = vlog2.f32 %v8964_v25 }
 0x3ae   : > { %v3383_v45 = vsel %vm2283_vm7, %v3333_v16, 0.0 }
 0x3af   : > { %v3585_v55 = vsel %vm3471_vm6, %v3852_v17, %v3383_v45  ;;  %v3179_v60 = vpop.xlane.xlu1 %3178  ;;  %v4226_v40 = vpop.eup %4225  ;;  %v8968_v45 = vld [vmem:[#allocation2_spill] sm:$0xff] }
 0x3b0   : > { %v3635_v37 = vsel %vm3420_vm8, %v3434_v15, %v3585_v55  ;;  %v3359_v58 = vsub.f32 %v3299_v59, %v3179_v60  ;;  %v3251_v51 = vmul.f32 0.6931472, %v4226_v40  ;;  %v4228_v26 = vpop.eup %4227  ;;  %v8967_v15 = vld [vmem:[#allocation112_spill] sm:$0xff]  ;;  %v3436_v59 = vcvt.s32.f32 %v8968_v45  ;;  %v8972_v40 = vld [vmem:[#allocation106_spill] sm:$0xff] }
 0x3b1   : > { %3686 = vst.msk [vmem:[%s7244_s16 + $0x68] sm:$0xff] %vm3672_vm10, %v3635_v37  ;;  %4235 = vlog2.f32 %v8967_v15  ;;  %v3303_v55 = vmul.f32 0.6931472, %v4228_v26  ;;  %vm2312_vm4 = vcmp.gt.f32.partialorder %v8972_v40, 0.0 }
 0x3b2   : > { %v3409_v5 = vsel %vm2309_vm12, %v3359_v58, 0.0  ;;  %4237 = vlog2.f32 %v8969_v14 }
 0x3b3   : > { %v3611_v32 = vsel %vm3471_vm6, %v3878_v10, %v3409_v5  ;;  %v3079_v53 = vpop.xlane.xlu0 %3078  ;;  %v4230_v60 = vpop.eup %4229 }
 0x3b4   : > { %v3661_v13 = vsel %vm3420_vm8, %v3460_v47, %v3611_v32  ;;  %v3334_v35 = vsub.f32 %v3249_v4, %v3079_v53  ;;  %v3462_v47 = vcvt.s32.f32 %v7162_v7  ;;  %v3253_v4 = vmul.f32 0.6931472, %v4230_v60  ;;  %v8970_v53 = vld [vmem:[#allocation48_spill] sm:$0xff] }
 0x3b5   : > { %3712 = vst.msk [vmem:[%s7244_s16 + $0x138] sm:$0xff] %vm3672_vm10, %v3661_v13  ;;  %vm2286_vm3 = vcmp.gt.f32.partialorder %v8970_v53, 0.0  ;;  %v8981_v53 = vld [vmem:[#allocation205_spill] sm:$0xff] }
 0x3b6   : > { %v3384_v11 = vsel %vm2284_vm13, %v3334_v35, 0.0  ;;  %v3855_v7 = vsel %vm2286_vm3, 1.0, %v8875_v36 }
 0x3b7   : > { %v3586_v3 = vsel %vm3471_vm6, %v3853_v2, %v3384_v11  ;;  %v3183_v19 = vpop.xlane.xlu0 %3182  ;;  %v4232_v6 = vpop.eup %4231  ;;  %v8971_v11 = vld [vmem:[#allocation4_spill] sm:$0xff] }
 0x3b8   : > { %v3636_v23 = vsel %vm3420_vm8, %v3435_v33, %v3586_v3  ;;  %v3360_v44 = vsub.f32 %v3301_v20, %v3183_v19  ;;  %v3305_v12 = vmul.f32 0.6931472, %v4232_v6  ;;  %4239 = vlog2.f32 %v8971_v11 }
 0x3b9   : > { %3687 = vst.msk [vmem:[%s7244_s16 + $0x70] sm:$0xff] %vm3672_vm10, %v3636_v23 }
 0x3ba   : > { %v3410_v43 = vsel %vm2310_vm14, %v3360_v44, 0.0  ;;  %v4234_v33 = vpop.eup %4233  ;;  %v3463_v44 = vcvt.s32.f32 %v8973_v54  ;;  %v8985_v54 = vld [vmem:[#allocation207_spill] sm:$0xff] }
 0x3bb   : > { %v3612_v29 = vsel %vm3471_vm6, %v3879_v42, %v3410_v43  ;;  %v3083_v16 = vpop.xlane.xlu1 %3082  ;;  %v3881_v42 = vsel %vm2312_vm4, 1.0, %v8875_v36  ;;  %v3255_v25 = vmul.f32 0.6931472, %v4234_v33 }
 0x3bc   : > { %v3662_v17 = vsel %vm3420_vm8, %v3461_v61, %v3612_v29  ;;  %v3335_v50 = vsub.f32 %v3251_v51, %v3083_v16  ;;  %v8974_v61 = vld [vmem:[#allocation204_spill] sm:$0xff]  ;;  %v8975_v51 = vld [vmem:[#allocation53_spill] sm:$0xff] }
 0x3bd   : > { %3713 = vst.msk [vmem:[%s7244_s16 + $0x140] sm:$0xff] %vm3672_vm10, %v3662_v17  ;;  %4241 = vlog2.f32 %v8974_v61  ;;  %vm2287_vm5 = vcmp.gt.f32.partialorder %v8975_v51, 0.0  ;;  %v8976_v17 = vld [vmem:[#allocation8_spill] sm:$0xff] }
 0x3be   : > { %v3385_v21 = vsel %vm2285_vm15, %v3335_v50, 0.0  ;;  %v4236_v38 = vpop.eup %4235  ;;  %v3438_v50 = vcvt.s32.f32 %v8976_v17 }
 0x3bf   : > { %v3587_v37 = vsel %vm3471_vm6, %v3854_v31, %v3385_v21  ;;  %v3187_v58 = vpop.xlane.xlu1 %3186  ;;  %v3856_v31 = vsel %vm2287_vm5, 1.0, %v8875_v36  ;;  %v3307_v15 = vmul.f32 0.6931472, %v4236_v38  ;;  %v4238_v45 = vpop.eup %4237 }
 0x3c0   : > { %v3637_v10 = vsel %vm3420_vm8, %v3436_v59, %v3587_v37  ;;  %v3361_v46 = vsub.f32 %v3303_v55, %v3187_v58  ;;  %v8977_v59 = vld [vmem:[#allocation113_spill] sm:$0xff]  ;;  %v8978_v55 = vld [vmem:[#allocation111_spill] sm:$0xff] }
 0x3c1   : > { %3688 = vst.msk [vmem:[%s7244_s16 + $0x78] sm:$0xff] %vm3672_vm10, %v3637_v10  ;;  %4243 = vlog2.f32 %v8977_v59  ;;  %vm2313_vm9 = vcmp.gt.f32.partialorder %v8978_v55, 0.0  ;;  %v8979_v10 = vld [vmem:[#allocation9_spill] sm:$0xff] }
 0x3c2   : > { %v3411_v5 = vsel %vm2311_vm2, %v3361_v46, 0.0  ;;  %v3464_v46 = vcvt.s32.f32 %v8979_v10  ;;  %4245 = vlog2.f32 %v8981_v53 }
 0x3c3   : > { %v3613_v32 = vsel %vm3471_vm6, %v3880_v34, %v3411_v5  ;;  %v3087_v13 = vpop.xlane.xlu0 %3086  ;;  %v3882_v34 = vsel %vm2313_vm9, 1.0, %v8875_v36 }
 0x3c4   : > { %v3663_v35 = vsel %vm3420_vm8, %v3462_v47, %v3613_v32  ;;  %v3336_v2 = vsub.f32 %v3253_v4, %v3087_v13  ;;  %v3257_v47 = vmul.f32 0.6931472, %v4238_v45  ;;  %v8980_v4 = vld [vmem:[#allocation56_spill] sm:$0xff] }
 0x3c5   : > { %3714 = vst.msk [vmem:[%s7244_s16 + $0x148] sm:$0xff] %vm3672_vm10, %v3663_v35  ;;  %vm2288_vm11 = vcmp.gt.f32.partialorder %v8980_v4, 0.0  ;;  %v4240_v32 = vpop.eup %4239 }
 0x3c6   : > { %v3386_v30 = vsel %vm2286_vm3, %v3336_v2, 0.0  ;;  %v3439_v2 = vcvt.s32.f32 %v7226_v8  ;;  %v3309_v33 = vmul.f32 0.6931472, %v4240_v32 }
 0x3c7   : > { %v3588_v20 = vsel %vm3471_vm6, %v3855_v7, %v3386_v30  ;;  %v3191_v3 = vpop.xlane.xlu0 %3190 }
 0x3c8   : > { %v3638_v19 = vsel %vm3420_vm8, %v3437_v63, %v3588_v20  ;;  %v3362_v23 = vsub.f32 %v3305_v12, %v3191_v3  ;;  %v3857_v63 = vsel %vm2288_vm11, 1.0, %v8875_v36  ;;  %v8982_v12 = vld [vmem:[#allocation114_spill] sm:$0xff]  ;;  %v8983_v20 = vld [vmem:[#allocation144_spill] sm:$0xff] }
 0x3c9   : > { %3689 = vst.msk [vmem:[%s7244_s16 + $0x80] sm:$0xff] %vm3672_vm10, %v3638_v19  ;;  %vm2314_vm1 = vcmp.gt.f32.partialorder %v8982_v12, 0.0  ;;  %4247 = vlog2.f32 %v8983_v20  ;;  %v3467_v12 = vcvt.s32.f32 %v7315_v52  ;;  %v8992_v20 = vld [vmem:[#allocation65_spill] sm:$0xff] }
 0x3ca   : > { %v3412_v62 = vsel %vm2312_vm4, %v3362_v23, 0.0  ;;  %v4242_v11 = vpop.eup %4241  ;;  %v3883_v19 = vsel %vm2314_vm1, 1.0, %v8875_v36  ;;  %v8984_v23 = vld [vmem:[#allocation59_spill] sm:$0xff]  ;;  %4249 = vlog2.f32 %v8985_v54  ;;  %vm2291_vm14 = vcmp.gt.f32.partialorder %v8992_v20, 0.0 }
 0x3cb   : > { %v3614_v43 = vsel %vm3471_vm6, %v3881_v42, %v3412_v62  ;;  %v3091_v26 = vpop.xlane.xlu1 %3090  ;;  %vm2289_vm0 = vcmp.gt.f32.partialorder %v8984_v23, 0.0  ;;  %v3259_v62 = vmul.f32 0.6931472, %v4242_v11  ;;  %v3442_v23 = vcvt.s32.f32 %v7337_v1 }
 0x3cc   : > { %v3664_v29 = vsel %vm3420_vm8, %v3463_v44, %v3614_v43  ;;  %v3337_v16 = vsub.f32 %v3255_v25, %v3091_v26  ;;  %v3465_v44 = vcvt.s32.f32 %v7251_v48  ;;  %v3858_v26 = vsel %vm2289_vm0, 1.0, %v8875_v36 }
 0x3cd   : > { %3715 = vst.msk [vmem:[%s7244_s16 + $0x150] sm:$0xff] %vm3672_vm10, %v3664_v29  ;;  %v8986_v29 = vld [vmem:[#allocation117_spill] sm:$0xff]  ;;  %v3440_v48 = vcvt.s32.f32 %v7270_v24  ;;  %v3860_v52 = vsel %vm2291_vm14, 1.0, %v8875_v36  ;;  %v3468_v1 = vcvt.s32.f32 %v7353_v39  ;;  %v8996_v39 = vld [vmem:[#allocation211_spill] sm:$0xff] }
 0x3ce   : > { %v3387_v41 = vsel %vm2287_vm5, %v3337_v16, 0.0  ;;  %v4244_v25 = vpop.eup %4243  ;;  %4251 = vlog2.f32 %v8986_v29  ;;  %v8994_v29 = vld [vmem:[#allocation126_spill] sm:$0xff] }
 0x3cf   : > { %v3589_v21 = vsel %vm3471_vm6, %v3856_v31, %v3387_v41  ;;  %v3195_v60 = vpop.xlane.xlu1 %3194  ;;  %v3311_v17 = vmul.f32 0.6931472, %v4244_v25  ;;  %v8987_v31 = vld [vmem:[#allocation119_spill] sm:$0xff] }
 0x3d0   : > { %v3639_v37 = vsel %vm3420_vm8, %v3438_v50, %v3589_v21  ;;  %v3363_v58 = vsub.f32 %v3307_v15, %v3195_v60  ;;  %vm2315_vm7 = vcmp.gt.f32.partialorder %v8987_v31, 0.0  ;;  %v4246_v15 = vpop.eup %4245  ;;  %v3466_v21 = vcvt.s32.f32 %v7285_v49  ;;  %v8988_v60 = vld [vmem:[#allocation208_spill] sm:$0xff] }
 0x3d1   : > { %3690 = vst.msk [vmem:[%s7244_s16 + $0x88] sm:$0xff] %vm3672_vm10, %v3639_v37  ;;  %v3884_v24 = vsel %vm2315_vm7, 1.0, %v8875_v36  ;;  %4253 = vlog2.f32 %v8988_v60 }
 0x3d2   : > { %v3413_v14 = vsel %vm2313_vm9, %v3363_v58, 0.0  ;;  %v3261_v58 = vmul.f32 0.6931472, %v4246_v15 }
 0x3d3   : > { %v3615_v5 = vsel %vm3471_vm6, %v3882_v34, %v3413_v14  ;;  %v3095_v6 = vpop.xlane.xlu0 %3094  ;;  %v8989_v34 = vld [vmem:[#allocation62_spill] sm:$0xff] }
 0x3d4   : > { %v3665_v13 = vsel %vm3420_vm8, %v3464_v46, %v3615_v5  ;;  %v3338_v35 = vsub.f32 %v3257_v47, %v3095_v6  ;;  %vm2290_vm12 = vcmp.gt.f32.partialorder %v8989_v34, 0.0  ;;  %v3441_v5 = vcvt.s32.f32 %v7301_v0 }
 0x3d5   : > { %3716 = vst.msk [vmem:[%s7244_s16 + $0x158] sm:$0xff] %vm3672_vm10, %v3665_v13  ;;  %v3859_v4 = vsel %vm2290_vm12, 1.0, %v8875_v36  ;;  %v8990_v13 = vld [vmem:[#allocation122_spill] sm:$0xff] }
 0x3d6   : > { %v3388_v7 = vsel %vm2288_vm11, %v3338_v35, 0.0  ;;  %v4248_v10 = vpop.eup %4247  ;;  %vm2316_vm13 = vcmp.gt.f32.partialorder %v8990_v13, 0.0 }
 0x3d7   : > { %v3590_v30 = vsel %vm3471_vm6, %v3857_v63, %v3388_v7  ;;  %v3199_v3 = vpop.xlane.xlu0 %3198  ;;  %v4250_v47 = vpop.eup %4249  ;;  %v3313_v32 = vmul.f32 0.6931472, %v4248_v10  ;;  %v8991_v7 = vld [vmem:[#allocation209_spill] sm:$0xff]  ;;  %v8999_v10 = vld [vmem:[#allocation71_spill] sm:$0xff] }
 0x3d8   : > { %v3640_v40 = vsel %vm3420_vm8, %v3439_v2, %v3590_v30  ;;  %v3364_v8 = vsub.f32 %v3309_v33, %v3199_v3  ;;  %4255 = vlog2.f32 %v8991_v7  ;;  %v3263_v0 = vmul.f32 0.6931472, %v4250_v47 }
 0x3d9   : > { %3691 = vst.msk [vmem:[%s7244_s16 + $0x90] sm:$0xff] %vm3672_vm10, %v3640_v40  ;;  %v3885_v33 = vsel %vm2316_vm13, 1.0, %v8875_v36  ;;  %4257 = vlog2.f32 %v8994_v29  ;;  %vm2293_vm3 = vcmp.gt.f32.partialorder %v8999_v10, 0.0 }
 0x3da   : > { %v3414_v42 = vsel %vm2314_vm1, %v3364_v8, 0.0  ;;  %4259 = vlog2.f32 %v8996_v39 }
 0x3db   : > { %v3616_v38 = vsel %vm3471_vm6, %v3883_v19, %v3414_v42  ;;  %v3099_v61 = vpop.xlane.xlu1 %3098  ;;  %v4252_v30 = vpop.eup %4251 }
 0x3dc   : > { %v3666_v43 = vsel %vm3420_vm8, %v3465_v44, %v3616_v38  ;;  %v3339_v51 = vsub.f32 %v3259_v62, %v3099_v61  ;;  %v3315_v44 = vmul.f32 0.6931472, %v4252_v30  ;;  %v8993_v62 = vld [vmem:[#allocation127_spill] sm:$0xff]  ;;  %v3445_v30 = vcvt.s32.f32 %v7442_v9 }
 0x3dd   : > { %3717 = vst.msk [vmem:[%s7244_s16 + $0x160] sm:$0xff] %vm3672_vm10, %v3666_v43  ;;  %vm2317_vm15 = vcmp.gt.f32.partialorder %v8993_v62, 0.0  ;;  %v3446_v9 = vcvt.s32.f32 %v7463_v28  ;;  %v3469_v62 = vcvt.s32.f32 %v7415_v18  ;;  %v3470_v18 = vcvt.s32.f32 %v7436_v56 }
 0x3de   : > { %v3389_v16 = vsel %vm2289_vm0, %v3339_v51, 0.0  ;;  %v4254_v38 = vpop.eup %4253  ;;  %v3886_v51 = vsel %vm2317_vm15, 1.0, %v8875_v36 }
 0x3df   : > { %v3591_v50 = vsel %vm3471_vm6, %v3858_v26, %v3389_v16  ;;  %v3203_v41 = vpop.xlane.xlu1 %3202  ;;  %v3265_v16 = vmul.f32 0.6931472, %v4254_v38 }
 0x3e0   : > { %v3641_v45 = vsel %vm3420_vm8, %v3440_v48, %v3591_v50  ;;  %v3365_v59 = vsub.f32 %v3311_v17, %v3203_v41  ;;  %v8995_v50 = vld [vmem:[#allocation68_spill] sm:$0xff] }
 0x3e1   : > { %3692 = vst.msk [vmem:[%s7244_s16 + $0x98] sm:$0xff] %vm3672_vm10, %v3641_v45  ;;  %vm2292_vm2 = vcmp.gt.f32.partialorder %v8995_v50, 0.0  ;;  %v8997_v45 = vld [vmem:[#allocation141_spill] sm:$0xff] }
 0x3e2   : > { %v3415_v55 = vsel %vm2315_vm7, %v3365_v59, 0.0  ;;  %4261 = vlog2.f32 %v8997_v45  ;;  %v3443_v59 = vcvt.s32.f32 %v7367_v22  ;;  %v3444_v22 = vcvt.s32.f32 %v7403_v27 }
 0x3e3   : > { %v3617_v37 = vsel %vm3471_vm6, %v3884_v24, %v3415_v55  ;;  %v3103_v14 = vpop.xlane.xlu0 %3102 }
 0x3e4   : > { %v3667_v46 = vsel %vm3420_vm8, %v3466_v21, %v3617_v37  ;;  %v3340_v49 = vsub.f32 %v3261_v58, %v3103_v14  ;;  %v3861_v21 = vsel %vm2292_vm2, 1.0, %v8875_v36  ;;  %v8998_v37 = vld [vmem:[#allocation118_spill] sm:$0xff]  ;;  %v3862_v14 = vsel %vm2293_vm3, 1.0, %v8875_v36 }
 0x3e5   : > { %3718 = vst.msk [vmem:[%s7244_s16 + $0x168] sm:$0xff] %vm3672_vm10, %v3667_v46  ;;  %v4256_v15 = vpop.eup %4255  ;;  %4263 = vlog2.f32 %v8998_v37 }
 0x3e6   : > { %v3390_v6 = vsel %vm2290_vm12, %v3340_v49, 0.0  ;;  %v3267_v58 = vmul.f32 0.6931472, %v4256_v15 }
 0x3e7   : > { %v3592_v53 = vsel %vm3471_vm6, %v3859_v4, %v3390_v6  ;;  %v3207_v35 = vpop.xlane.xlu0 %3206 }
 0x3e8   : > { %v3642_v2 = vsel %vm3420_vm8, %v3441_v5, %v3592_v53  ;;  %v3366_v63 = vsub.f32 %v3313_v32, %v3207_v35  ;;  %v4258_v5 = vpop.eup %4257  ;;  %v9000_v32 = vld [vmem:[#allocation74_spill] sm:$0xff] }
 0x3e9   : > { %3693 = vst.msk [vmem:[%s7244_s16 + $0xa0] sm:$0xff] %vm3672_vm10, %v3642_v2  ;;  %v4260_v6 = vpop.eup %4259  ;;  %vm2294_vm4 = vcmp.gt.f32.partialorder %v9000_v32, 0.0  ;;  %v3269_v53 = vmul.f32 0.6931472, %v4258_v5 }
 0x3ea   : > { %v3416_v11 = vsel %vm2316_vm13, %v3366_v63, 0.0  ;;  %v3863_v27 = vsel %vm2294_vm4, 1.0, %v8875_v36  ;;  %v9001_v63 = vld [vmem:[#allocation75_spill] sm:$0xff]  ;;  %v3271_v7 = vmul.f32 0.6931472, %v4260_v6 }
 0x3eb   : > { %v3107_v40 = vpop.xlane.xlu1 %3106  ;;  %v3618_v3 = vsel %vm3471_vm6, %v3885_v33, %v3416_v11  ;;  %vm2295_vm5 = vcmp.gt.f32.partialorder %v9001_v63, 0.0  ;;  %v9002_v33 = vld [vmem:[#allocation130_spill] sm:$0xff] }
 0x3ec   : > { %v3341_v8 = vsub.f32 %v3263_v0, %v3107_v40  ;;  %v3668_v19 = vsel %vm3420_vm8, %v3467_v12, %v3618_v3  ;;  %vm2318_vm9 = vcmp.gt.f32.partialorder %v9002_v33, 0.0 }
 0x3ed   : > { %3719 = vst.msk [vmem:[%s7244_s16 + $0x170] sm:$0xff] %vm3672_vm10, %v3668_v19 }
 0x3ee   : > { %v3391_v54 = vsel %vm2291_vm14, %v3341_v8, 0.0 }
 0x3ef   : > { %v3593_v42 = vsel %vm3471_vm6, %v3860_v52, %v3391_v54  ;;  %v3211_v25 = vpop.xlane.xlu1 %3210  ;;  %v4262_v13 = vpop.eup %4261  ;;  %v3864_v52 = vsel %vm2295_vm5, 1.0, %v8875_v36  ;;  %v3887_v54 = vsel %vm2318_vm9, 1.0, %v8875_v36 }
 0x3f0   : > { %v3643_v61 = vsel %vm3420_vm8, %v3442_v23, %v3593_v42  ;;  %v3367_v43 = vsub.f32 %v3315_v44, %v3211_v25  ;;  %v3317_v11 = vmul.f32 0.6931472, %v4262_v13 }
 0x3f1   : > { %3694 = vst.msk [vmem:[%s7244_s16 + $0xa8] sm:$0xff] %vm3672_vm10, %v3643_v61  ;;  %v9003_v61 = vld [vmem:[#allocation135_spill] sm:$0xff] }
 0x3f2   : > { %v3417_v26 = vsel %vm2317_vm15, %v3367_v43, 0.0  ;;  %v4264_v0 = vpop.eup %4263  ;;  %vm2319_vm11 = vcmp.gt.f32.partialorder %v9003_v61, 0.0 }
 0x3f3   : > { %v3619_v48 = vsel %vm3471_vm6, %v3886_v51, %v3417_v26  ;;  %v3111_v31 = vpop.xlane.xlu0 %3110  ;;  %v3319_v42 = vmul.f32 0.6931472, %v4264_v0  ;;  %v3888_v29 = vsel %vm2319_vm11, 1.0, %v8875_v36 }
 0x3f4   : > { %v3669_v17 = vsel %vm3420_vm8, %v3468_v1, %v3619_v48  ;;  %v3342_v41 = vsub.f32 %v3265_v16, %v3111_v31 }
 0x3f5   : > { %3720 = vst.msk [vmem:[%s7244_s16 + $0x178] sm:$0xff] %vm3672_vm10, %v3669_v17 }
 0x3f6   : > { %v3392_v24 = vsel %vm2292_vm2, %v3342_v41, 0.0 }
 0x3f7   : > { %v3594_v55 = vsel %vm3471_vm6, %v3861_v21, %v3392_v24 }
 0x3f8   : > { %v3644_v60 = vsel %vm3420_vm8, %v3443_v59, %v3594_v55 }
 0x3f9   : > { %3695 = vst.msk [vmem:[%s7244_s16 + $0xb0] sm:$0xff] %vm3672_vm10, %v3644_v60 }
 0x3fb   : > { %v3115_v46 = vpop.xlane.xlu1 %3114 }
 0x3fc   : > { %v3343_v34 = vsub.f32 %v3267_v58, %v3115_v46 }
 0x3fe   : > { %v3393_v49 = vsel %vm2293_vm3, %v3343_v34, 0.0 }
 0x3ff   : > { %v3595_v47 = vsel %vm3471_vm6, %v3862_v14, %v3393_v49 }
 0x400   : > { %v3645_v4 = vsel %vm3420_vm8, %v3444_v22, %v3595_v47 }
 0x401   : > { %3696 = vst.msk [vmem:[%s7244_s16 + $0xb8] sm:$0xff] %vm3672_vm10, %v3645_v4 }
 0x403   : > { %v3119_v35 = vpop.xlane.xlu0 %3118 }
 0x404   : > { %v3344_v2 = vsub.f32 %v3269_v53, %v3119_v35 }
 0x406   : > { %v3394_v12 = vsel %vm2294_vm4, %v3344_v2, 0.0 }
 0x407   : > { %v3123_v20 = vpop.xlane.xlu1 %3122  ;;  %v3596_v40 = vsel %vm3471_vm6, %v3863_v27, %v3394_v12 }
 0x408   : > { %v3215_v3 = vpop.xlane.xlu0 %3214  ;;  %v3345_v8 = vsub.f32 %v3271_v7, %v3123_v20  ;;  %v3646_v19 = vsel %vm3420_vm8, %v3445_v30, %v3596_v40 }
 0x409   : > { %v3368_v23 = vsub.f32 %v3317_v11, %v3215_v3  ;;  %3697 = vst.msk [vmem:[%s7244_s16 + $0xc0] sm:$0xff] %vm3672_vm10, %v3646_v19 }
 0x40a   : > { %v3395_v44 = vsel %vm2295_vm5, %v3345_v8, 0.0 }
 0x40b   : > { %v3418_v25 = vsel %vm2318_vm9, %v3368_v23, 0.0  ;;  %v3597_v38 = vsel %vm3471_vm6, %v3864_v52, %v3395_v44  ;;  %v3219_v43 = vpop.xlane.xlu1 %3218 }
 0x40c   : > { %v3620_v28 = vsel %vm3471_vm6, %v3887_v54, %v3418_v25  ;;  %v3647_v1 = vsel %vm3420_vm8, %v3446_v9, %v3597_v38  ;;  %v3369_v51 = vsub.f32 %v3319_v42, %v3219_v43 }
 0x40d   : > { %v3670_v26 = vsel %vm3420_vm8, %v3469_v62, %v3620_v28  ;;  %3698 = vst.msk [vmem:[%s7244_s16 + $0xc8] sm:$0xff] %vm3672_vm10, %v3647_v1 }
 0x40e   : > { %3721 = vst.msk [vmem:[%s7244_s16 + $0x180] sm:$0xff] %vm3672_vm10, %v3670_v26  ;;  %v3419_v48 = vsel %vm2319_vm11, %v3369_v51, 0.0 }
 0x40f   : > { %v3621_v16 = vsel %vm3471_vm6, %v3888_v29, %v3419_v48 }
 0x410   : > { %v3671_v17 = vsel %vm3420_vm8, %v3470_v18, %v3621_v16 }
 0x411   : > { %3722 = vst.msk [vmem:[%s7244_s16 + $0x188] sm:$0xff] %vm3672_vm10, %v3671_v17 }
 0x412 PF: > { %s12_s9 = sadd.s32 1, %s4323_s9  }
 0x413   : > { %p9_p4 = scmp.ge.s32.totalorder %s12_s9, 4  }
 0x415   :  { %11 = sbr.rel (!%p9_p4) target bundleno = 1 (0x1), region = 58 }

</bundles_post_ra>
